<compile_context>
chip_gen: v5e
topology: v5e:2x2
jax: 0.10.0
libtpu: 0.0.40
codegen_flags: <defaults>
</compile_context>

<pallas_src>
import functools

import jax
import jax.numpy as jnp
import numpy as np
from jax.experimental import pallas as pl
from jax.experimental.pallas import tpu as pltpu

_HIGHEST = jax.lax.Precision.HIGHEST


def _local_attention_kernel(x_ref, pr_ref, pool_ref, shift_ref, eh_ref, ew_ref,
                            o_ref, *, H, W, K, C2, bblk, S, eps):
    HW2 = 2 * H * W
    NB2 = bblk * C2

    x = x_ref[...].astype(jnp.float32).reshape(NB2, HW2)       # (NB2, 2HW)
    pr = pr_ref[...].astype(jnp.float32)                       # (4K+8, NB2)

    # ---- spatial means, produced directly in the lane-dense branch layout --
    # pooled rows: [0,H) even-ch W-mean | [H,2H) odd-ch W-mean |
    #              [2H,2H+W) even-ch H-mean | [2H+W,2H+2W) odd-ch H-mean
    pooled = jax.lax.dot_general(
        pool_ref[...], x, (((1,), (1,)), ((), ())),
        precision=_HIGHEST, preferred_element_type=jnp.float32)  # (2H+2W, NB2)

    # ---- all K shifted copies via one tiny constant shift-matrix matmul ----
    # (conv zero padding is encoded as all-zero rows of the shift matrix)
    shifted = jax.lax.dot_general(
        shift_ref[...], pooled, (((1,), (0,)), ((), ())),
        precision=_HIGHEST, preferred_element_type=jnp.float32)  # (2K(H+W), NB2)

    # ---- depthwise Conv1d: tap-weighted sum of shifted pooled rows ---------
    def conv(base, L, w_e, w_o):
        ce = w_e[0:1, :] * shifted[base:base + L]
        co = w_o[0:1, :] * shifted[base + L:base + 2 * L]
        for k in range(1, K):
            s0 = base + k * 2 * L
            ce = ce + w_e[k:k + 1, :] * shifted[s0:s0 + L]
            co = co + w_o[k:k + 1, :] * shifted[s0 + L:s0 + 2 * L]
        return ce, co                                           # (L, NB2) each

    ch_e, ch_o = conv(0, H, pr[0:K], pr[K:2 * K])
    cw_e, cw_o = conv(K * 2 * H, W, pr[2 * K:3 * K], pr[3 * K:4 * K])

    # ---- GroupNorm (groups over cpg channels) + affine + sigmoid -----------
    # A group covers both sublane halves (even/odd channel) and S = cpg/2
    # consecutive lanes; segments are aligned because C2 % S == 0.
    lane_mod = None
    if S > 1:
        lane = jax.lax.broadcasted_iota(jnp.int32, (1, NB2), 1)
        lane_mod = lane % S

    def shift_lo(v, k):   # out[l] = v[l + k] (zero fill on the right)
        return jnp.concatenate([v[:, k:], jnp.zeros((1, k), v.dtype)], axis=1)

    def shift_hi(v, k):   # out[l] = v[l - k] (zero fill on the left)
        return jnp.concatenate([jnp.zeros((1, k), v.dtype), v[:, :-k]], axis=1)

    def seg_mean(row, count):
        if S == 1:
            return row * (1.0 / count)
        t = row
        for k in range(1, S):
            t = t + shift_lo(row, k)          # valid at segment starts
        m = t
        for k in range(1, S):
            m = jnp.where(lane_mod == k, shift_hi(t, k), m)
        return m * (1.0 / count)

    def gn_sigmoid(ce, co, L, g_e, g_o, b_e, b_o):
        cnt = 2 * S * L                        # = cpg * L
        s = (jnp.sum(ce, axis=0, keepdims=True)
             + jnp.sum(co, axis=0, keepdims=True))
        mu = seg_mean(s, cnt)
        de = ce - mu
        do = co - mu
        ss = (jnp.sum(de * de, axis=0, keepdims=True)
              + jnp.sum(do * do, axis=0, keepdims=True))
        inv = jax.lax.rsqrt(seg_mean(ss, cnt) + eps)
        ae = jax.nn.sigmoid(de * inv * g_e + b_e)
        ao = jax.nn.sigmoid(do * inv * g_o + b_o)
        return jnp.concatenate([ae, ao], axis=0)                # (2L, NB2)

    A = 4 * K
    ah = gn_sigmoid(ch_e, ch_o, H, pr[A + 0:A + 1], pr[A + 1:A + 2],
                    pr[A + 2:A + 3], pr[A + 3:A + 4])           # (2H, NB2)
    aw = gn_sigmoid(cw_e, cw_o, W, pr[A + 4:A + 5], pr[A + 5:A + 6],
                    pr[A + 6:A + 7], pr[A + 7:A + 8])           # (2W, NB2)

    # ---- a_h (x) a_w expanded straight into the lane-dense (NB2, 2HW) output
    #      layout via tiny 0/1 selection matmuls -> one wide unmasked store --
    a_exp = jax.lax.dot_general(
        ah, eh_ref[...], (((0,), (0,)), ((), ())),
        precision=_HIGHEST, preferred_element_type=jnp.float32)  # (NB2, 2HW)
    b_exp = jax.lax.dot_general(
        aw, ew_ref[...], (((0,), (0,)), ((), ())),
        precision=_HIGHEST, preferred_element_type=jnp.float32)
    o_ref[...] = (a_exp * b_exp).reshape(bblk, C2, HW2).astype(o_ref.dtype)


def local_attention(x, H, W, params, *, groups=16, eps=1e-5, max_batch_block=32):
    """x: (B, H*W, C) float32  ->  (B, H*W, C) float32."""
    b, n, c = x.shape
    assert n == H * W
    assert c % groups == 0, "GroupNorm(groups, c) needs c % groups == 0"
    cpg = c // groups
    assert c % 2 == 0 and cpg % 2 == 0, "paired-channel layout needs c//groups even"
    K = params["wh"].shape[1]
    pad = K // 2
    C2 = c // 2
    S = cpg // 2
    HW2 = 2 * H * W

    # torch `.view(b, c, H, W)` memory reinterpretation, kept flat and paired:
    # row j of the (C2, 2HW) view = [channel 2j spatial | channel 2j+1 spatial].
    x2 = jnp.reshape(x, (b, C2, HW2)).astype(jnp.float32)

    # ---- batch blocking: cdiv + zero-padded tail (no divisibility needed) --
    bblk = max(1, min(b, max_batch_block))
    nsteps = -(-b // bblk)
    # keep >= 2 grid steps when the block stays wide enough (v7x two TCs)
    if nsteps == 1 and b >= 2 and (-(-b // 2)) * C2 >= 256:
        bblk = -(-b // 2)
        nsteps = -(-b // bblk)
    b_pad = nsteps * bblk
    if b_pad != b:
        x2 = jnp.pad(x2, ((0, b_pad - b), (0, 0), (0, 0)))
    NB2 = bblk * C2

    # ---- pack per-channel params once into (4K+8, NB2) -------------------
    # rows: [wh_e | wh_o | ww_e | ww_o | gh_e gh_o bh_e bh_o gw_e gw_o bw_e bw_o]
    def split_eo(p):                        # (C, X) -> (X, C2) even, odd
        return p[0::2].T, p[1::2].T

    rows = []
    for key in ("wh", "ww"):
        e, o = split_eo(params[key])
        rows += [e, o]
    for key in ("gh", "bh", "gw", "bw"):
        e, o = split_eo(params[key])
        rows += [e, o]
    par_c = jnp.concatenate(rows, axis=0).astype(jnp.float32)   # (4K+8, C2)
    par = jnp.tile(par_c, (1, bblk))                             # (4K+8, NB2)

    # ---- hoisted numpy constants -------------------------------------------
    pool = np.zeros((2 * H + 2 * W, HW2), np.float32)            # spatial means
    eh = np.zeros((2 * H, HW2), np.float32)                      # expand H
    ew = np.zeros((2 * W, HW2), np.float32)                      # expand W
    for hh in range(H):
        for wc in range(W):
            p = hh * W + wc
            pool[hh, p] = 1.0 / W
            pool[H + hh, H * W + p] = 1.0 / W
            pool[2 * H + wc, p] = 1.0 / H
            pool[2 * H + W + wc, H * W + p] = 1.0 / H
            eh[hh, p] = 1.0
            eh[H + hh, H * W + p] = 1.0
            ew[wc, p] = 1.0
            ew[W + wc, H * W + p] = 1.0
    Rs = K * (2 * H + 2 * W)
    shift = np.zeros((Rs, 2 * H + 2 * W), np.float32)            # conv tap shifts
    OH = K * 2 * H
    for k in range(K):
        for hh in range(H):
            src = hh + k - pad
            if 0 <= src < H:
                shift[k * 2 * H + hh, src] = 1.0
                shift[k * 2 * H + H + hh, H + src] = 1.0
        for wc in range(W):
            src = wc + k - pad
            if 0 <= src < W:
                shift[OH + k * 2 * W + wc, 2 * H + src] = 1.0
                shift[OH + k * 2 * W + W + wc, 2 * H + W + src] = 1.0

    kernel = functools.partial(_local_attention_kernel, H=H, W=W, K=K, C2=C2,
                               bblk=bblk, S=S, eps=eps)

    cost = pl.CostEstimate(
        flops=(4 * b_pad * C2 * HW2 * (2 * H + 2 * W)            # pool + expand
               + 2 * b_pad * C2 * Rs * (2 * H + 2 * W)           # tap shifts
               + 4 * b_pad * c * K * (H + W)),                   # conv FMAs
        transcendentals=b_pad * c * (H + W),
        bytes_accessed=4 * (2 * b_pad * C2 * HW2 + int(par.size)
                            + pool.size + shift.size + eh.size + ew.size))

    out = pl.pallas_call(
        kernel,
        out_shape=jax.ShapeDtypeStruct((b_pad, C2, HW2), x.dtype),
        grid_spec=pltpu.PrefetchScalarGridSpec(
            num_scalar_prefetch=0,
            grid=(nsteps,),
            in_specs=[
                pl.BlockSpec((bblk, C2, HW2), lambda i: (i, 0, 0)),     # x
                pl.BlockSpec((4 * K + 8, NB2), lambda i: (0, 0)),       # params
                pl.BlockSpec((2 * H + 2 * W, HW2), lambda i: (0, 0)),   # pooling
                pl.BlockSpec((Rs, 2 * H + 2 * W), lambda i: (0, 0)),    # tap shift
                pl.BlockSpec((2 * H, HW2), lambda i: (0, 0)),           # expand-H
                pl.BlockSpec((2 * W, HW2), lambda i: (0, 0)),           # expand-W
            ],
            out_specs=pl.BlockSpec((bblk, C2, HW2), lambda i: (i, 0, 0)),
        ),
        compiler_params=pltpu.CompilerParams(
            dimension_semantics=("parallel",)),
        cost_estimate=cost,
    )(x2, par, jnp.asarray(pool), jnp.asarray(shift), jnp.asarray(eh),
      jnp.asarray(ew))

    out = out[:b]
    # same reinterpretation as the final torch `.view(b, H*W, c)`.
    return jnp.reshape(out, (b, H * W, c))


def local_attention_reference(x, H, W, params, groups=16, eps=1e-5):
    """Pure-JAX reference mirroring the PyTorch forward."""
    b, n, c = x.shape
    x4 = jnp.reshape(x, (b, c, H, W))
    x_h = jnp.mean(x4, axis=3)                                   # (b, c, H)
    x_w = jnp.mean(x4, axis=2)                                   # (b, c, W)

    def branch(v, w, gamma, beta):
        K = w.shape[1]
        pad = K // 2
        L = v.shape[2]
        vp = jnp.pad(v, ((0, 0), (0, 0), (pad, pad)))
        out = sum(w[None, :, kk:kk + 1] * vp[:, :, kk:kk + L] for kk in range(K))
        b_, c_, _ = out.shape
        gr = out.reshape(b_, groups, (c_ // groups) * L)
        mu = gr.mean(axis=2, keepdims=True)
        var = ((gr - mu) ** 2).mean(axis=2, keepdims=True)
        gn = ((gr - mu) / jnp.sqrt(var + eps)).reshape(b_, c_, L)
        gn = gn * gamma[None, :, :] + beta[None, :, :]
        return jax.nn.sigmoid(gn)

    a_h = branch(x_h, params["wh"], params["gh"], params["bh"])  # (b, c, H)
    a_w = branch(x_w, params["ww"], params["gw"], params["bw"])  # (b, c, W)
    prod = a_h[:, :, :, None] * a_w[:, :, None, :]               # (b, c, H, W)
    return jnp.reshape(prod, (b, H * W, c))


if __name__ == "__main__":
    B, C, H, W, K = 4, 64, 8, 8, 7   # channel=64 so GroupNorm(16, C) is valid

    key = jax.random.PRNGKey(0)
    k1, k2, k3, k4, k5, k6, k7 = jax.random.split(key, 7)
    x = jax.random.normal(k1, (B, H * W, C), dtype=jnp.float32)

    # Deterministic synthetic parameters (PyTorch shapes: conv weight (C,1,K)
    # stored here as (C,K); GroupNorm affine per channel stored as (C,1)).
    params = dict(
        wh=0.2 * jax.random.normal(k2, (C, K), dtype=jnp.float32),
        ww=0.2 * jax.random.normal(k3, (C, K), dtype=jnp.float32),
        gh=1.0 + 0.1 * jax.random.normal(k4, (C, 1), dtype=jnp.float32),
        gw=1.0 + 0.1 * jax.random.normal(k5, (C, 1), dtype=jnp.float32),
        bh=0.1 * jax.random.normal(k6, (C, 1), dtype=jnp.float32),
        bw=0.1 * jax.random.normal(k7, (C, 1), dtype=jnp.float32),
    )

    out = local_attention(x, H, W, params)
    out = jax.block_until_ready(out)

    ref = local_attention_reference(x, H, W, params)
    assert out.shape == (B, H * W, C)
    np.testing.assert_allclose(np.asarray(out), np.asarray(ref),
                               rtol=1e-4, atol=5e-5)
    print("KERNEL_OK")
</pallas_src>

<mosaic_0001>
module attributes {stable_mosaic.version = 11 : i64} {
  func.func @_local_attention_kernel(%arg0: i32, %arg1: memref<4x32x128xf32, #tpu.memory_space<vmem>>, %arg2: memref<36x128xf32, #tpu.memory_space<vmem>>, %arg3: memref<32x128xf32, #tpu.memory_space<vmem>>, %arg4: memref<224x32xf32, #tpu.memory_space<vmem>>, %arg5: memref<16x128xf32, #tpu.memory_space<vmem>>, %arg6: memref<16x128xf32, #tpu.memory_space<vmem>>, %arg7: memref<4x32x128xf32, #tpu.memory_space<vmem>>) attributes {dimension_semantics = [#tpu.dimension_semantics<parallel>], iteration_bounds = array<i64: 1>, scalar_prefetch = 0 : i64, scratch_operands = 0 : i64, tpu.core_type = #tpu.core_type<tc>, window_params = [{transform_indices = @transform_0, window_bounds = array<i64: 4, 32, 128>}, {pipeline_mode = #tpu.pipeline_mode<synchronous>, transform_indices = @transform_1, window_bounds = array<i64: 36, 128>}, {pipeline_mode = #tpu.pipeline_mode<synchronous>, transform_indices = @transform_2, window_bounds = array<i64: 32, 128>}, {pipeline_mode = #tpu.pipeline_mode<synchronous>, transform_indices = @transform_3, window_bounds = array<i64: 224, 32>}, {pipeline_mode = #tpu.pipeline_mode<synchronous>, transform_indices = @transform_4, window_bounds = array<i64: 16, 128>}, {pipeline_mode = #tpu.pipeline_mode<synchronous>, transform_indices = @transform_5, window_bounds = array<i64: 16, 128>}, {transform_indices = @transform_6, window_bounds = array<i64: 4, 32, 128>}]} {
    %c0 = arith.constant 0 : index
    %c0_0 = arith.constant 0 : index
    %c0_1 = arith.constant 0 : index
    %0 = vector.load %arg1[%c0, %c0_0, %c0_1] : memref<4x32x128xf32, #tpu.memory_space<vmem>>, vector<4x32x128xf32>
    %1 = vector.shape_cast %0 : vector<4x32x128xf32> to vector<128x128xf32>
    %c0_2 = arith.constant 0 : index
    %c0_3 = arith.constant 0 : index
    %2 = vector.load %arg2[%c0_2, %c0_3] : memref<36x128xf32, #tpu.memory_space<vmem>>, vector<36x128xf32>
    %c0_4 = arith.constant 0 : index
    %c0_5 = arith.constant 0 : index
    %3 = vector.load %arg3[%c0_4, %c0_5] : memref<32x128xf32, #tpu.memory_space<vmem>>, vector<32x128xf32>
    %cst = arith.constant dense<0.000000e+00> : vector<32x128xf32>
    %4 = tpu.matmul %3, %1, %cst {dimension_numbers = #tpu.dot_dimension_numbers<[1], [1], [0], [0], [0, 0, 1, 0], [], []>, precision = #tpu.contract_precision<fp32>} : vector<32x128xf32>, vector<128x128xf32>, vector<32x128xf32> -> vector<32x128xf32>
    %c0_6 = arith.constant 0 : index
    %c0_7 = arith.constant 0 : index
    %5 = vector.load %arg4[%c0_6, %c0_7] : memref<224x32xf32, #tpu.memory_space<vmem>>, vector<224x32xf32>
    %cst_8 = arith.constant dense<0.000000e+00> : vector<224x128xf32>
    %6 = tpu.matmul %5, %4, %cst_8 {dimension_numbers = #tpu.dot_dimension_numbers<[1], [0], [0], [1], [0, 0, 1, 1], [], []>, precision = #tpu.contract_precision<fp32>} : vector<224x32xf32>, vector<32x128xf32>, vector<224x128xf32> -> vector<224x128xf32>
    %7 = vector.extract_strided_slice %2 {offsets = [0, 0], sizes = [7, 128], strides = [1, 1]} : vector<36x128xf32> to vector<7x128xf32>
    %8 = vector.extract_strided_slice %2 {offsets = [7, 0], sizes = [7, 128], strides = [1, 1]} : vector<36x128xf32> to vector<7x128xf32>
    %9 = vector.extract_strided_slice %7 {offsets = [0, 0], sizes = [1, 128], strides = [1, 1]} : vector<7x128xf32> to vector<1x128xf32>
    %10 = vector.extract_strided_slice %6 {offsets = [0, 0], sizes = [8, 128], strides = [1, 1]} : vector<224x128xf32> to vector<8x128xf32>
    %11 = vector.broadcast %9 : vector<1x128xf32> to vector<8x128xf32>
    %12 = arith.mulf %11, %10 : vector<8x128xf32>
    %13 = vector.extract_strided_slice %8 {offsets = [0, 0], sizes = [1, 128], strides = [1, 1]} : vector<7x128xf32> to vector<1x128xf32>
    %14 = vector.extract_strided_slice %6 {offsets = [8, 0], sizes = [8, 128], strides = [1, 1]} : vector<224x128xf32> to vector<8x128xf32>
    %15 = vector.broadcast %13 : vector<1x128xf32> to vector<8x128xf32>
    %16 = arith.mulf %15, %14 : vector<8x128xf32>
    %17 = vector.extract_strided_slice %7 {offsets = [1, 0], sizes = [1, 128], strides = [1, 1]} : vector<7x128xf32> to vector<1x128xf32>
    %18 = vector.extract_strided_slice %6 {offsets = [16, 0], sizes = [8, 128], strides = [1, 1]} : vector<224x128xf32> to vector<8x128xf32>
    %19 = vector.broadcast %17 : vector<1x128xf32> to vector<8x128xf32>
    %20 = arith.mulf %19, %18 : vector<8x128xf32>
    %21 = arith.addf %12, %20 : vector<8x128xf32>
    %22 = vector.extract_strided_slice %8 {offsets = [1, 0], sizes = [1, 128], strides = [1, 1]} : vector<7x128xf32> to vector<1x128xf32>
    %23 = vector.extract_strided_slice %6 {offsets = [24, 0], sizes = [8, 128], strides = [1, 1]} : vector<224x128xf32> to vector<8x128xf32>
    %24 = vector.broadcast %22 : vector<1x128xf32> to vector<8x128xf32>
    %25 = arith.mulf %24, %23 : vector<8x128xf32>
    %26 = arith.addf %16, %25 : vector<8x128xf32>
    %27 = vector.extract_strided_slice %7 {offsets = [2, 0], sizes = [1, 128], strides = [1, 1]} : vector<7x128xf32> to vector<1x128xf32>
    %28 = vector.extract_strided_slice %6 {offsets = [32, 0], sizes = [8, 128], strides = [1, 1]} : vector<224x128xf32> to vector<8x128xf32>
    %29 = vector.broadcast %27 : vector<1x128xf32> to vector<8x128xf32>
    %30 = arith.mulf %29, %28 : vector<8x128xf32>
    %31 = arith.addf %21, %30 : vector<8x128xf32>
    %32 = vector.extract_strided_slice %8 {offsets = [2, 0], sizes = [1, 128], strides = [1, 1]} : vector<7x128xf32> to vector<1x128xf32>
    %33 = vector.extract_strided_slice %6 {offsets = [40, 0], sizes = [8, 128], strides = [1, 1]} : vector<224x128xf32> to vector<8x128xf32>
    %34 = vector.broadcast %32 : vector<1x128xf32> to vector<8x128xf32>
    %35 = arith.mulf %34, %33 : vector<8x128xf32>
    %36 = arith.addf %26, %35 : vector<8x128xf32>
    %37 = vector.extract_strided_slice %7 {offsets = [3, 0], sizes = [1, 128], strides = [1, 1]} : vector<7x128xf32> to vector<1x128xf32>
    %38 = vector.extract_strided_slice %6 {offsets = [48, 0], sizes = [8, 128], strides = [1, 1]} : vector<224x128xf32> to vector<8x128xf32>
    %39 = vector.broadcast %37 : vector<1x128xf32> to vector<8x128xf32>
    %40 = arith.mulf %39, %38 : vector<8x128xf32>
    %41 = arith.addf %31, %40 : vector<8x128xf32>
    %42 = vector.extract_strided_slice %8 {offsets = [3, 0], sizes = [1, 128], strides = [1, 1]} : vector<7x128xf32> to vector<1x128xf32>
    %43 = vector.extract_strided_slice %6 {offsets = [56, 0], sizes = [8, 128], strides = [1, 1]} : vector<224x128xf32> to vector<8x128xf32>
    %44 = vector.broadcast %42 : vector<1x128xf32> to vector<8x128xf32>
    %45 = arith.mulf %44, %43 : vector<8x128xf32>
    %46 = arith.addf %36, %45 : vector<8x128xf32>
    %47 = vector.extract_strided_slice %7 {offsets = [4, 0], sizes = [1, 128], strides = [1, 1]} : vector<7x128xf32> to vector<1x128xf32>
    %48 = vector.extract_strided_slice %6 {offsets = [64, 0], sizes = [8, 128], strides = [1, 1]} : vector<224x128xf32> to vector<8x128xf32>
    %49 = vector.broadcast %47 : vector<1x128xf32> to vector<8x128xf32>
    %50 = arith.mulf %49, %48 : vector<8x128xf32>
    %51 = arith.addf %41, %50 : vector<8x128xf32>
    %52 = vector.extract_strided_slice %8 {offsets = [4, 0], sizes = [1, 128], strides = [1, 1]} : vector<7x128xf32> to vector<1x128xf32>
    %53 = vector.extract_strided_slice %6 {offsets = [72, 0], sizes = [8, 128], strides = [1, 1]} : vector<224x128xf32> to vector<8x128xf32>
    %54 = vector.broadcast %52 : vector<1x128xf32> to vector<8x128xf32>
    %55 = arith.mulf %54, %53 : vector<8x128xf32>
    %56 = arith.addf %46, %55 : vector<8x128xf32>
    %57 = vector.extract_strided_slice %7 {offsets = [5, 0], sizes = [1, 128], strides = [1, 1]} : vector<7x128xf32> to vector<1x128xf32>
    %58 = vector.extract_strided_slice %6 {offsets = [80, 0], sizes = [8, 128], strides = [1, 1]} : vector<224x128xf32> to vector<8x128xf32>
    %59 = vector.broadcast %57 : vector<1x128xf32> to vector<8x128xf32>
    %60 = arith.mulf %59, %58 : vector<8x128xf32>
    %61 = arith.addf %51, %60 : vector<8x128xf32>
    %62 = vector.extract_strided_slice %8 {offsets = [5, 0], sizes = [1, 128], strides = [1, 1]} : vector<7x128xf32> to vector<1x128xf32>
    %63 = vector.extract_strided_slice %6 {offsets = [88, 0], sizes = [8, 128], strides = [1, 1]} : vector<224x128xf32> to vector<8x128xf32>
    %64 = vector.broadcast %62 : vector<1x128xf32> to vector<8x128xf32>
    %65 = arith.mulf %64, %63 : vector<8x128xf32>
    %66 = arith.addf %56, %65 : vector<8x128xf32>
    %67 = vector.extract_strided_slice %7 {offsets = [6, 0], sizes = [1, 128], strides = [1, 1]} : vector<7x128xf32> to vector<1x128xf32>
    %68 = vector.extract_strided_slice %6 {offsets = [96, 0], sizes = [8, 128], strides = [1, 1]} : vector<224x128xf32> to vector<8x128xf32>
    %69 = vector.broadcast %67 : vector<1x128xf32> to vector<8x128xf32>
    %70 = arith.mulf %69, %68 : vector<8x128xf32>
    %71 = arith.addf %61, %70 : vector<8x128xf32>
    %72 = vector.extract_strided_slice %8 {offsets = [6, 0], sizes = [1, 128], strides = [1, 1]} : vector<7x128xf32> to vector<1x128xf32>
    %73 = vector.extract_strided_slice %6 {offsets = [104, 0], sizes = [8, 128], strides = [1, 1]} : vector<224x128xf32> to vector<8x128xf32>
    %74 = vector.broadcast %72 : vector<1x128xf32> to vector<8x128xf32>
    %75 = arith.mulf %74, %73 : vector<8x128xf32>
    %76 = arith.addf %66, %75 : vector<8x128xf32>
    %77 = vector.extract_strided_slice %2 {offsets = [14, 0], sizes = [7, 128], strides = [1, 1]} : vector<36x128xf32> to vector<7x128xf32>
    %78 = vector.extract_strided_slice %2 {offsets = [21, 0], sizes = [7, 128], strides = [1, 1]} : vector<36x128xf32> to vector<7x128xf32>
    %79 = vector.extract_strided_slice %77 {offsets = [0, 0], sizes = [1, 128], strides = [1, 1]} : vector<7x128xf32> to vector<1x128xf32>
    %80 = vector.extract_strided_slice %6 {offsets = [112, 0], sizes = [8, 128], strides = [1, 1]} : vector<224x128xf32> to vector<8x128xf32>
    %81 = vector.broadcast %79 : vector<1x128xf32> to vector<8x128xf32>
    %82 = arith.mulf %81, %80 : vector<8x128xf32>
    %83 = vector.extract_strided_slice %78 {offsets = [0, 0], sizes = [1, 128], strides = [1, 1]} : vector<7x128xf32> to vector<1x128xf32>
    %84 = vector.extract_strided_slice %6 {offsets = [120, 0], sizes = [8, 128], strides = [1, 1]} : vector<224x128xf32> to vector<8x128xf32>
    %85 = vector.broadcast %83 : vector<1x128xf32> to vector<8x128xf32>
    %86 = arith.mulf %85, %84 : vector<8x128xf32>
    %87 = vector.extract_strided_slice %77 {offsets = [1, 0], sizes = [1, 128], strides = [1, 1]} : vector<7x128xf32> to vector<1x128xf32>
    %88 = vector.extract_strided_slice %6 {offsets = [128, 0], sizes = [8, 128], strides = [1, 1]} : vector<224x128xf32> to vector<8x128xf32>
    %89 = vector.broadcast %87 : vector<1x128xf32> to vector<8x128xf32>
    %90 = arith.mulf %89, %88 : vector<8x128xf32>
    %91 = arith.addf %82, %90 : vector<8x128xf32>
    %92 = vector.extract_strided_slice %78 {offsets = [1, 0], sizes = [1, 128], strides = [1, 1]} : vector<7x128xf32> to vector<1x128xf32>
    %93 = vector.extract_strided_slice %6 {offsets = [136, 0], sizes = [8, 128], strides = [1, 1]} : vector<224x128xf32> to vector<8x128xf32>
    %94 = vector.broadcast %92 : vector<1x128xf32> to vector<8x128xf32>
    %95 = arith.mulf %94, %93 : vector<8x128xf32>
    %96 = arith.addf %86, %95 : vector<8x128xf32>
    %97 = vector.extract_strided_slice %77 {offsets = [2, 0], sizes = [1, 128], strides = [1, 1]} : vector<7x128xf32> to vector<1x128xf32>
    %98 = vector.extract_strided_slice %6 {offsets = [144, 0], sizes = [8, 128], strides = [1, 1]} : vector<224x128xf32> to vector<8x128xf32>
    %99 = vector.broadcast %97 : vector<1x128xf32> to vector<8x128xf32>
    %100 = arith.mulf %99, %98 : vector<8x128xf32>
    %101 = arith.addf %91, %100 : vector<8x128xf32>
    %102 = vector.extract_strided_slice %78 {offsets = [2, 0], sizes = [1, 128], strides = [1, 1]} : vector<7x128xf32> to vector<1x128xf32>
    %103 = vector.extract_strided_slice %6 {offsets = [152, 0], sizes = [8, 128], strides = [1, 1]} : vector<224x128xf32> to vector<8x128xf32>
    %104 = vector.broadcast %102 : vector<1x128xf32> to vector<8x128xf32>
    %105 = arith.mulf %104, %103 : vector<8x128xf32>
    %106 = arith.addf %96, %105 : vector<8x128xf32>
    %107 = vector.extract_strided_slice %77 {offsets = [3, 0], sizes = [1, 128], strides = [1, 1]} : vector<7x128xf32> to vector<1x128xf32>
    %108 = vector.extract_strided_slice %6 {offsets = [160, 0], sizes = [8, 128], strides = [1, 1]} : vector<224x128xf32> to vector<8x128xf32>
    %109 = vector.broadcast %107 : vector<1x128xf32> to vector<8x128xf32>
    %110 = arith.mulf %109, %108 : vector<8x128xf32>
    %111 = arith.addf %101, %110 : vector<8x128xf32>
    %112 = vector.extract_strided_slice %78 {offsets = [3, 0], sizes = [1, 128], strides = [1, 1]} : vector<7x128xf32> to vector<1x128xf32>
    %113 = vector.extract_strided_slice %6 {offsets = [168, 0], sizes = [8, 128], strides = [1, 1]} : vector<224x128xf32> to vector<8x128xf32>
    %114 = vector.broadcast %112 : vector<1x128xf32> to vector<8x128xf32>
    %115 = arith.mulf %114, %113 : vector<8x128xf32>
    %116 = arith.addf %106, %115 : vector<8x128xf32>
    %117 = vector.extract_strided_slice %77 {offsets = [4, 0], sizes = [1, 128], strides = [1, 1]} : vector<7x128xf32> to vector<1x128xf32>
    %118 = vector.extract_strided_slice %6 {offsets = [176, 0], sizes = [8, 128], strides = [1, 1]} : vector<224x128xf32> to vector<8x128xf32>
    %119 = vector.broadcast %117 : vector<1x128xf32> to vector<8x128xf32>
    %120 = arith.mulf %119, %118 : vector<8x128xf32>
    %121 = arith.addf %111, %120 : vector<8x128xf32>
    %122 = vector.extract_strided_slice %78 {offsets = [4, 0], sizes = [1, 128], strides = [1, 1]} : vector<7x128xf32> to vector<1x128xf32>
    %123 = vector.extract_strided_slice %6 {offsets = [184, 0], sizes = [8, 128], strides = [1, 1]} : vector<224x128xf32> to vector<8x128xf32>
    %124 = vector.broadcast %122 : vector<1x128xf32> to vector<8x128xf32>
    %125 = arith.mulf %124, %123 : vector<8x128xf32>
    %126 = arith.addf %116, %125 : vector<8x128xf32>
    %127 = vector.extract_strided_slice %77 {offsets = [5, 0], sizes = [1, 128], strides = [1, 1]} : vector<7x128xf32> to vector<1x128xf32>
    %128 = vector.extract_strided_slice %6 {offsets = [192, 0], sizes = [8, 128], strides = [1, 1]} : vector<224x128xf32> to vector<8x128xf32>
    %129 = vector.broadcast %127 : vector<1x128xf32> to vector<8x128xf32>
    %130 = arith.mulf %129, %128 : vector<8x128xf32>
    %131 = arith.addf %121, %130 : vector<8x128xf32>
    %132 = vector.extract_strided_slice %78 {offsets = [5, 0], sizes = [1, 128], strides = [1, 1]} : vector<7x128xf32> to vector<1x128xf32>
    %133 = vector.extract_strided_slice %6 {offsets = [200, 0], sizes = [8, 128], strides = [1, 1]} : vector<224x128xf32> to vector<8x128xf32>
    %134 = vector.broadcast %132 : vector<1x128xf32> to vector<8x128xf32>
    %135 = arith.mulf %134, %133 : vector<8x128xf32>
    %136 = arith.addf %126, %135 : vector<8x128xf32>
    %137 = vector.extract_strided_slice %77 {offsets = [6, 0], sizes = [1, 128], strides = [1, 1]} : vector<7x128xf32> to vector<1x128xf32>
    %138 = vector.extract_strided_slice %6 {offsets = [208, 0], sizes = [8, 128], strides = [1, 1]} : vector<224x128xf32> to vector<8x128xf32>
    %139 = vector.broadcast %137 : vector<1x128xf32> to vector<8x128xf32>
    %140 = arith.mulf %139, %138 : vector<8x128xf32>
    %141 = arith.addf %131, %140 : vector<8x128xf32>
    %142 = vector.extract_strided_slice %78 {offsets = [6, 0], sizes = [1, 128], strides = [1, 1]} : vector<7x128xf32> to vector<1x128xf32>
    %143 = vector.extract_strided_slice %6 {offsets = [216, 0], sizes = [8, 128], strides = [1, 1]} : vector<224x128xf32> to vector<8x128xf32>
    %144 = vector.broadcast %142 : vector<1x128xf32> to vector<8x128xf32>
    %145 = arith.mulf %144, %143 : vector<8x128xf32>
    %146 = arith.addf %136, %145 : vector<8x128xf32>
    %147 = tpu.iota {dimensions = array<i32: 1>} : vector<1x128xi32>
    %c2_i32 = arith.constant 2 : i32
    %c0_i32 = arith.constant 0 : i32
    %148 = arith.cmpi eq, %c2_i32, %c0_i32 : i32
    %c1_i32 = arith.constant 1 : i32
    %149 = arith.select %148, %c1_i32, %c2_i32 : i32
    %150 = vector.broadcast %149 : i32 to vector<1x128xi32>
    %151 = arith.remsi %147, %150 : vector<1x128xi32>
    %c0_i32_9 = arith.constant 0 : i32
    %152 = vector.broadcast %c0_i32_9 : i32 to vector<1x128xi32>
    %153 = arith.cmpi ne, %151, %152 : vector<1x128xi32>
    %c0_i32_10 = arith.constant 0 : i32
    %154 = vector.broadcast %c0_i32_10 : i32 to vector<1x128xi32>
    %155 = arith.cmpi slt, %151, %154 : vector<1x128xi32>
    %c0_i32_11 = arith.constant 0 : i32
    %156 = arith.cmpi slt, %149, %c0_i32_11 : i32
    %157 = vector.broadcast %156 : i1 to vector<1x128xi1>
    %158 = vector.broadcast %157 : vector<1x128xi1> to vector<1x128xi1>
    %159 = arith.xori %155, %158 : vector<1x128xi1>
    %160 = arith.andi %159, %153 : vector<1x128xi1>
    %161 = vector.broadcast %149 : i32 to vector<1x128xi32>
    %162 = arith.addi %151, %161 : vector<1x128xi32>
    %163 = arith.select %160, %162, %151 : vector<1x128xi1>, vector<1x128xi32>
    %164 = vector.extract_strided_slice %2 {offsets = [28, 0], sizes = [1, 128], strides = [1, 1]} : vector<36x128xf32> to vector<1x128xf32>
    %165 = vector.extract_strided_slice %2 {offsets = [29, 0], sizes = [1, 128], strides = [1, 1]} : vector<36x128xf32> to vector<1x128xf32>
    %166 = vector.extract_strided_slice %2 {offsets = [30, 0], sizes = [1, 128], strides = [1, 1]} : vector<36x128xf32> to vector<1x128xf32>
    %167 = vector.extract_strided_slice %2 {offsets = [31, 0], sizes = [1, 128], strides = [1, 1]} : vector<36x128xf32> to vector<1x128xf32>
    %cst_12 = arith.constant dense<0.000000e+00> : vector<128xf32>
    %168 = vector.multi_reduction <add>, %71, %cst_12 [0] : vector<8x128xf32> to vector<128xf32>
    %169 = vector.shape_cast %168 : vector<128xf32> to vector<1x128xf32>
    %cst_13 = arith.constant dense<0.000000e+00> : vector<128xf32>
    %170 = vector.multi_reduction <add>, %76, %cst_13 [0] : vector<8x128xf32> to vector<128xf32>
    %171 = vector.shape_cast %170 : vector<128xf32> to vector<1x128xf32>
    %172 = arith.addf %169, %171 : vector<1x128xf32>
    %173 = vector.extract_strided_slice %172 {offsets = [0, 1], sizes = [1, 127], strides = [1, 1]} : vector<1x128xf32> to vector<1x127xf32>
    %cst_14 = arith.constant 0.000000e+00 : f32
    %174 = vector.broadcast %cst_14 : f32 to vector<1x1xf32>
    %175 = tpu.concatenate %173, %174 in 1 : vector<1x127xf32>, vector<1x1xf32> -> vector<1x128xf32>
    %176 = arith.addf %172, %175 : vector<1x128xf32>
    %c1_i32_15 = arith.constant 1 : i32
    %177 = vector.broadcast %c1_i32_15 : i32 to vector<1x128xi32>
    %178 = arith.cmpi eq, %163, %177 : vector<1x128xi32>
    %cst_16 = arith.constant 0.000000e+00 : f32
    %179 = vector.broadcast %cst_16 : f32 to vector<1x1xf32>
    %180 = vector.extract_strided_slice %176 {offsets = [0, 0], sizes = [1, 127], strides = [1, 1]} : vector<1x128xf32> to vector<1x127xf32>
    %181 = tpu.concatenate %179, %180 in 1 : vector<1x1xf32>, vector<1x127xf32> -> vector<1x128xf32>
    %182 = arith.select %178, %181, %176 : vector<1x128xi1>, vector<1x128xf32>
    %cst_17 = arith.constant 3.125000e-02 : f32
    %183 = vector.broadcast %cst_17 : f32 to vector<1x128xf32>
    %184 = arith.mulf %182, %183 : vector<1x128xf32>
    %185 = vector.broadcast %184 : vector<1x128xf32> to vector<8x128xf32>
    %186 = arith.subf %71, %185 : vector<8x128xf32>
    %187 = vector.broadcast %184 : vector<1x128xf32> to vector<8x128xf32>
    %188 = arith.subf %76, %187 : vector<8x128xf32>
    %189 = arith.mulf %186, %186 : vector<8x128xf32>
    %cst_18 = arith.constant dense<0.000000e+00> : vector<128xf32>
    %190 = vector.multi_reduction <add>, %189, %cst_18 [0] : vector<8x128xf32> to vector<128xf32>
    %191 = vector.shape_cast %190 : vector<128xf32> to vector<1x128xf32>
    %192 = arith.mulf %188, %188 : vector<8x128xf32>
    %cst_19 = arith.constant dense<0.000000e+00> : vector<128xf32>
    %193 = vector.multi_reduction <add>, %192, %cst_19 [0] : vector<8x128xf32> to vector<128xf32>
    %194 = vector.shape_cast %193 : vector<128xf32> to vector<1x128xf32>
    %195 = arith.addf %191, %194 : vector<1x128xf32>
    %196 = vector.extract_strided_slice %195 {offsets = [0, 1], sizes = [1, 127], strides = [1, 1]} : vector<1x128xf32> to vector<1x127xf32>
    %cst_20 = arith.constant 0.000000e+00 : f32
    %197 = vector.broadcast %cst_20 : f32 to vector<1x1xf32>
    %198 = tpu.concatenate %196, %197 in 1 : vector<1x127xf32>, vector<1x1xf32> -> vector<1x128xf32>
    %199 = arith.addf %195, %198 : vector<1x128xf32>
    %c1_i32_21 = arith.constant 1 : i32
    %200 = vector.broadcast %c1_i32_21 : i32 to vector<1x128xi32>
    %201 = arith.cmpi eq, %163, %200 : vector<1x128xi32>
    %cst_22 = arith.constant 0.000000e+00 : f32
    %202 = vector.broadcast %cst_22 : f32 to vector<1x1xf32>
    %203 = vector.extract_strided_slice %199 {offsets = [0, 0], sizes = [1, 127], strides = [1, 1]} : vector<1x128xf32> to vector<1x127xf32>
    %204 = tpu.concatenate %202, %203 in 1 : vector<1x1xf32>, vector<1x127xf32> -> vector<1x128xf32>
    %205 = arith.select %201, %204, %199 : vector<1x128xi1>, vector<1x128xf32>
    %cst_23 = arith.constant 3.125000e-02 : f32
    %206 = vector.broadcast %cst_23 : f32 to vector<1x128xf32>
    %207 = arith.mulf %205, %206 : vector<1x128xf32>
    %cst_24 = arith.constant 9.99999974E-6 : f32
    %208 = vector.broadcast %cst_24 : f32 to vector<1x128xf32>
    %209 = arith.addf %207, %208 : vector<1x128xf32>
    %210 = math.rsqrt %209 : vector<1x128xf32>
    %211 = vector.broadcast %210 : vector<1x128xf32> to vector<8x128xf32>
    %212 = arith.mulf %186, %211 : vector<8x128xf32>
    %213 = vector.broadcast %164 : vector<1x128xf32> to vector<8x128xf32>
    %214 = arith.mulf %212, %213 : vector<8x128xf32>
    %215 = vector.broadcast %166 : vector<1x128xf32> to vector<8x128xf32>
    %216 = arith.addf %214, %215 : vector<8x128xf32>
    %217 = arith.negf %216 : vector<8x128xf32>
    %218 = math.exp %217 : vector<8x128xf32>
    %cst_25 = arith.constant 1.000000e+00 : f32
    %219 = vector.broadcast %cst_25 : f32 to vector<8x128xf32>
    %220 = arith.addf %219, %218 : vector<8x128xf32>
    %221 = arith.divf %219, %220 : vector<8x128xf32>
    %222 = vector.broadcast %210 : vector<1x128xf32> to vector<8x128xf32>
    %223 = arith.mulf %188, %222 : vector<8x128xf32>
    %224 = vector.broadcast %165 : vector<1x128xf32> to vector<8x128xf32>
    %225 = arith.mulf %223, %224 : vector<8x128xf32>
    %226 = vector.broadcast %167 : vector<1x128xf32> to vector<8x128xf32>
    %227 = arith.addf %225, %226 : vector<8x128xf32>
    %228 = arith.negf %227 : vector<8x128xf32>
    %229 = math.exp %228 : vector<8x128xf32>
    %cst_26 = arith.constant 1.000000e+00 : f32
    %230 = vector.broadcast %cst_26 : f32 to vector<8x128xf32>
    %231 = arith.addf %230, %229 : vector<8x128xf32>
    %232 = arith.divf %230, %231 : vector<8x128xf32>
    %233 = tpu.concatenate %221, %232 in 0 : vector<8x128xf32>, vector<8x128xf32> -> vector<16x128xf32>
    %234 = vector.extract_strided_slice %2 {offsets = [32, 0], sizes = [1, 128], strides = [1, 1]} : vector<36x128xf32> to vector<1x128xf32>
    %235 = vector.extract_strided_slice %2 {offsets = [33, 0], sizes = [1, 128], strides = [1, 1]} : vector<36x128xf32> to vector<1x128xf32>
    %236 = vector.extract_strided_slice %2 {offsets = [34, 0], sizes = [1, 128], strides = [1, 1]} : vector<36x128xf32> to vector<1x128xf32>
    %237 = vector.extract_strided_slice %2 {offsets = [35, 0], sizes = [1, 128], strides = [1, 1]} : vector<36x128xf32> to vector<1x128xf32>
    %cst_27 = arith.constant dense<0.000000e+00> : vector<128xf32>
    %238 = vector.multi_reduction <add>, %141, %cst_27 [0] : vector<8x128xf32> to vector<128xf32>
    %239 = vector.shape_cast %238 : vector<128xf32> to vector<1x128xf32>
    %cst_28 = arith.constant dense<0.000000e+00> : vector<128xf32>
    %240 = vector.multi_reduction <add>, %146, %cst_28 [0] : vector<8x128xf32> to vector<128xf32>
    %241 = vector.shape_cast %240 : vector<128xf32> to vector<1x128xf32>
    %242 = arith.addf %239, %241 : vector<1x128xf32>
    %243 = vector.extract_strided_slice %242 {offsets = [0, 1], sizes = [1, 127], strides = [1, 1]} : vector<1x128xf32> to vector<1x127xf32>
    %cst_29 = arith.constant 0.000000e+00 : f32
    %244 = vector.broadcast %cst_29 : f32 to vector<1x1xf32>
    %245 = tpu.concatenate %243, %244 in 1 : vector<1x127xf32>, vector<1x1xf32> -> vector<1x128xf32>
    %246 = arith.addf %242, %245 : vector<1x128xf32>
    %c1_i32_30 = arith.constant 1 : i32
    %247 = vector.broadcast %c1_i32_30 : i32 to vector<1x128xi32>
    %248 = arith.cmpi eq, %163, %247 : vector<1x128xi32>
    %cst_31 = arith.constant 0.000000e+00 : f32
    %249 = vector.broadcast %cst_31 : f32 to vector<1x1xf32>
    %250 = vector.extract_strided_slice %246 {offsets = [0, 0], sizes = [1, 127], strides = [1, 1]} : vector<1x128xf32> to vector<1x127xf32>
    %251 = tpu.concatenate %249, %250 in 1 : vector<1x1xf32>, vector<1x127xf32> -> vector<1x128xf32>
    %252 = arith.select %248, %251, %246 : vector<1x128xi1>, vector<1x128xf32>
    %cst_32 = arith.constant 3.125000e-02 : f32
    %253 = vector.broadcast %cst_32 : f32 to vector<1x128xf32>
    %254 = arith.mulf %252, %253 : vector<1x128xf32>
    %255 = vector.broadcast %254 : vector<1x128xf32> to vector<8x128xf32>
    %256 = arith.subf %141, %255 : vector<8x128xf32>
    %257 = vector.broadcast %254 : vector<1x128xf32> to vector<8x128xf32>
    %258 = arith.subf %146, %257 : vector<8x128xf32>
    %259 = arith.mulf %256, %256 : vector<8x128xf32>
    %cst_33 = arith.constant dense<0.000000e+00> : vector<128xf32>
    %260 = vector.multi_reduction <add>, %259, %cst_33 [0] : vector<8x128xf32> to vector<128xf32>
    %261 = vector.shape_cast %260 : vector<128xf32> to vector<1x128xf32>
    %262 = arith.mulf %258, %258 : vector<8x128xf32>
    %cst_34 = arith.constant dense<0.000000e+00> : vector<128xf32>
    %263 = vector.multi_reduction <add>, %262, %cst_34 [0] : vector<8x128xf32> to vector<128xf32>
    %264 = vector.shape_cast %263 : vector<128xf32> to vector<1x128xf32>
    %265 = arith.addf %261, %264 : vector<1x128xf32>
    %266 = vector.extract_strided_slice %265 {offsets = [0, 1], sizes = [1, 127], strides = [1, 1]} : vector<1x128xf32> to vector<1x127xf32>
    %cst_35 = arith.constant 0.000000e+00 : f32
    %267 = vector.broadcast %cst_35 : f32 to vector<1x1xf32>
    %268 = tpu.concatenate %266, %267 in 1 : vector<1x127xf32>, vector<1x1xf32> -> vector<1x128xf32>
    %269 = arith.addf %265, %268 : vector<1x128xf32>
    %c1_i32_36 = arith.constant 1 : i32
    %270 = vector.broadcast %c1_i32_36 : i32 to vector<1x128xi32>
    %271 = arith.cmpi eq, %163, %270 : vector<1x128xi32>
    %cst_37 = arith.constant 0.000000e+00 : f32
    %272 = vector.broadcast %cst_37 : f32 to vector<1x1xf32>
    %273 = vector.extract_strided_slice %269 {offsets = [0, 0], sizes = [1, 127], strides = [1, 1]} : vector<1x128xf32> to vector<1x127xf32>
    %274 = tpu.concatenate %272, %273 in 1 : vector<1x1xf32>, vector<1x127xf32> -> vector<1x128xf32>
    %275 = arith.select %271, %274, %269 : vector<1x128xi1>, vector<1x128xf32>
    %cst_38 = arith.constant 3.125000e-02 : f32
    %276 = vector.broadcast %cst_38 : f32 to vector<1x128xf32>
    %277 = arith.mulf %275, %276 : vector<1x128xf32>
    %cst_39 = arith.constant 9.99999974E-6 : f32
    %278 = vector.broadcast %cst_39 : f32 to vector<1x128xf32>
    %279 = arith.addf %277, %278 : vector<1x128xf32>
    %280 = math.rsqrt %279 : vector<1x128xf32>
    %281 = vector.broadcast %280 : vector<1x128xf32> to vector<8x128xf32>
    %282 = arith.mulf %256, %281 : vector<8x128xf32>
    %283 = vector.broadcast %234 : vector<1x128xf32> to vector<8x128xf32>
    %284 = arith.mulf %282, %283 : vector<8x128xf32>
    %285 = vector.broadcast %236 : vector<1x128xf32> to vector<8x128xf32>
    %286 = arith.addf %284, %285 : vector<8x128xf32>
    %287 = arith.negf %286 : vector<8x128xf32>
    %288 = math.exp %287 : vector<8x128xf32>
    %cst_40 = arith.constant 1.000000e+00 : f32
    %289 = vector.broadcast %cst_40 : f32 to vector<8x128xf32>
    %290 = arith.addf %289, %288 : vector<8x128xf32>
    %291 = arith.divf %289, %290 : vector<8x128xf32>
    %292 = vector.broadcast %280 : vector<1x128xf32> to vector<8x128xf32>
    %293 = arith.mulf %258, %292 : vector<8x128xf32>
    %294 = vector.broadcast %235 : vector<1x128xf32> to vector<8x128xf32>
    %295 = arith.mulf %293, %294 : vector<8x128xf32>
    %296 = vector.broadcast %237 : vector<1x128xf32> to vector<8x128xf32>
    %297 = arith.addf %295, %296 : vector<8x128xf32>
    %298 = arith.negf %297 : vector<8x128xf32>
    %299 = math.exp %298 : vector<8x128xf32>
    %cst_41 = arith.constant 1.000000e+00 : f32
    %300 = vector.broadcast %cst_41 : f32 to vector<8x128xf32>
    %301 = arith.addf %300, %299 : vector<8x128xf32>
    %302 = arith.divf %300, %301 : vector<8x128xf32>
    %303 = tpu.concatenate %291, %302 in 0 : vector<8x128xf32>, vector<8x128xf32> -> vector<16x128xf32>
    %c0_42 = arith.constant 0 : index
    %c0_43 = arith.constant 0 : index
    %304 = vector.load %arg5[%c0_42, %c0_43] : memref<16x128xf32, #tpu.memory_space<vmem>>, vector<16x128xf32>
    %cst_44 = arith.constant dense<0.000000e+00> : vector<128x128xf32>
    %305 = tpu.matmul %233, %304, %cst_44 {dimension_numbers = #tpu.dot_dimension_numbers<[0], [0], [1], [1], [0, 1, 1, 1], [], []>, precision = #tpu.contract_precision<fp32>} : vector<16x128xf32>, vector<16x128xf32>, vector<128x128xf32> -> vector<128x128xf32>
    %c0_45 = arith.constant 0 : index
    %c0_46 = arith.constant 0 : index
    %306 = vector.load %arg6[%c0_45, %c0_46] : memref<16x128xf32, #tpu.memory_space<vmem>>, vector<16x128xf32>
    %cst_47 = arith.constant dense<0.000000e+00> : vector<128x128xf32>
    %307 = tpu.matmul %303, %306, %cst_47 {dimension_numbers = #tpu.dot_dimension_numbers<[0], [0], [1], [1], [0, 1, 1, 1], [], []>, precision = #tpu.contract_precision<fp32>} : vector<16x128xf32>, vector<16x128xf32>, vector<128x128xf32> -> vector<128x128xf32>
    %308 = arith.mulf %305, %307 : vector<128x128xf32>
    %309 = vector.shape_cast %308 : vector<128x128xf32> to vector<4x32x128xf32>
    %c0_48 = arith.constant 0 : index
    %c0_49 = arith.constant 0 : index
    %c0_50 = arith.constant 0 : index
    %310 = vector.load %arg7[%c0_48, %c0_49, %c0_50] : memref<4x32x128xf32, #tpu.memory_space<vmem>>, vector<4x32x128xf32>
    tpu.vector_store %arg7[%c0_48, %c0_49, %c0_50], %309 {strides = array<i32>} : memref<4x32x128xf32, #tpu.memory_space<vmem>>, vector<4x32x128xf32>,
    return
  }
  func.func @transform_0(%arg0: i32) -> (i32, i32, i32) {
    %c0_i32 = arith.constant 0 : i32
    %c0_i32_0 = arith.constant 0 : i32
    %c0_i32_1 = arith.constant 0 : i32
    return %arg0, %c0_i32, %c0_i32_0 : i32, i32, i32
  }
  func.func @transform_1(%arg0: i32) -> (i32, i32) {
    %c0_i32 = arith.constant 0 : i32
    %c0_i32_0 = arith.constant 0 : i32
    %c0_i32_1 = arith.constant 0 : i32
    return %c0_i32, %c0_i32_0 : i32, i32
  }
  func.func @transform_2(%arg0: i32) -> (i32, i32) {
    %c0_i32 = arith.constant 0 : i32
    %c0_i32_0 = arith.constant 0 : i32
    %c0_i32_1 = arith.constant 0 : i32
    return %c0_i32, %c0_i32_0 : i32, i32
  }
  func.func @transform_3(%arg0: i32) -> (i32, i32) {
    %c0_i32 = arith.constant 0 : i32
    %c0_i32_0 = arith.constant 0 : i32
    %c0_i32_1 = arith.constant 0 : i32
    return %c0_i32, %c0_i32_0 : i32, i32
  }
  func.func @transform_4(%arg0: i32) -> (i32, i32) {
    %c0_i32 = arith.constant 0 : i32
    %c0_i32_0 = arith.constant 0 : i32
    %c0_i32_1 = arith.constant 0 : i32
    return %c0_i32, %c0_i32_0 : i32, i32
  }
  func.func @transform_5(%arg0: i32) -> (i32, i32) {
    %c0_i32 = arith.constant 0 : i32
    %c0_i32_0 = arith.constant 0 : i32
    %c0_i32_1 = arith.constant 0 : i32
    return %c0_i32, %c0_i32_0 : i32, i32
  }
  func.func @transform_6(%arg0: i32) -> (i32, i32, i32) {
    %c0_i32 = arith.constant 0 : i32
    %c0_i32_0 = arith.constant 0 : i32
    %c0_i32_1 = arith.constant 0 : i32
    return %arg0, %c0_i32, %c0_i32_0 : i32, i32, i32
  }
}

</mosaic_0001>

<bundles_post_ra>
// kernel: tpu_custom_call.1
= control target key start
LH: loop header
LB: loop body
LE: loop exit
PB: predicated region body
PF: predicated region fallthrough
CT: control target
= control target key end

     0   :  { %s5020_s0 = inlined_call_operand.vmem [shape: f32[4,32,128], index: 0, kind: input, shape index: {}]   ;;  %s5021_s1 = inlined_call_operand.vmem [shape: f32[36,128], index: 1, kind: input, shape index: {}]   ;;  %s5022_s2 = inlined_call_operand.vmem [shape: f32[32,128], index: 2, kind: input, shape index: {}]   ;;  %s5023_s3 = inlined_call_operand.vmem [shape: f32[224,32], index: 3, kind: input, shape index: {}]   ;;  %s5024_s4 = inlined_call_operand.vmem [shape: f32[16,128], index: 4, kind: input, shape index: {}]   ;;  %s5025_s5 = inlined_call_operand.vmem [shape: f32[16,128], index: 5, kind: input, shape index: {}]   ;;  %s5026_s6 = inlined_call_operand.hbm [shape: f32[4,32,128], index: 6, kind: output, shape index: {}]  }
   0x1   :  { %v39_v0 = vld [vmem:[%s5020_s0 + $0x78] sm:$0xff]  ;;  %v38_v1 = vld [vmem:[%s5020_s0 + $0x70] sm:$0xff]  ;;  %v37_v2 = vld [vmem:[%s5020_s0 + $0x68] sm:$0xff] }
   0x2   :  { %v3525_v3 = vand.u32 4294901760, %v39_v0  ;;  %v3527_v4 = vand.u32 4294901760, %v38_v1  ;;  %v3529_v5 = vand.u32 4294901760, %v37_v2  ;;  %v36_v6 = vld [vmem:[%s5020_s0 + $0x60] sm:$0xff]  ;;  %v35_v10 = vld [vmem:[%s5020_s0 + $0x58] sm:$0xff] }
   0x3   :  { %v3538_v8 = vand.u32 4294901760, %v36_v6 }
   0x4   :  { %50 = vmatpush.xpose.msra.mxu0 %v3525_v3  ;;  %v3536_v7 = vsub.f32 %v39_v0, %v3525_v3  ;;  %v3541_v9 = vsub.f32 %v38_v1, %v3527_v4  ;;  %v3547_v11 = vsub.f32 %v37_v2, %v3529_v5  ;;  %297 = vmatpush.xpose.msra.mxu3 %v3525_v3 }
   0x5   :  { %11 = vsyncpa [#allocation3], 0  ;;  %v3553_v14 = vand.u32 4294901760, %v35_v10  ;;  %v34_v18 = vld [vmem:[%s5020_s0 + $0x50] sm:$0xff]  ;;  %v3567_v19 = vsub.f32 %v36_v6, %v3538_v8  ;;  %v33_v25 = vld [vmem:[%s5020_s0 + $0x48] sm:$0xff]  ;;  %vm511_vm0 = vcmask 261120  }
   0x6   :  { %v116_v12 = vand.u32 4294901760, %v3536_v7  ;;  %v122_v13 = vand.u32 4294901760, %v3541_v9  ;;  %229 = vmatpush.xpose.msra.mxu2 %v3536_v7  ;;  %v128_v17 = vand.u32 4294901760, %v3547_v11  ;;  %v3571_v21 = vand.u32 4294901760, %v34_v18  ;;  %v32_v31 = vld [vmem:[%s5020_s0 + $0x40] sm:$0xff]  ;;  %v31_v37 = vld [vmem:[%s5020_s0 + $0x38] sm:$0xff] }
   0x7   :  { %v134_v24 = vand.u32 4294901760, %v3567_v19  ;;  %v3582_v26 = vsub.f32 %v35_v10, %v3553_v14  ;;  %v3586_v27 = vand.u32 4294901760, %v33_v25  ;;  %v3601_v33 = vand.u32 4294901760, %v32_v31  ;;  %v30_v43 = vld [vmem:[%s5020_s0 + $0x30] sm:$0xff]  ;;  %v29_v49 = vld [vmem:[%s5020_s0 + $0x28] sm:$0xff]  ;;  %v28_v55 = vld [vmem:[%s5020_s0 + $0x20] sm:$0xff] }
   0x8   :  { %52 = vmatpush.xpose.msra.mxu0 %v3527_v4  ;;  %v117_v15 = vsub.f32 %v3536_v7, %v116_v12  ;;  %v123_v16 = vsub.f32 %v3541_v9, %v122_v13  ;;  %299 = vmatpush.xpose.msra.mxu3 %v3527_v4  ;;  %v129_v23 = vsub.f32 %v3547_v11, %v128_v17  ;;  %v3616_v39 = vand.u32 4294901760, %v31_v37  ;;  %v27_v61 = vld [vmem:[%s5020_s0 + $0x18] sm:$0xff]  ;;  %v26_v10 = vld [vmem:[%s5020_s0 + $0x10] sm:$0xff]  ;;  %s3476_s18 = smov 127   ;;  %s3477_s23 = smov 1  }
   0x9   :  { %v135_v29 = vsub.f32 %v3567_v19, %v134_v24  ;;  %v140_v30 = vand.u32 4294901760, %v3582_v26  ;;  %v3597_v32 = vsub.f32 %v34_v18, %v3571_v21  ;;  %v3612_v38 = vsub.f32 %v33_v25, %v3586_v27  ;;  %s3400_s10 = sshll.u32 %s5026_s6, 4  ;;  %s3479_s11 = smov 128   ;;  %s3401_s10 = int_to_ptr.hbm [resolvable:$true] %s3400_s10 }
   0xa   :  { %v118_v20 = vand.u32 4294901760, %v117_v15  ;;  %232 = vmatpush.xpose.msra.mxu2 %v3541_v9  ;;  %v124_v22 = vand.u32 4294901760, %v123_v16  ;;  %v130_v28 = vand.u32 4294901760, %v129_v23  ;;  %v3627_v44 = vsub.f32 %v32_v31, %v3601_v33  ;;  %v25_v23 = vld [vmem:[%s5020_s0 + $0x8] sm:$0xff] }
   0xb   :  { %v136_v34 = vand.u32 4294901760, %v135_v29  ;;  %v141_v35 = vsub.f32 %v3582_v26, %v140_v30  ;;  %v146_v36 = vand.u32 4294901760, %v3597_v32  ;;  %v152_v42 = vand.u32 4294901760, %v3612_v38 }
   0xc   :  { %54 = vmatpush.xpose.msra.mxu0 %v3529_v5  ;;  %119 = vmatpush.xpose.msra.mxu1 %v118_v20  ;;  %v3631_v45 = vand.u32 4294901760, %v30_v43  ;;  %v158_v48 = vand.u32 4294901760, %v3627_v44  ;;  %v3642_v50 = vsub.f32 %v31_v37, %v3616_v39  ;;  %v3646_v51 = vand.u32 4294901760, %v29_v49 }
   0xd   :  { %301 = vmatpush.xpose.msra.mxu3 %v3529_v5  ;;  %v142_v40 = vand.u32 4294901760, %v141_v35  ;;  %v147_v41 = vsub.f32 %v3597_v32, %v146_v36  ;;  %v153_v47 = vsub.f32 %v3612_v38, %v152_v42  ;;  %v3661_v57 = vand.u32 4294901760, %v28_v55  ;;  %v24_v35 = vld [vmem:[%s5020_s0] sm:$0xff] }
   0xe   :  { %235 = vmatpush.xpose.msra.mxu2 %v3547_v11  ;;  %v159_v53 = vsub.f32 %v3627_v44, %v158_v48  ;;  %v164_v54 = vand.u32 4294901760, %v3642_v50  ;;  %v3657_v56 = vsub.f32 %v30_v43, %v3631_v45  ;;  %v3672_v62 = vsub.f32 %v29_v49, %v3646_v51 }
   0xf   :  { %v148_v46 = vand.u32 4294901760, %v147_v41  ;;  %v154_v52 = vand.u32 4294901760, %v153_v47  ;;  %v3676_v63 = vand.u32 4294901760, %v27_v61  ;;  %v3684_v6 = vsub.f32 %v28_v55, %v3661_v57  ;;  %v45_v47 = vld [vmem:[%s5022_s2] sm:$0xff] }
  0x10   :  { %56 = vmatpush.xpose.msra.mxu0 %v3538_v8  ;;  %125 = vmatpush.xpose.msra.mxu1 %v124_v22  ;;  %v160_v58 = vand.u32 4294901760, %v159_v53  ;;  %v165_v59 = vsub.f32 %v3642_v50, %v164_v54  ;;  %v170_v60 = vand.u32 4294901760, %v3657_v56  ;;  %v176_v2 = vand.u32 4294901760, %v3672_v62 }
  0x11   :  { %303 = vmatpush.xpose.msra.mxu3 %v3538_v8  ;;  %v3692_v15 = vsub.f32 %v27_v61, %v3676_v63  ;;  %v3698_v20 = vand.u32 4294901760, %v26_v10  ;;  %v182_v22 = vand.u32 4294901760, %v3684_v6  ;;  %v3711_v31 = vand.u32 4294901760, %v25_v23 }
  0x12   :  { %238 = vmatpush.xpose.msra.mxu2 %v3567_v19  ;;  %v166_v0 = vand.u32 4294901760, %v165_v59  ;;  %v171_v1 = vsub.f32 %v3657_v56, %v170_v60  ;;  %v177_v18 = vsub.f32 %v3672_v62, %v176_v2  ;;  %v3725_v41 = vand.u32 4294901760, %v24_v35 }
  0x13   :  { %v188_v25 = vand.u32 4294901760, %v3692_v15  ;;  %v183_v29 = vsub.f32 %v3684_v6, %v182_v22  ;;  %v3736_v49 = vand.u32 4294901760, %v45_v47  ;;  %vm1729_vm1 = vcmask 1039360  }
  0x14   :  { %58 = vmatpush.xpose.msra.mxu0 %v3553_v14  ;;  %131 = vmatpush.xpose.msra.mxu1 %v130_v28  ;;  %v172_v16 = vand.u32 4294901760, %v171_v1  ;;  %v178_v28 = vand.u32 4294901760, %v177_v18  ;;  %v46_v18 = vld [vmem:[%s5022_s2 + $0x8] sm:$0xff]  ;;  %vm1737_vm2 = vcmask 7168   ;;  %vm1983_vm15 = vcmask 130048  }
  0x15   :  { %305 = vmatpush.xpose.msra.mxu3 %v3553_v14  ;;  %v189_v37 = vsub.f32 %v3692_v15, %v188_v25  ;;  %v82_v59 = vsub.f32 %v45_v47, %v3736_v49 }
  0x16   :  { %241 = vmatpush.xpose.msra.mxu2 %v3582_v26 }
  0x17   :  { %v83_v61 = vand.u32 4294901760, %v82_v59 }
  0x18   :  { %60 = vmatpush.xpose.msra.mxu0 %v3571_v21  ;;  %137 = vmatpush.xpose.msra.mxu1 %v136_v34  ;;  %v3714_v34 = vsub.f32 %v26_v10, %v3698_v20 }
  0x19   :  { %307 = vmatpush.xpose.msra.mxu3 %v3571_v21 }
  0x1a   :  { %244 = vmatpush.xpose.msra.mxu2 %v3597_v32  ;;  %v194_v43 = vand.u32 4294901760, %v3714_v34 }
  0x1c   :  { %62 = vmatpush.xpose.msra.mxu0 %v3586_v27  ;;  %143 = vmatpush.xpose.msra.mxu1 %v142_v40  ;;  %v184_v40 = vand.u32 4294901760, %v183_v29  ;;  %v195_v53 = vsub.f32 %v3714_v34, %v194_v43 }
  0x1d   :  { %309 = vmatpush.xpose.msra.mxu3 %v3586_v27 }
  0x1e   :  { %247 = vmatpush.xpose.msra.mxu2 %v3612_v38 }
  0x20   :  { %64 = vmatpush.xpose.msra.mxu0 %v3601_v33  ;;  %149 = vmatpush.xpose.msra.mxu1 %v148_v46  ;;  %v3729_v46 = vsub.f32 %v25_v23, %v3711_v31  ;;  %v3759_v23 = vand.u32 4294901760, %v46_v18 }
  0x21   :  { %311 = vmatpush.xpose.msra.mxu3 %v3601_v33 }
  0x22   :  { %250 = vmatpush.xpose.msra.mxu2 %v3627_v44  ;;  %v200_v55 = vand.u32 4294901760, %v3729_v46 }
  0x24   :  { %66 = vmatpush.xpose.msra.mxu0 %v3616_v39  ;;  %155 = vmatpush.xpose.msra.mxu1 %v154_v52  ;;  %v190_v52 = vand.u32 4294901760, %v189_v37  ;;  %v201_v1 = vsub.f32 %v3729_v46, %v200_v55  ;;  %v90_v37 = vsub.f32 %v46_v18, %v3759_v23 }
  0x25   :  { %313 = vmatpush.xpose.msra.mxu3 %v3616_v39 }
  0x26   :  { %253 = vmatpush.xpose.msra.mxu2 %v3642_v50  ;;  %v202_v29 = vand.u32 4294901760, %v201_v1 }
  0x28   :  { %68 = vmatpush.xpose.msra.mxu0 %v3631_v45  ;;  %161 = vmatpush.xpose.msra.mxu1 %v160_v58  ;;  %v3744_v58 = vsub.f32 %v24_v35, %v3725_v41 }
  0x29   :  { %315 = vmatpush.xpose.msra.mxu3 %v3631_v45 }
  0x2a   :  { %256 = vmatpush.xpose.msra.mxu2 %v3657_v56  ;;  %v206_v10 = vand.u32 4294901760, %v3744_v58 }
  0x2c   :  { %70 = vmatpush.xpose.msra.mxu0 %v3646_v51  ;;  %167 = vmatpush.xpose.msra.mxu1 %v166_v0  ;;  %v196_v0 = vand.u32 4294901760, %v195_v53  ;;  %v207_v35 = vsub.f32 %v3744_v58, %v206_v10  ;;  %v47_v53 = vld [vmem:[%s5022_s2 + $0x10] sm:$0xff] }
  0x2d   :  { %317 = vmatpush.xpose.msra.mxu3 %v3646_v51  ;;  %v97_v7 = vand.u32 4294901760, %v47_v53 }
  0x2e   :  { %259 = vmatpush.xpose.msra.mxu2 %v3672_v62  ;;  %v208_v47 = vand.u32 4294901760, %v207_v35  ;;  %v483_v62 = vld [vmem:[%s5023_s3] sm:$0xff] }
  0x30   :  { %72 = vmatpush.xpose.msra.mxu0 %v3661_v57  ;;  %173 = vmatpush.xpose.msra.mxu1 %v172_v16  ;;  %v84_v16 = vsub.f32 %v82_v59, %v83_v61 }
  0x31   :  { %319 = vmatpush.xpose.msra.mxu3 %v3661_v57 }
  0x32   :  { %262 = vmatpush.xpose.msra.mxu2 %v3684_v6 }
  0x34   :  { %74 = vmatpush.xpose.msra.mxu0 %v3676_v63  ;;  %179 = vmatpush.xpose.msra.mxu1 %v178_v28  ;;  %v85_v28 = vand.u32 4294901760, %v84_v16  ;;  %v484_v16 = vld [vmem:[%s5023_s3 + $0x8] sm:$0xff] }
  0x35   :  { %321 = vmatpush.xpose.msra.mxu3 %v3676_v63 }
  0x36   :  { %265 = vmatpush.xpose.msra.mxu2 %v3692_v15 }
  0x38   :  { %76 = vmatpush.xpose.msra.mxu0 %v3698_v20  ;;  %185 = vmatpush.xpose.msra.mxu1 %v184_v40  ;;  %v91_v40 = vand.u32 4294901760, %v90_v37 }
  0x39   :  { %323 = vmatpush.xpose.msra.mxu3 %v3698_v20 }
  0x3a   :  { %268 = vmatpush.xpose.msra.mxu2 %v3714_v34 }
  0x3c   :  { %78 = vmatpush.xpose.msra.mxu0 %v3711_v31  ;;  %191 = vmatpush.xpose.msra.mxu1 %v190_v52  ;;  %v92_v52 = vsub.f32 %v90_v37, %v91_v40 }
  0x3d   :  { %325 = vmatpush.xpose.msra.mxu3 %v3711_v31 }
  0x3e   :  { %271 = vmatpush.xpose.msra.mxu2 %v3729_v46 }
  0x40   :  { %80 = vmatpush.xpose.msra.mxu0 %v3725_v41  ;;  %197 = vmatpush.xpose.msra.mxu1 %v196_v0  ;;  %v98_v0 = vsub.f32 %v47_v53, %v97_v7 }
  0x41   :  { %327 = vmatpush.xpose.msra.mxu3 %v3725_v41 }
  0x42   :  { %274 = vmatpush.xpose.msra.mxu2 %v3744_v58  ;;  %v99_v1 = vand.u32 4294901760, %v98_v0 }
  0x43   :  { %86 = vmatmul.f32.vlgmr.msra.gmra.mxu0 %v85_v28 }
  0x44   :  { %356 = vmatpush.xpose.msrb.mxu0 %v116_v12  ;;  %203 = vmatpush.xpose.msra.mxu1 %v202_v29  ;;  %v93_v12 = vand.u32 4294901760, %v92_v52  ;;  %v100_v9 = vsub.f32 %v98_v0, %v99_v1 }
  0x45   :  { %331 = vmatmul.f32.vlgmr.msra.gmra.mxu3 %v83_v61  ;;  %277 = vmatmul.f32.vlgmr.msra.gmra.mxu2 %v82_v59 }
  0x48   :  { %360 = vmatpush.xpose.msrb.mxu0 %v122_v13  ;;  %209 = vmatpush.xpose.msra.mxu1 %v208_v47  ;;  %v48_v13 = vld [vmem:[%s5022_s2 + $0x18] sm:$0xff]  ;;  %s3480_s2 = smov 8  }
  0x49   :  { %v105_v11 = vand.u32 4294901760, %v48_v13 }
  0x4b   :  { %211 = vmatmul.f32.vlgmr.msra.gmra.mxu1 %v3736_v49  ;;  %94 = vmatmul.f32.gmra.mxu0 %v93_v12  ;;  %v106_v59 = vsub.f32 %v48_v13, %v105_v11 }
  0x4c   :  { %364 = vmatpush.xpose.msrb.mxu0 %v128_v17  ;;  %435 = vmatpush.xpose.msrb.mxu1 %v3525_v3  ;;  %v101_v17 = vand.u32 4294901760, %v100_v9 }
  0x4d   :  { %337 = vmatmul.f32.gmra.mxu3 %v91_v40  ;;  %282 = vmatmul.f32.gmra.mxu2 %v90_v37  ;;  %v107_v3 = vand.u32 4294901760, %v106_v59  ;;  %v516_v37 = vsel %vm511_vm0, %v484_v16, 0 }
  0x4f   :  { %v108_v19 = vsub.f32 %v106_v59, %v107_v3 }
  0x50   :  { %368 = vmatpush.xpose.msrb.mxu0 %v134_v24  ;;  %437 = vmatpush.xpose.msrb.mxu1 %v3527_v4 }
  0x51   :  { %v109_v4 = vand.u32 4294901760, %v108_v19 }
  0x53   :  { %215 = vmatmul.f32.gmra.mxu1 %v3759_v23  ;;  %102 = vmatmul.f32.gmra.mxu0 %v101_v17 }
  0x54   :  { %372 = vmatpush.xpose.msrb.mxu0 %v140_v30  ;;  %439 = vmatpush.xpose.msrb.mxu1 %v3529_v5 }
  0x55   :  { %343 = vmatmul.f32.gmra.mxu3 %v99_v1  ;;  %287 = vmatmul.f32.gmra.mxu2 %v98_v0  ;;  %v3848_v1 = vand.u32 4294901760, %v516_v37 }
  0x58   :  { %376 = vmatpush.xpose.msrb.mxu0 %v146_v36  ;;  %441 = vmatpush.xpose.msrb.mxu1 %v3538_v8 }
  0x5b   :  { %219 = vmatmul.f32.gmra.mxu1 %v97_v7  ;;  %110 = vmatmul.f32.gmra.mxu0 %v109_v4  ;;  %v625_v4 = vsub.f32 %v516_v37, %v3848_v1 }
  0x5c   :  { %380 = vmatpush.xpose.msrb.mxu0 %v152_v42  ;;  %443 = vmatpush.xpose.msrb.mxu1 %v3553_v14 }
  0x5d   :  { %349 = vmatmul.f32.gmra.mxu3 %v107_v3  ;;  %292 = vmatmul.f32.gmra.mxu2 %v106_v59 }
  0x60   :  { %384 = vmatpush.xpose.msrb.mxu0 %v158_v48  ;;  %445 = vmatpush.xpose.msrb.mxu1 %v3571_v21 }
  0x63   :  { %223 = vmatmul.f32.gmra.mxu1 %v105_v11 }
  0x64   :  { %388 = vmatpush.xpose.msrb.mxu0 %v164_v54  ;;  %447 = vmatpush.xpose.msrb.mxu1 %v3586_v27 }
  0x68   :  { %392 = vmatpush.xpose.msrb.mxu0 %v170_v60  ;;  %449 = vmatpush.xpose.msrb.mxu1 %v3601_v33 }
  0x6c   :  { %396 = vmatpush.xpose.msrb.mxu0 %v176_v2  ;;  %451 = vmatpush.xpose.msrb.mxu1 %v3616_v39 }
  0x70   :  { %400 = vmatpush.xpose.msrb.mxu0 %v182_v22  ;;  %453 = vmatpush.xpose.msrb.mxu1 %v3631_v45 }
  0x74   :  { %404 = vmatpush.xpose.msrb.mxu0 %v188_v25  ;;  %455 = vmatpush.xpose.msrb.mxu1 %v3646_v51 }
  0x78   :  { %408 = vmatpush.xpose.msrb.mxu0 %v194_v43  ;;  %457 = vmatpush.xpose.msrb.mxu1 %v3661_v57 }
  0x7c   :  { %412 = vmatpush.xpose.msrb.mxu0 %v200_v55  ;;  %459 = vmatpush.xpose.msrb.mxu1 %v3676_v63 }
  0x80   :  { %416 = vmatpush.xpose.msrb.mxu0 %v206_v10  ;;  %461 = vmatpush.xpose.msrb.mxu1 %v3698_v20  ;;  %v513_v20 = vsel %vm511_vm0, %v483_v62, 0 }
  0x81   :  { %v3832_v43 = vand.u32 4294901760, %v513_v20 }
  0x83   :  { %418 = vmatmul.f32.vlgmr.msrb.gmra.mxu0 %v3736_v49  ;;  %v617_v28 = vsub.f32 %v513_v20, %v3832_v43 }
  0x84   :  { %463 = vmatpush.xpose.msrb.mxu1 %v3711_v31 }
  0x88   :  { %465 = vmatpush.xpose.msrb.mxu1 %v3725_v41 }
  0x8b   :  { %422 = vmatmul.f32.gmra.mxu0 %v3759_v23  ;;  %467 = vmatmul.f32.vlgmr.msrb.gmra.mxu1 %v3736_v49 }
  0x93   :  { %426 = vmatmul.f32.gmra.mxu0 %v97_v7  ;;  %471 = vmatmul.f32.gmra.mxu1 %v3759_v23 }
  0x9b   :  { %430 = vmatmul.f32.gmra.mxu0 %v105_v11  ;;  %475 = vmatmul.f32.gmra.mxu1 %v97_v7  ;;  %v618_v7 = vand.u32 4294901760, %v617_v28 }
  0x9d   :  { %v619_v59 = vsub.f32 %v617_v28, %v618_v7 }
  0xa3   :  { %479 = vmatmul.f32.gmra.mxu1 %v105_v11  ;;  %v485_v11 = vld [vmem:[%s5023_s3 + $0x10] sm:$0xff] }
  0xc0   :  { %v87_v5 = vpop.f32.mrf.mxu0 }
  0xc8   :  { %v212_v8 = vpop.f32.mrf.mxu1  ;;  %v95_v14 = vpop.f32.mrf.mxu0 }
  0xc9   :  { %v278_v30 = vpop.f32.mrf.mxu2  ;;  %v332_v32 = vpop.f32.mrf.mxu3  ;;  %v213_v51 = vadd.f32 %v212_v8, %v87_v5  ;;  %v519_v5 = vsel %vm511_vm0, %v485_v11, 0 }
  0xcb   :  { %v279_v2 = vadd.f32 %v278_v30, %v213_v51  ;;  %v626_v30 = vand.u32 4294901760, %v625_v4 }
  0xcd   :  { %v333_v34 = vadd.f32 %v332_v32, %v279_v2  ;;  %v3874_v32 = vand.u32 4294901760, %v519_v5 }
  0xd0   :  { %v216_v21 = vpop.f32.mrf.mxu1  ;;  %v103_v24 = vpop.f32.mrf.mxu0 }
  0xd1   :  { %v283_v38 = vpop.f32.mrf.mxu2  ;;  %v338_v39 = vpop.f32.mrf.mxu3  ;;  %v217_v50 = vadd.f32 %v216_v21, %v95_v14  ;;  %v620_v21 = vand.u32 4294901760, %v619_v59 }
  0xd3   :  { %v284_v63 = vadd.f32 %v283_v38, %v217_v50  ;;  %v486_v38 = vld [vmem:[%s5023_s3 + $0x18] sm:$0xff] }
  0xd5   :  { %v339_v25 = vadd.f32 %v338_v39, %v284_v63 }
  0xd8   :  { %v220_v26 = vpop.f32.mrf.mxu1  ;;  %v111_v27 = vpop.f32.mrf.mxu0 }
  0xd9   :  { %v288_v45 = vpop.f32.mrf.mxu2  ;;  %v221_v48 = vadd.f32 %v220_v26, %v103_v24  ;;  %v344_v54 = vpop.f32.mrf.mxu3 }
  0xdb   :  { %v289_v57 = vadd.f32 %v288_v45, %v221_v48  ;;  %v633_v45 = vsub.f32 %v519_v5, %v3874_v32  ;;  %v522_v48 = vsel %vm511_vm0, %v486_v38, 0 }
  0xdd   :  { %v345_v6 = vadd.f32 %v344_v54, %v289_v57  ;;  %v3890_v57 = vand.u32 4294901760, %v522_v48 }
  0xdf   :  { %v641_v63 = vsub.f32 %v522_v48, %v3890_v57 }
  0xe0   :  { %v224_v33 = vpop.f32.mrf.mxu1 }
  0xe1   :  { %v225_v15 = vadd.f32 %v224_v33, %v111_v27  ;;  %v293_v22 = vpop.f32.mrf.mxu2  ;;  %v350_v61 = vpop.f32.mrf.mxu3 }
  0xe3   :  { %v294_v46 = vadd.f32 %v293_v22, %v225_v15  ;;  %v642_v15 = vand.u32 4294901760, %v641_v63  ;;  %v488_v22 = vld [vmem:[%s5023_s3 + $0x28] sm:$0xff] }
  0xe5   :  { %v351_v29 = vadd.f32 %v350_v61, %v294_v46 }
 0x100   :  { %v419_v36 = vpop.f32.mrf.mxu0 }
 0x101   :  { %v420_v58 = vadd.f32 %v419_v36, %v333_v34  ;;  %v528_v34 = vsel %vm511_vm0, %v488_v22, 0 }
 0x108   :  { %v423_v42 = vpop.f32.mrf.mxu0  ;;  %v468_v44 = vpop.f32.mrf.mxu1 }
 0x109   :  { %v424_v49 = vadd.f32 %v423_v42, %v339_v25  ;;  %v469_v18 = vadd.f32 %v468_v44, %v420_v58  ;;  %v627_v44 = vsub.f32 %v625_v4, %v626_v30  ;;  %v643_v25 = vsub.f32 %v641_v63, %v642_v15 }
 0x10b   :  { %v3843_v52 = vand.u32 4294901760, %v469_v18  ;;  %v628_v54 = vand.u32 4294901760, %v627_v44 }
 0x10d   :  { %v3859_v17 = vsub.f32 %v469_v18, %v3843_v52 }
 0x10f   :  { %v873_v24 = vand.u32 4294901760, %v3859_v17 }
 0x110   :  { %v472_v56 = vpop.f32.mrf.mxu1  ;;  %v427_v60 = vpop.f32.mrf.mxu0 }
 0x111   :  { %v428_v31 = vadd.f32 %v427_v60, %v345_v6  ;;  %v473_v10 = vadd.f32 %v472_v56, %v424_v49  ;;  %v874_v42 = vsub.f32 %v3859_v17, %v873_v24  ;;  %v634_v56 = vand.u32 4294901760, %v633_v45  ;;  %v487_v60 = vld [vmem:[%s5023_s3 + $0x20] sm:$0xff] }
 0x112   :  { %v525_v2 = vsel %vm511_vm0, %v487_v60, 0  ;;  %v3914_v49 = vand.u32 4294901760, %v528_v34 }
 0x113   :  { %v3841_v40 = vand.u32 4294901760, %v473_v10  ;;  %v875_v51 = vand.u32 4294901760, %v874_v42  ;;  %v635_v62 = vsub.f32 %v633_v45, %v634_v56  ;;  %v3902_v20 = vand.u32 4294901760, %v525_v2 }
 0x114   :  { %v657_v61 = vsub.f32 %v528_v34, %v3914_v49 }
 0x115   :  { %v3851_v9 = vsub.f32 %v473_v10, %v3841_v40  ;;  %v636_v6 = vand.u32 4294901760, %v635_v62 }
 0x116   :  { %v658_v18 = vand.u32 4294901760, %v657_v61 }
 0x117   :  { %v867_v14 = vand.u32 4294901760, %v3851_v9 }
 0x118   :  { %v476_v41 = vpop.f32.mrf.mxu1  ;;  %v431_v23 = vpop.f32.mrf.mxu0 }
 0x119   :  { %v477_v55 = vadd.f32 %v476_v41, %v428_v31  ;;  %v432_v47 = vadd.f32 %v431_v23, %v351_v29  ;;  %v868_v36 = vsub.f32 %v3851_v9, %v867_v14  ;;  %v649_v31 = vsub.f32 %v525_v2, %v3902_v20  ;;  %v496_v2 = vld [vmem:[%s5023_s3 + $0x68] sm:$0xff] }
 0x11a   :  { %v644_v41 = vand.u32 4294901760, %v643_v25  ;;  %v659_v29 = vsub.f32 %v657_v61, %v658_v18  ;;  %v552_v22 = vsel %vm511_vm0, %v496_v2, 0 }
 0x11b   :  { %v3838_v35 = vand.u32 4294901760, %v477_v55  ;;  %v869_v50 = vand.u32 4294901760, %v868_v36  ;;  %v650_v46 = vand.u32 4294901760, %v649_v31  ;;  %v494_v36 = vld [vmem:[%s5023_s3 + $0x58] sm:$0xff]  ;;  %v3979_v34 = vand.u32 4294901760, %v552_v22 }
 0x11c   :  { %v546_v42 = vsel %vm511_vm0, %v494_v36, 0 }
 0x11d   :  { %v3846_v12 = vsub.f32 %v477_v55, %v3838_v35  ;;  %v489_v55 = vld [vmem:[%s5023_s3 + $0x30] sm:$0xff]  ;;  %v651_v58 = vsub.f32 %v649_v31, %v650_v46  ;;  %v3963_v48 = vand.u32 4294901760, %v546_v42 }
 0x11e   :  { %v531_v10 = vsel %vm511_vm0, %v489_v55, 0  ;;  %v721_v55 = vsub.f32 %v552_v22, %v3979_v34 }
 0x11f   :  { %v861_v19 = vand.u32 4294901760, %v3846_v12  ;;  %v652_v16 = vand.u32 4294901760, %v651_v58  ;;  %v3923_v23 = vand.u32 4294901760, %v531_v10 }
 0x120   :  { %v480_v53 = vpop.f32.mrf.mxu1 }
 0x121   :  { %v481_v0 = vadd.f32 %v480_v53, %v432_v47  ;;  %v862_v27 = vsub.f32 %v3846_v12, %v861_v19  ;;  %v491_v53 = vld [vmem:[%s5023_s3 + $0x40] sm:$0xff] }
 0x123   :  { %v3853_v13 = vand.u32 4294901760, %v481_v0  ;;  %v863_v39 = vand.u32 4294901760, %v862_v27 }
 0x125   :  { %v854_v3 = vsub.f32 %v481_v0, %v3853_v13  ;;  %609 = vmatpush.msrb.mxu2 %v3853_v13  ;;  %1168 = vmatpush.msra.mxu1 %v3853_v13  ;;  %v537_v0 = vsel %vm511_vm0, %v491_v53, 0  ;;  %v499_v53 = vld [vmem:[%s5023_s3 + $0x80] sm:$0xff] }
 0x126   :  { %v3939_v11 = vand.u32 4294901760, %v537_v0 }
 0x127   :  { %611 = vmatpush.msrb.mxu2 %v3838_v35  ;;  %1004 = vmatpush.msra.mxu0 %v854_v3  ;;  %v855_v8 = vand.u32 4294901760, %v854_v3 }
 0x128   :  { %1170 = vmatpush.msra.mxu1 %v3838_v35 }
 0x129   :  { %613 = vmatpush.msrb.mxu2 %v3841_v40  ;;  %1007 = vmatpush.msra.mxu0 %v3846_v12  ;;  %v856_v26 = vsub.f32 %v854_v3, %v855_v8 }
 0x12a   :  { %1172 = vmatpush.msra.mxu1 %v3841_v40 }
 0x12b   :  { %615 = vmatpush.msrb.mxu2 %v3843_v52  ;;  %1010 = vmatpush.msra.mxu0 %v3851_v9  ;;  %v857_v33 = vand.u32 4294901760, %v856_v26 }
 0x12c   :  { %1174 = vmatpush.msra.mxu1 %v3843_v52  ;;  %621 = vmatmul.f32.vlgmr.msrb.gmra.mxu2 %v620_v21 }
 0x12d   :  { %3416 = vmatpush.msra.mxu2 %v854_v3  ;;  %858 = vmatpush.msrb.mxu3 %v857_v33  ;;  %v681_v3 = vsub.f32 %v537_v0, %v3939_v11  ;;  %v561_v0 = vsel %vm511_vm0, %v499_v53, 0 }
 0x12e   :  { %1013 = vmatpush.msra.mxu0 %v3859_v17  ;;  %1178 = vmatmul.f32.vlgmr.msra.gmra.mxu1 %v618_v7 }
 0x12f   :  { %3417 = vmatpush.msra.mxu2 %v3846_v12  ;;  %864 = vmatpush.msrb.mxu3 %v863_v39  ;;  %v682_v5 = vand.u32 4294901760, %v681_v3 }
 0x130   :  { %1016 = vmatmul.f32.vlgmr.msra.gmra.mxu0 %v617_v28  ;;  %v490_v28 = vld [vmem:[%s5023_s3 + $0x38] sm:$0xff] }
 0x131   :  { %3418 = vmatpush.msra.mxu2 %v3851_v9  ;;  %870 = vmatpush.msrb.mxu3 %v869_v50  ;;  %v534_v37 = vsel %vm511_vm0, %v490_v28, 0  ;;  %v683_v21 = vsub.f32 %v681_v3, %v682_v5  ;;  %v495_v50 = vld [vmem:[%s5023_s3 + $0x60] sm:$0xff] }
 0x133   :  { %3419 = vmatpush.msra.mxu2 %v3859_v17  ;;  %876 = vmatpush.msrb.mxu3 %v875_v51  ;;  %v492_v17 = vld [vmem:[%s5023_s3 + $0x48] sm:$0xff]  ;;  %v684_v27 = vand.u32 4294901760, %v683_v21 }
 0x134   :  { %878 = vmatmul.f32.vlgmr.msrb.gmra.mxu3 %v3832_v43  ;;  %629 = vmatmul.f32.gmra.mxu2 %v628_v54  ;;  %v705_v54 = vsub.f32 %v546_v42, %v3963_v48  ;;  %v502_v42 = vld [vmem:[%s5023_s3 + $0x98] sm:$0xff] }
 0x135   :  { %1359 = vmatpush.msrb.mxu2 %v855_v8  ;;  %3420 = vmatpush.msra.mxu3 %v3853_v13 }
 0x136   :  { %1184 = vmatmul.f32.gmra.mxu1 %v626_v30  ;;  %v706_v62 = vand.u32 4294901760, %v705_v54 }
 0x137   :  { %1363 = vmatpush.msrb.mxu2 %v861_v19  ;;  %3421 = vmatpush.msra.mxu3 %v3838_v35  ;;  %v540_v19 = vsel %vm511_vm0, %v492_v17, 0  ;;  %v4003_v17 = vand.u32 4294901760, %v561_v0 }
 0x138   :  { %1021 = vmatmul.f32.gmra.mxu0 %v625_v4  ;;  %v3947_v8 = vand.u32 4294901760, %v540_v19 }
 0x139   :  { %1367 = vmatpush.msrb.mxu2 %v867_v14  ;;  %3422 = vmatpush.msra.mxu3 %v3841_v40  ;;  %v493_v14 = vld [vmem:[%s5023_s3 + $0x50] sm:$0xff] }
 0x13a   :  { %v543_v26 = vsel %vm511_vm0, %v493_v14, 0 }
 0x13b   :  { %1371 = vmatpush.msrb.mxu2 %v873_v24  ;;  %3423 = vmatpush.msra.mxu3 %v3843_v52  ;;  %v689_v24 = vsub.f32 %v540_v19, %v3947_v8  ;;  %v3955_v33 = vand.u32 4294901760, %v543_v26  ;;  %v745_v19 = vsub.f32 %v561_v0, %v4003_v17 }
 0x13c   :  { %637 = vmatmul.f32.gmra.mxu2 %v636_v6  ;;  %882 = vmatmul.f32.gmra.mxu3 %v3848_v1  ;;  %v707_v6 = vsub.f32 %v705_v54, %v706_v62 }
 0x13d   :  { %1498 = vmatpush.msrb.mxu3 %v3853_v13  ;;  %v690_v30 = vand.u32 4294901760, %v689_v24  ;;  %v697_v39 = vsub.f32 %v543_v26, %v3955_v33  ;;  %v746_v14 = vand.u32 4294901760, %v745_v19 }
 0x13e   :  { %1190 = vmatmul.f32.gmra.mxu1 %v634_v56  ;;  %v549_v56 = vsel %vm511_vm0, %v495_v50, 0  ;;  %v708_v25 = vand.u32 4294901760, %v707_v6  ;;  %v570_v50 = vsel %vm511_vm0, %v502_v42, 0 }
 0x13f   :  { %1500 = vmatpush.msrb.mxu3 %v3838_v35  ;;  %v665_v35 = vsub.f32 %v531_v10, %v3923_v23  ;;  %v691_v38 = vsub.f32 %v689_v24, %v690_v30  ;;  %v722_v10 = vand.u32 4294901760, %v721_v55  ;;  %v747_v26 = vsub.f32 %v745_v19, %v746_v14 }
 0x140   :  { %1026 = vmatmul.f32.gmra.mxu0 %v633_v45  ;;  %v698_v45 = vand.u32 4294901760, %v697_v39 }
 0x141   :  { %1502 = vmatpush.msrb.mxu3 %v3841_v40  ;;  %v660_v40 = vand.u32 4294901760, %v659_v29  ;;  %v666_v47 = vand.u32 4294901760, %v665_v35  ;;  %v692_v44 = vand.u32 4294901760, %v691_v38  ;;  %v723_v28 = vsub.f32 %v721_v55, %v722_v10 }
 0x142   :  { %v699_v51 = vsub.f32 %v697_v39, %v698_v45  ;;  %v748_v36 = vand.u32 4294901760, %v747_v26 }
 0x143   :  { %1504 = vmatpush.msrb.mxu3 %v3843_v52  ;;  %v3931_v52 = vand.u32 4294901760, %v534_v37  ;;  %v667_v7 = vsub.f32 %v665_v35, %v666_v47 }
 0x144   :  { %645 = vmatmul.f32.gmra.mxu2 %v644_v41  ;;  %886 = vmatmul.f32.gmra.mxu3 %v3874_v32  ;;  %v700_v60 = vand.u32 4294901760, %v699_v51  ;;  %v497_v41 = vld [vmem:[%s5023_s3 + $0x70] sm:$0xff] }
 0x145   :  { %v673_v12 = vsub.f32 %v534_v37, %v3931_v52  ;;  %v668_v9 = vand.u32 4294901760, %v667_v7  ;;  %v555_v58 = vsel %vm511_vm0, %v497_v41, 0  ;;  %v724_v37 = vand.u32 4294901760, %v723_v28 }
 0x146   :  { %1196 = vmatmul.f32.gmra.mxu1 %v642_v15 }
 0x147   :  { %v674_v13 = vand.u32 4294901760, %v673_v12 }
 0x148   :  { %1031 = vmatmul.f32.gmra.mxu0 %v641_v63  ;;  %v3971_v63 = vand.u32 4294901760, %v549_v56 }
 0x149   :  { %v675_v59 = vsub.f32 %v673_v12, %v674_v13 }
 0x14a   :  { %v713_v15 = vsub.f32 %v549_v56, %v3971_v63 }
 0x14b   :  { %v676_v4 = vand.u32 4294901760, %v675_v59  ;;  %v500_v59 = vld [vmem:[%s5023_s3 + $0x88] sm:$0xff] }
 0x14c   :  { %653 = vmatmul.f32.gmra.mxu2 %v652_v16  ;;  %890 = vmatmul.f32.gmra.mxu3 %v3890_v57  ;;  %v3987_v16 = vand.u32 4294901760, %v555_v58 }
 0x14e   :  { %1202 = vmatmul.f32.gmra.mxu1 %v650_v46  ;;  %v729_v29 = vsub.f32 %v555_v58, %v3987_v16  ;;  %v504_v58 = vld [vmem:[%s5023_s3 + $0xa8] sm:$0xff] }
 0x150   :  { %1036 = vmatmul.f32.gmra.mxu0 %v649_v31  ;;  %v714_v31 = vand.u32 4294901760, %v713_v15 }
 0x152   :  { %v715_v46 = vsub.f32 %v713_v15, %v714_v31 }
 0x154   :  { %661 = vmatmul.f32.gmra.mxu2 %v660_v40  ;;  %894 = vmatmul.f32.gmra.mxu3 %v3902_v20  ;;  %v730_v40 = vand.u32 4294901760, %v729_v29 }
 0x156   :  { %1208 = vmatmul.f32.gmra.mxu1 %v658_v18  ;;  %v498_v18 = vld [vmem:[%s5023_s3 + $0x78] sm:$0xff]  ;;  %v731_v7 = vsub.f32 %v729_v29, %v730_v40 }
 0x158   :  { %1041 = vmatmul.f32.gmra.mxu0 %v657_v61  ;;  %v716_v61 = vand.u32 4294901760, %v715_v46 }
 0x15c   :  { %669 = vmatmul.f32.gmra.mxu2 %v668_v9  ;;  %898 = vmatmul.f32.gmra.mxu3 %v3914_v49  ;;  %v732_v9 = vand.u32 4294901760, %v731_v7  ;;  %v505_v7 = vld [vmem:[%s5023_s3 + $0xb0] sm:$0xff] }
 0x15e   :  { %1214 = vmatmul.f32.gmra.mxu1 %v666_v47 }
 0x160   :  { %1046 = vmatmul.f32.gmra.mxu0 %v665_v35  ;;  %v558_v35 = vsel %vm511_vm0, %v498_v18, 0  ;;  %v576_v18 = vsel %vm511_vm0, %v504_v58, 0 }
 0x161   :  { %v3995_v47 = vand.u32 4294901760, %v558_v35  ;;  %v4047_v53 = vand.u32 4294901760, %v576_v18 }
 0x163   :  { %v785_v0 = vsub.f32 %v576_v18, %v4047_v53 }
 0x164   :  { %677 = vmatmul.f32.gmra.mxu2 %v676_v4  ;;  %902 = vmatmul.f32.gmra.mxu3 %v3923_v23  ;;  %v564_v4 = vsel %vm511_vm0, %v500_v59, 0 }
 0x165   :  { %v4011_v21 = vand.u32 4294901760, %v564_v4 }
 0x166   :  { %1220 = vmatmul.f32.gmra.mxu1 %v674_v13 }
 0x168   :  { %1051 = vmatmul.f32.gmra.mxu0 %v673_v12  ;;  %v737_v12 = vsub.f32 %v558_v35, %v3995_v47 }
 0x16a   :  { %v738_v13 = vand.u32 4294901760, %v737_v12 }
 0x16c   :  { %685 = vmatmul.f32.gmra.mxu2 %v684_v27  ;;  %906 = vmatmul.f32.gmra.mxu3 %v3931_v52  ;;  %v753_v27 = vsub.f32 %v564_v4, %v4011_v21  ;;  %v786_v4 = vand.u32 4294901760, %v785_v0 }
 0x16e   :  { %1226 = vmatmul.f32.gmra.mxu1 %v682_v5  ;;  %v754_v38 = vand.u32 4294901760, %v753_v27 }
 0x170   :  { %1056 = vmatmul.f32.gmra.mxu0 %v681_v3  ;;  %v739_v3 = vsub.f32 %v737_v12, %v738_v13 }
 0x172   :  { %v740_v5 = vand.u32 4294901760, %v739_v3 }
 0x174   :  { %693 = vmatmul.f32.gmra.mxu2 %v692_v44  ;;  %910 = vmatmul.f32.gmra.mxu3 %v3939_v11  ;;  %v755_v44 = vsub.f32 %v753_v27, %v754_v38 }
 0x176   :  { %1232 = vmatmul.f32.gmra.mxu1 %v690_v30 }
 0x178   :  { %1061 = vmatmul.f32.gmra.mxu0 %v689_v24  ;;  %v501_v24 = vld [vmem:[%s5023_s3 + $0x90] sm:$0xff] }
 0x179   :  { %v567_v30 = vsel %vm511_vm0, %v501_v24, 0  ;;  %v787_v24 = vsub.f32 %v785_v0, %v786_v4 }
 0x17b   :  { %v788_v42 = vand.u32 4294901760, %v787_v24 }
 0x17c   :  { %701 = vmatmul.f32.gmra.mxu2 %v700_v60  ;;  %914 = vmatmul.f32.gmra.mxu3 %v3947_v8  ;;  %v4027_v60 = vand.u32 4294901760, %v570_v50 }
 0x17e   :  { %1238 = vmatmul.f32.gmra.mxu1 %v698_v45  ;;  %v769_v6 = vsub.f32 %v570_v50, %v4027_v60  ;;  %v507_v50 = vld [vmem:[%s5023_s3 + $0xc0] sm:$0xff] }
 0x180   :  { %1066 = vmatmul.f32.gmra.mxu0 %v697_v39  ;;  %v4019_v39 = vand.u32 4294901760, %v567_v30  ;;  %v770_v46 = vand.u32 4294901760, %v769_v6 }
 0x182   :  { %v761_v45 = vsub.f32 %v567_v30, %v4019_v39 }
 0x184   :  { %709 = vmatmul.f32.gmra.mxu2 %v708_v25  ;;  %918 = vmatmul.f32.gmra.mxu3 %v3955_v33  ;;  %v762_v56 = vand.u32 4294901760, %v761_v45 }
 0x186   :  { %1244 = vmatmul.f32.gmra.mxu1 %v706_v62  ;;  %v503_v62 = vld [vmem:[%s5023_s3 + $0xa0] sm:$0xff]  ;;  %v763_v2 = vsub.f32 %v761_v45, %v762_v56 }
 0x188   :  { %1071 = vmatmul.f32.gmra.mxu0 %v705_v54  ;;  %v756_v54 = vand.u32 4294901760, %v755_v44  ;;  %v764_v41 = vand.u32 4294901760, %v763_v2 }
 0x18c   :  { %717 = vmatmul.f32.gmra.mxu2 %v716_v61  ;;  %922 = vmatmul.f32.gmra.mxu3 %v3963_v48  ;;  %v771_v61 = vsub.f32 %v769_v6, %v770_v46 }
 0x18e   :  { %1250 = vmatmul.f32.gmra.mxu1 %v714_v31 }
 0x190   :  { %1076 = vmatmul.f32.gmra.mxu0 %v713_v15  ;;  %v573_v15 = vsel %vm511_vm0, %v503_v62, 0 }
 0x194   :  { %725 = vmatmul.f32.gmra.mxu2 %v724_v37  ;;  %926 = vmatmul.f32.gmra.mxu3 %v3971_v63  ;;  %v772_v37 = vand.u32 4294901760, %v771_v61 }
 0x196   :  { %1256 = vmatmul.f32.gmra.mxu1 %v722_v10 }
 0x198   :  { %1081 = vmatmul.f32.gmra.mxu0 %v721_v55  ;;  %v4037_v55 = vand.u32 4294901760, %v573_v15 }
 0x19a   :  { %v777_v10 = vsub.f32 %v573_v15, %v4037_v55 }
 0x19c   :  { %733 = vmatmul.f32.gmra.mxu2 %v732_v9  ;;  %930 = vmatmul.f32.gmra.mxu3 %v3979_v34  ;;  %v579_v9 = vsel %vm511_vm0, %v505_v7, 0  ;;  %v509_v7 = vld [vmem:[%s5023_s3 + $0xd0] sm:$0xff] }
 0x19e   :  { %1262 = vmatmul.f32.gmra.mxu1 %v730_v40  ;;  %v778_v40 = vand.u32 4294901760, %v777_v10 }
 0x1a0   :  { %1086 = vmatmul.f32.gmra.mxu0 %v729_v29 }
 0x1a4   :  { %741 = vmatmul.f32.gmra.mxu2 %v740_v5  ;;  %934 = vmatmul.f32.gmra.mxu3 %v3987_v16  ;;  %v4057_v5 = vand.u32 4294901760, %v579_v9 }
 0x1a6   :  { %1268 = vmatmul.f32.gmra.mxu1 %v738_v13  ;;  %v4064_v26 = vsub.f32 %v579_v9, %v4057_v5  ;;  %v591_v9 = vsel %vm511_vm0, %v509_v7, 0 }
 0x1a7   :  { %v4113_v24 = vand.u32 4294901760, %v591_v9 }
 0x1a8   :  { %1091 = vmatmul.f32.gmra.mxu0 %v737_v12  ;;  %v779_v12 = vsub.f32 %v777_v10, %v778_v40  ;;  %v794_v44 = vand.u32 4294901760, %v4064_v26 }
 0x1ac   :  { %749 = vmatmul.f32.gmra.mxu2 %v748_v36  ;;  %938 = vmatmul.f32.gmra.mxu3 %v3995_v47 }
 0x1ae   :  { %1274 = vmatmul.f32.gmra.mxu1 %v746_v14  ;;  %v506_v14 = vld [vmem:[%s5023_s3 + $0xb8] sm:$0xff] }
 0x1af   :  { %v622_v51 = vpop.f32.mrf.mxu2 }
 0x1b0   :  { %1096 = vmatmul.f32.gmra.mxu0 %v745_v19  ;;  %v780_v19 = vand.u32 4294901760, %v779_v12 }
 0x1b4   :  { %757 = vmatmul.f32.gmra.mxu2 %v756_v54  ;;  %942 = vmatmul.f32.gmra.mxu3 %v4003_v17 }
 0x1b6   :  { %1280 = vmatmul.f32.gmra.mxu1 %v754_v38 }
 0x1b7   :  { %v879_v22 = vpop.f32.mrf.mxu3  ;;  %v630_v25 = vpop.f32.mrf.mxu2 }
 0x1b8   :  { %v4035_v31 = vadd.f32 %v879_v22, %v622_v51  ;;  %1101 = vmatmul.f32.gmra.mxu0 %v753_v27  ;;  %v582_v27 = vsel %vm511_vm0, %v506_v14, 0  ;;  %v795_v51 = vsub.f32 %v4064_v26, %v794_v44 }
 0x1ba   :  { %v796_v15 = vand.u32 4294901760, %v795_v51 }
 0x1bc   :  { %765 = vmatmul.f32.gmra.mxu2 %v764_v41  ;;  %946 = vmatmul.f32.gmra.mxu3 %v4011_v21  ;;  %v508_v41 = vld [vmem:[%s5023_s3 + $0xc8] sm:$0xff] }
 0x1bd   :  { %v588_v61 = vsel %vm511_vm0, %v508_v41, 0 }
 0x1be   :  { %1286 = vmatmul.f32.gmra.mxu1 %v762_v56  ;;  %v585_v56 = vsel %vm511_vm0, %v507_v50, 0 }
 0x1bf   :  { %v638_v28 = vpop.f32.mrf.mxu2  ;;  %v883_v29 = vpop.f32.mrf.mxu3 }
 0x1c0   :  { %1106 = vmatmul.f32.gmra.mxu0 %v761_v45  ;;  %v4045_v35 = vadd.f32 %v883_v29, %v630_v25  ;;  %v4070_v45 = vand.u32 4294901760, %v582_v27  ;;  %v4086_v25 = vand.u32 4294901760, %v585_v56 }
 0x1c2   :  { %v4080_v54 = vsub.f32 %v582_v27, %v4070_v45  ;;  %v4096_v58 = vsub.f32 %v585_v56, %v4086_v25  ;;  %v510_v27 = vld [vmem:[%s5023_s3 + $0xd8] sm:$0xff] }
 0x1c4   :  { %773 = vmatmul.f32.gmra.mxu2 %v772_v37  ;;  %950 = vmatmul.f32.gmra.mxu3 %v4019_v39  ;;  %v802_v22 = vand.u32 4294901760, %v4080_v54  ;;  %v810_v37 = vand.u32 4294901760, %v4096_v58 }
 0x1c6   :  { %1292 = vmatmul.f32.gmra.mxu1 %v770_v46  ;;  %v803_v46 = vsub.f32 %v4080_v54, %v802_v22  ;;  %v811_v12 = vsub.f32 %v4096_v58, %v810_v37 }
 0x1c7   :  { %v646_v13 = vpop.f32.mrf.mxu2  ;;  %v887_v59 = vpop.f32.mrf.mxu3 }
 0x1c8   :  { %1111 = vmatmul.f32.gmra.mxu0 %v769_v6  ;;  %v4055_v3 = vadd.f32 %v887_v59, %v638_v28  ;;  %v804_v29 = vand.u32 4294901760, %v803_v46 }
 0x1cc   :  { %781 = vmatmul.f32.gmra.mxu2 %v780_v19  ;;  %954 = vmatmul.f32.gmra.mxu3 %v4027_v60 }
 0x1ce   :  { %1298 = vmatmul.f32.gmra.mxu1 %v778_v40  ;;  %v4102_v40 = vand.u32 4294901760, %v588_v61 }
 0x1cf   :  { %v654_v30 = vpop.f32.mrf.mxu2  ;;  %v891_v36 = vpop.f32.mrf.mxu3 }
 0x1d0   :  { %1116 = vmatmul.f32.gmra.mxu0 %v777_v10  ;;  %v4067_v38 = vadd.f32 %v891_v36, %v646_v13  ;;  %v825_v36 = vsub.f32 %v591_v9, %v4113_v24 }
 0x1d4   :  { %789 = vmatmul.f32.gmra.mxu2 %v788_v42  ;;  %958 = vmatmul.f32.gmra.mxu3 %v4037_v55  ;;  %v594_v42 = vsel %vm511_vm0, %v510_v27, 0 }
 0x1d6   :  { %1304 = vmatmul.f32.gmra.mxu1 %v786_v4  ;;  %v812_v4 = vand.u32 4294901760, %v811_v12 }
 0x1d7   :  { %v662_v62 = vpop.f32.mrf.mxu2  ;;  %v895_v2 = vpop.f32.mrf.mxu3 }
 0x1d8   :  { %1121 = vmatmul.f32.gmra.mxu0 %v785_v0  ;;  %v4083_v6 = vadd.f32 %v895_v2, %v654_v30  ;;  %v817_v0 = vsub.f32 %v588_v61, %v4102_v40  ;;  %v826_v2 = vand.u32 4294901760, %v825_v36 }
 0x1da   :  { %v818_v14 = vand.u32 4294901760, %v817_v0  ;;  %v827_v41 = vsub.f32 %v825_v36, %v826_v2 }
 0x1dc   :  { %797 = vmatmul.f32.gmra.mxu2 %v796_v15  ;;  %962 = vmatmul.f32.gmra.mxu3 %v4047_v53  ;;  %v819_v30 = vsub.f32 %v817_v0, %v818_v14  ;;  %v4123_v15 = vand.u32 4294901760, %v594_v42 }
 0x1de   :  { %v833_v46 = vsub.f32 %v594_v42, %v4123_v15 }
 0x1df   :  { %v670_v10 = vpop.f32.mrf.mxu2  ;;  %v899_v18 = vpop.f32.mrf.mxu3 }
 0x1e0   :  { %v4099_v28 = vadd.f32 %v899_v18, %v662_v62  ;;  %v820_v62 = vand.u32 4294901760, %v819_v30  ;;  %v834_v7 = vand.u32 4294901760, %v833_v46 }
 0x1e2   :  { %v835_v12 = vsub.f32 %v833_v46, %v834_v7 }
 0x1e4   :  { %805 = vmatmul.f32.gmra.mxu2 %v804_v29  ;;  %966 = vmatmul.f32.gmra.mxu3 %v4057_v5  ;;  %v828_v29 = vand.u32 4294901760, %v827_v41 }
 0x1e7   :  { %v678_v13 = vpop.f32.mrf.mxu2  ;;  %v903_v59 = vpop.f32.mrf.mxu3 }
 0x1e8   :  { %v4111_v19 = vadd.f32 %v903_v59, %v670_v10 }
 0x1ec   :  { %813 = vmatmul.f32.gmra.mxu2 %v812_v4  ;;  %970 = vmatmul.f32.gmra.mxu3 %v4070_v45  ;;  %v836_v4 = vand.u32 4294901760, %v835_v12 }
 0x1ef   :  { %v686_v50 = vpop.f32.mrf.mxu2  ;;  %v907_v51 = vpop.f32.mrf.mxu3 }
 0x1f0   :  { %v4121_v56 = vadd.f32 %v907_v51, %v678_v13 }
 0x1f4   :  { %821 = vmatmul.f32.gmra.mxu2 %v820_v62  ;;  %974 = vmatmul.f32.gmra.mxu3 %v4086_v25 }
 0x1f7   :  { %v694_v61 = vpop.f32.mrf.mxu2  ;;  %v911_v10 = vpop.f32.mrf.mxu3 }
 0x1f8   :  { %v4127_v18 = vadd.f32 %v911_v10, %v686_v50 }
 0x1fc   :  { %829 = vmatmul.f32.gmra.mxu2 %v828_v29  ;;  %978 = vmatmul.f32.gmra.mxu3 %v4102_v40 }
 0x1ff   :  { %v702_v9 = vpop.f32.mrf.mxu2  ;;  %v915_v13 = vpop.f32.mrf.mxu3 }
 0x200   :  { %v4130_v59 = vadd.f32 %v915_v13, %v694_v61 }
 0x204   :  { %837 = vmatmul.f32.gmra.mxu2 %v836_v4  ;;  %982 = vmatmul.f32.gmra.mxu3 %v4113_v24 }
 0x207   :  { %v710_v27 = vpop.f32.mrf.mxu2  ;;  %v919_v30 = vpop.f32.mrf.mxu3 }
 0x208   :  { %v4133_v42 = vadd.f32 %v919_v30, %v702_v9 }
 0x20c   :  { %986 = vmatmul.f32.gmra.mxu3 %v4123_v15  ;;  %1126 = vmatmul.f32.vlgmr.msra.gmra.mxu2 %v4064_v26 }
 0x20f   :  { %v718_v50 = vpop.f32.mrf.mxu2  ;;  %v923_v51 = vpop.f32.mrf.mxu3 }
 0x210   :  { %v4137_v62 = vadd.f32 %v923_v51, %v710_v27 }
 0x214   :  { %1131 = vmatmul.f32.gmra.mxu2 %v4080_v54  ;;  %1310 = vmatmul.f32.vlgmr.msra.gmra.mxu3 %v794_v44 }
 0x217   :  { %v726_v41 = vpop.f32.mrf.mxu2  ;;  %v927_v61 = vpop.f32.mrf.mxu3 }
 0x218   :  { %v4142_v10 = vadd.f32 %v927_v61, %v718_v50 }
 0x21c   :  { %1136 = vmatmul.f32.gmra.mxu2 %v4096_v58  ;;  %1316 = vmatmul.f32.gmra.mxu3 %v802_v22 }
 0x21f   :  { %v734_v29 = vpop.f32.mrf.mxu2  ;;  %v931_v12 = vpop.f32.mrf.mxu3 }
 0x220   :  { %v4147_v9 = vadd.f32 %v931_v12, %v726_v41 }
 0x224   :  { %1141 = vmatmul.f32.gmra.mxu2 %v817_v0  ;;  %1322 = vmatmul.f32.gmra.mxu3 %v810_v37 }
 0x227   :  { %v742_v13 = vpop.f32.mrf.mxu2  ;;  %v935_v4 = vpop.f32.mrf.mxu3 }
 0x228   :  { %v4149_v27 = vadd.f32 %v935_v4, %v734_v29 }
 0x22c   :  { %1146 = vmatmul.f32.gmra.mxu2 %v825_v36  ;;  %1328 = vmatmul.f32.gmra.mxu3 %v818_v14 }
 0x22f   :  { %v750_v26 = vpop.f32.mrf.mxu2  ;;  %v939_v44 = vpop.f32.mrf.mxu3 }
 0x230   :  { %v4151_v30 = vadd.f32 %v939_v44, %v742_v13 }
 0x234   :  { %1151 = vmatmul.f32.gmra.mxu2 %v833_v46  ;;  %1334 = vmatmul.f32.gmra.mxu3 %v826_v2 }
 0x237   :  { %v758_v54 = vpop.f32.mrf.mxu2  ;;  %v943_v22 = vpop.f32.mrf.mxu3 }
 0x238   :  { %v4153_v58 = vadd.f32 %v943_v22, %v750_v26 }
 0x23c   :  { %1340 = vmatmul.f32.gmra.mxu3 %v834_v7  ;;  %1373 = vmatmul.f32.vlgmr.msrb.gmra.mxu2 %v3832_v43 }
 0x23f   :  { %v766_v37 = vpop.f32.mrf.mxu2  ;;  %v947_v0 = vpop.f32.mrf.mxu3 }
 0x240   :  { %v4156_v50 = vadd.f32 %v947_v0, %v758_v54 }
 0x244   :  { %1377 = vmatmul.f32.gmra.mxu2 %v3848_v1  ;;  %1506 = vmatmul.f32.vlgmr.msrb.gmra.mxu3 %v3832_v43 }
 0x247   :  { %v774_v14 = vpop.f32.mrf.mxu2  ;;  %v951_v36 = vpop.f32.mrf.mxu3 }
 0x248   :  { %v4160_v51 = vadd.f32 %v951_v36, %v766_v37 }
 0x24c   :  { %1381 = vmatmul.f32.gmra.mxu2 %v3874_v32  ;;  %1510 = vmatmul.f32.gmra.mxu3 %v3848_v1 }
 0x24f   :  { %v782_v2 = vpop.f32.mrf.mxu2  ;;  %v955_v46 = vpop.f32.mrf.mxu3 }
 0x250   :  { %v4164_v7 = vadd.f32 %v955_v46, %v774_v14 }
 0x254   :  { %1385 = vmatmul.f32.gmra.mxu2 %v3890_v57  ;;  %1514 = vmatmul.f32.gmra.mxu3 %v3874_v32 }
 0x257   :  { %v790_v41 = vpop.f32.mrf.mxu2  ;;  %v959_v61 = vpop.f32.mrf.mxu3 }
 0x258   :  { %v4168_v29 = vadd.f32 %v959_v61, %v782_v2 }
 0x25c   :  { %1389 = vmatmul.f32.gmra.mxu2 %v3902_v20  ;;  %1518 = vmatmul.f32.gmra.mxu3 %v3890_v57 }
 0x25f   :  { %v798_v43 = vpop.f32.mrf.mxu2  ;;  %v963_v12 = vpop.f32.mrf.mxu3 }
 0x260   :  { %v4172_v13 = vadd.f32 %v963_v12, %v790_v41 }
 0x264   :  { %1393 = vmatmul.f32.gmra.mxu2 %v3914_v49  ;;  %1522 = vmatmul.f32.gmra.mxu3 %v3902_v20 }
 0x267   :  { %v806_v1 = vpop.f32.mrf.mxu2  ;;  %v967_v4 = vpop.f32.mrf.mxu3 }
 0x268   :  { %v968_v26 = vadd.f32 %v967_v4, %v798_v43  ;;  %v1017_v43 = vpop.f32.mrf.mxu0 }
 0x26c   :  { %1397 = vmatmul.f32.gmra.mxu2 %v3923_v23  ;;  %1526 = vmatmul.f32.gmra.mxu3 %v3914_v49 }
 0x26f   :  { %v814_v32 = vpop.f32.mrf.mxu2  ;;  %v971_v44 = vpop.f32.mrf.mxu3 }
 0x270   :  { %v972_v54 = vadd.f32 %v971_v44, %v806_v1 }
 0x274   :  { %1401 = vmatmul.f32.gmra.mxu2 %v3931_v52  ;;  %1530 = vmatmul.f32.gmra.mxu3 %v3923_v23 }
 0x277   :  { %v822_v57 = vpop.f32.mrf.mxu2  ;;  %v975_v22 = vpop.f32.mrf.mxu3 }
 0x278   :  { %v976_v37 = vadd.f32 %v975_v22, %v814_v32  ;;  %v1022_v32 = vpop.f32.mrf.mxu0 }
 0x27c   :  { %1405 = vmatmul.f32.gmra.mxu2 %v3939_v11  ;;  %1534 = vmatmul.f32.gmra.mxu3 %v3931_v52  ;;  %v1179_v52 = vpop.f32.mrf.mxu1 }
 0x27f   :  { %v830_v20 = vpop.f32.mrf.mxu2  ;;  %v979_v0 = vpop.f32.mrf.mxu3 }
 0x280   :  { %v980_v14 = vadd.f32 %v979_v0, %v822_v57 }
 0x284   :  { %1409 = vmatmul.f32.gmra.mxu2 %v3947_v8  ;;  %1538 = vmatmul.f32.gmra.mxu3 %v3939_v11  ;;  %v1185_v57 = vpop.f32.mrf.mxu1 }
 0x287   :  { %v838_v49 = vpop.f32.mrf.mxu2  ;;  %v983_v36 = vpop.f32.mrf.mxu3 }
 0x288   :  { %v984_v2 = vadd.f32 %v983_v36, %v830_v20 }
 0x28c   :  { %1413 = vmatmul.f32.gmra.mxu2 %v3955_v33  ;;  %1542 = vmatmul.f32.gmra.mxu3 %v3947_v8  ;;  %v1191_v36 = vpop.f32.mrf.mxu1 }
 0x28f   :  { %v987_v23 = vpop.f32.mrf.mxu3  ;;  %v1127_v46 = vpop.f32.mrf.mxu2 }
 0x290   :  { %v988_v41 = vadd.f32 %v987_v23, %v838_v49  ;;  %v1128_v61 = vadd.f32 %v1127_v46, %v968_v26 }
 0x294   :  { %1417 = vmatmul.f32.gmra.mxu2 %v3963_v48  ;;  %1546 = vmatmul.f32.gmra.mxu3 %v3955_v33  ;;  %v1027_v33 = vpop.f32.mrf.mxu0 }
 0x297   :  { %v1132_v12 = vpop.f32.mrf.mxu2  ;;  %v1311_v1 = vpop.f32.mrf.mxu3 }
 0x298   :  { %v1133_v11 = vadd.f32 %v1132_v12, %v972_v54  ;;  %v4188_v4 = vadd.f32 %v1311_v1, %v1128_v61  ;;  %v1197_v12 = vpop.f32.mrf.mxu1 }
 0x29c   :  { %1421 = vmatmul.f32.gmra.mxu2 %v3971_v63  ;;  %1550 = vmatmul.f32.gmra.mxu3 %v3963_v48 }
 0x29f   :  { %v1137_v8 = vpop.f32.mrf.mxu2  ;;  %v1317_v44 = vpop.f32.mrf.mxu3 }
 0x2a0   :  { %v1138_v26 = vadd.f32 %v1137_v8, %v976_v37  ;;  %v4192_v22 = vadd.f32 %v1317_v44, %v1133_v11  ;;  %v1032_v37 = vpop.f32.mrf.mxu0  ;;  %v1018_v8 = vadd.f32 %v1017_v43, %v4035_v31 }
 0x2a4   :  { %1425 = vmatmul.f32.gmra.mxu2 %v3979_v34  ;;  %1554 = vmatmul.f32.gmra.mxu3 %v3971_v63 }
 0x2a7   :  { %v1142_v20 = vpop.f32.mrf.mxu2  ;;  %v1323_v54 = vpop.f32.mrf.mxu3 }
 0x2a8   :  { %v1143_v0 = vadd.f32 %v1142_v20, %v980_v14  ;;  %v4196_v49 = vadd.f32 %v1323_v54, %v1138_v26  ;;  %v1037_v44 = vpop.f32.mrf.mxu0 }
 0x2ac   :  { %1429 = vmatmul.f32.gmra.mxu2 %v3987_v16  ;;  %1558 = vmatmul.f32.gmra.mxu3 %v3979_v34  ;;  %v1180_v34 = vadd.f32 %v1179_v52, %v1018_v8  ;;  %v1028_v52 = vadd.f32 %v1027_v33, %v4055_v3 }
 0x2af   :  { %v1147_v48 = vpop.f32.mrf.mxu2  ;;  %v1329_v23 = vpop.f32.mrf.mxu3 }
 0x2b0   :  { %v1148_v46 = vadd.f32 %v1147_v48, %v984_v2  ;;  %v4200_v61 = vadd.f32 %v1329_v23, %v1143_v0  ;;  %v1203_v2 = vpop.f32.mrf.mxu1  ;;  %v1042_v48 = vpop.f32.mrf.mxu0 }
 0x2b4   :  { %1433 = vmatmul.f32.gmra.mxu2 %v3995_v47  ;;  %1562 = vmatmul.f32.gmra.mxu3 %v3987_v16  ;;  %v1023_v16 = vadd.f32 %v1022_v32, %v4045_v35 }
 0x2b6   :  { %v1186_v31 = vadd.f32 %v1185_v57, %v1023_v16 }
 0x2b7   :  { %v1152_v63 = vpop.f32.mrf.mxu2  ;;  %v1335_v14 = vpop.f32.mrf.mxu3 }
 0x2b8   :  { %v1153_v1 = vadd.f32 %v1152_v63, %v988_v41  ;;  %v4204_v11 = vadd.f32 %v1335_v14, %v1148_v46  ;;  %v1209_v23 = vpop.f32.mrf.mxu1  ;;  %v1192_v63 = vadd.f32 %v1191_v36, %v1028_v52  ;;  %v1047_v14 = vpop.f32.mrf.mxu0 }
 0x2bc   :  { %1437 = vmatmul.f32.gmra.mxu2 %v4003_v17  ;;  %1566 = vmatmul.f32.gmra.mxu3 %v3995_v47 }
 0x2bf   :  { %v1341_v26 = vpop.f32.mrf.mxu3  ;;  %v1374_v20 = vpop.f32.mrf.mxu2 }
 0x2c0   :  { %v4209_v54 = vadd.f32 %v1341_v26, %v1153_v1  ;;  %v1375_v0 = vadd.f32 %v1374_v20, %v1180_v34  ;;  %v1215_v57 = vpop.f32.mrf.mxu1  ;;  %v4221_v34 = vld [vmem:[%s5021_s1] sm:$0xff]  ;;  %v1052_v20 = vpop.f32.mrf.mxu0 }
 0x2c1   :  { %v1622_v33 = vperm.slane %v4221_v34, 1 }
 0x2c4   :  { %1441 = vmatmul.f32.gmra.mxu2 %v4011_v21  ;;  %1570 = vmatmul.f32.gmra.mxu3 %v4003_v17  ;;  %v1033_v17 = vadd.f32 %v1032_v37, %v4067_v38 }
 0x2c6   :  { %v1198_v3 = vadd.f32 %v1197_v12, %v1033_v17 }
 0x2c7   :  { %v1378_v41 = vpop.f32.mrf.mxu2  ;;  %v1507_v43 = vpop.f32.mrf.mxu3 }
 0x2c8   :  { %v1379_v46 = vadd.f32 %v1378_v41, %v1186_v31  ;;  %v1508_v47 = vadd.f32 %v1507_v43, %v1375_v0  ;;  %v4230_v31 = vld [vmem:[%s5021_s1 + $0x8] sm:$0xff]  ;;  %v1221_v41 = vpop.f32.mrf.mxu1 }
 0x2c9   :  { %v1625_v12 = vperm.slane %v4230_v31, 0 }
 0x2cc   :  { %1445 = vmatmul.f32.gmra.mxu2 %v4019_v39  ;;  %1574 = vmatmul.f32.gmra.mxu3 %v4011_v21  ;;  %v1618_v21 = vperm.slane %v4221_v34, 0 }
 0x2ce   :  { %v1619_v37 = vmul.f32 %v1618_v21, %v1508_v47  ;;  %v1038_v47 = vadd.f32 %v1037_v44, %v4083_v6 }
 0x2cf   :  { %v1382_v35 = vpop.f32.mrf.mxu2  ;;  %v1511_v32 = vpop.f32.mrf.mxu3 }
 0x2d0   :  { %v1383_v1 = vadd.f32 %v1382_v35, %v1192_v63  ;;  %v1512_v8 = vadd.f32 %v1511_v32, %v1379_v46  ;;  %v1057_v35 = vpop.f32.mrf.mxu0  ;;  %v1204_v17 = vadd.f32 %v1203_v2, %v1038_v47  ;;  %v1227_v21 = vpop.f32.mrf.mxu1 }
 0x2d4   :  { %1449 = vmatmul.f32.gmra.mxu2 %v4027_v60  ;;  %1578 = vmatmul.f32.gmra.mxu3 %v4019_v39  ;;  %v1620_v39 = vperm.slane %v4221_v34, 7 }
 0x2d6   :  { %v1621_v32 = vmul.f32 %v1620_v39, %v1512_v8 }
 0x2d7   :  { %v1386_v36 = vpop.f32.mrf.mxu2  ;;  %v1515_v26 = vpop.f32.mrf.mxu3 }
 0x2d8   :  { %v1387_v0 = vadd.f32 %v1386_v36, %v1198_v3  ;;  %v1516_v38 = vadd.f32 %v1515_v26, %v1383_v1 }
 0x2da   :  { %v1623_v16 = vmul.f32 %v1622_v33, %v1516_v38  ;;  %v1628_v33 = vperm.slane %v4221_v34, 2  ;;  %v1043_v38 = vadd.f32 %v1042_v48, %v4099_v28 }
 0x2dc   :  { %v1624_v43 = vadd.f32 %v1623_v16, %v1619_v37  ;;  %1453 = vmatmul.f32.gmra.mxu2 %v4037_v55  ;;  %1582 = vmatmul.f32.gmra.mxu3 %v4027_v60  ;;  %v1210_v44 = vadd.f32 %v1209_v23, %v1043_v38 }
 0x2df   :  { %v1390_v46 = vpop.f32.mrf.mxu2  ;;  %v1519_v52 = vpop.f32.mrf.mxu3 }
 0x2e0   :  { %v1520_v63 = vadd.f32 %v1519_v52, %v1387_v0  ;;  %v1391_v60 = vadd.f32 %v1390_v46, %v1204_v17  ;;  %v1062_v0 = vpop.f32.mrf.mxu0  ;;  %v1233_v46 = vpop.f32.mrf.mxu1 }
 0x2e2   :  { %v1626_v1 = vmul.f32 %v1625_v12, %v1520_v63  ;;  %v1048_v12 = vadd.f32 %v1047_v14, %v4111_v19 }
 0x2e4   :  { %v1627_v3 = vadd.f32 %v1626_v1, %v1621_v32  ;;  %1457 = vmatmul.f32.gmra.mxu2 %v4047_v53  ;;  %1586 = vmatmul.f32.gmra.mxu3 %v4037_v55  ;;  %v1631_v55 = vperm.slane %v4230_v31, 1  ;;  %v1216_v28 = vadd.f32 %v1215_v57, %v1048_v12  ;;  %v1053_v1 = vadd.f32 %v1052_v20, %v4121_v56 }
 0x2e6   :  { %v1222_v14 = vadd.f32 %v1221_v41, %v1053_v1 }
 0x2e7   :  { %v1394_v36 = vpop.f32.mrf.mxu2  ;;  %v1523_v26 = vpop.f32.mrf.mxu3 }
 0x2e8   :  { %v1524_v37 = vadd.f32 %v1523_v26, %v1391_v60  ;;  %v1395_v2 = vadd.f32 %v1394_v36, %v1210_v44  ;;  %v1067_v23 = vpop.f32.mrf.mxu0  ;;  %v1239_v60 = vpop.f32.mrf.mxu1  ;;  %v1058_v26 = vadd.f32 %v1057_v35, %v4127_v18 }
 0x2ea   :  { %v1629_v6 = vmul.f32 %v1628_v33, %v1524_v37  ;;  %v1228_v56 = vadd.f32 %v1227_v21, %v1058_v26 }
 0x2ec   :  { %v1630_v8 = vadd.f32 %v1629_v6, %v1624_v43  ;;  %1461 = vmatmul.f32.gmra.mxu2 %v4057_v5  ;;  %1590 = vmatmul.f32.gmra.mxu3 %v4047_v53  ;;  %v1634_v53 = vperm.slane %v4221_v34, 3 }
 0x2ef   :  { %v1398_v16 = vpop.f32.mrf.mxu2  ;;  %v1527_v39 = vpop.f32.mrf.mxu3 }
 0x2f0   :  { %v1528_v52 = vadd.f32 %v1527_v39, %v1395_v2  ;;  %v1399_v43 = vadd.f32 %v1398_v16, %v1216_v28  ;;  %v1072_v38 = vpop.f32.mrf.mxu0  ;;  %v1245_v20 = vpop.f32.mrf.mxu1 }
 0x2f2   :  { %v1632_v47 = vmul.f32 %v1631_v55, %v1528_v52  ;;  %v1063_v55 = vadd.f32 %v1062_v0, %v4130_v59 }
 0x2f4   :  { %v1633_v48 = vadd.f32 %v1632_v47, %v1627_v3  ;;  %1465 = vmatmul.f32.gmra.mxu2 %v4070_v45  ;;  %1594 = vmatmul.f32.gmra.mxu3 %v4057_v5  ;;  %v1637_v5 = vperm.slane %v4230_v31, 2  ;;  %v1234_v35 = vadd.f32 %v1233_v46, %v1063_v55 }
 0x2f7   :  { %v1402_v63 = vpop.f32.mrf.mxu2  ;;  %v1531_v32 = vpop.f32.mrf.mxu3 }
 0x2f8   :  { %v1532_v17 = vadd.f32 %v1531_v32, %v1399_v43  ;;  %v1403_v57 = vadd.f32 %v1402_v63, %v1222_v14  ;;  %v1077_v39 = vpop.f32.mrf.mxu0  ;;  %v1251_v21 = vpop.f32.mrf.mxu1 }
 0x2fa   :  { %v1635_v19 = vmul.f32 %v1634_v53, %v1532_v17  ;;  %v1073_v17 = vadd.f32 %v1072_v38, %v4137_v62 }
 0x2fc   :  { %v1636_v33 = vadd.f32 %v1635_v19, %v1630_v8  ;;  %1469 = vmatmul.f32.gmra.mxu2 %v4086_v25  ;;  %1598 = vmatmul.f32.gmra.mxu3 %v4070_v45  ;;  %v1640_v45 = vperm.slane %v4221_v34, 4 }
 0x2ff   :  { %v1406_v3 = vpop.f32.mrf.mxu2  ;;  %v1535_v36 = vpop.f32.mrf.mxu3 }
 0x300   :  { %v1536_v37 = vadd.f32 %v1535_v36, %v1403_v57  ;;  %v1407_v41 = vadd.f32 %v1406_v3, %v1228_v56  ;;  %v1082_v0 = vpop.f32.mrf.mxu0  ;;  %v1257_v19 = vpop.f32.mrf.mxu1  ;;  %v1078_v36 = vadd.f32 %v1077_v39, %v4142_v10  ;;  %v1655_v39 = vperm.slane %v4230_v31, 5 }
 0x302   :  { %v1638_v6 = vmul.f32 %v1637_v5, %v1536_v37  ;;  %v1649_v5 = vperm.slane %v4230_v31, 4  ;;  %v1252_v56 = vadd.f32 %v1251_v21, %v1078_v36 }
 0x304   :  { %v1639_v44 = vadd.f32 %v1638_v6, %v1633_v48  ;;  %1473 = vmatmul.f32.gmra.mxu2 %v4102_v40  ;;  %1602 = vmatmul.f32.gmra.mxu3 %v4086_v25  ;;  %v1643_v25 = vperm.slane %v4230_v31, 3  ;;  %v1068_v48 = vadd.f32 %v1067_v23, %v4133_v42  ;;  %v1246_v42 = vadd.f32 %v1245_v20, %v1073_v17 }
 0x306   :  { %v1240_v59 = vadd.f32 %v1239_v60, %v1068_v48 }
 0x307   :  { %v1410_v8 = vpop.f32.mrf.mxu2  ;;  %v1539_v2 = vpop.f32.mrf.mxu3 }
 0x308   :  { %v1540_v16 = vadd.f32 %v1539_v2, %v1407_v41  ;;  %v1411_v52 = vadd.f32 %v1410_v8, %v1234_v35  ;;  %v1087_v60 = vpop.f32.mrf.mxu0  ;;  %v1263_v37 = vpop.f32.mrf.mxu1 }
 0x309   :  { %v1088_v17 = vadd.f32 %v1087_v60, %v4149_v27 }
 0x30a   :  { %v1641_v18 = vmul.f32 %v1640_v45, %v1540_v16 }
 0x30c   :  { %v1642_v12 = vadd.f32 %v1641_v18, %v1636_v33  ;;  %1477 = vmatmul.f32.gmra.mxu2 %v4113_v24  ;;  %1606 = vmatmul.f32.gmra.mxu3 %v4102_v40  ;;  %v1646_v40 = vperm.slane %v4221_v34, 5 }
 0x30f   :  { %v1414_v47 = vpop.f32.mrf.mxu2  ;;  %v1543_v28 = vpop.f32.mrf.mxu3 }
 0x310   :  { %v1544_v43 = vadd.f32 %v1543_v28, %v1411_v52  ;;  %v1415_v46 = vadd.f32 %v1414_v47, %v1240_v59  ;;  %v1092_v45 = vpop.f32.mrf.mxu0  ;;  %v1269_v16 = vpop.f32.mrf.mxu1 }
 0x312   :  { %v1644_v53 = vmul.f32 %v1643_v25, %v1544_v43 }
 0x314   :  { %v1645_v63 = vadd.f32 %v1644_v53, %v1639_v44  ;;  %1481 = vmatmul.f32.gmra.mxu2 %v4123_v15  ;;  %1610 = vmatmul.f32.gmra.mxu3 %v4113_v24  ;;  %v1652_v44 = vperm.slane %v4221_v34, 6 }
 0x317   :  { %v1418_v32 = vpop.f32.mrf.mxu2  ;;  %v1547_v1 = vpop.f32.mrf.mxu3 }
 0x318   :  { %v1548_v14 = vadd.f32 %v1547_v1, %v1415_v46  ;;  %v1419_v57 = vadd.f32 %v1418_v32, %v1246_v42  ;;  %v1097_v25 = vpop.f32.mrf.mxu0  ;;  %v1275_v48 = vpop.f32.mrf.mxu1 }
 0x319   :  { %v1098_v42 = vadd.f32 %v1097_v25, %v4153_v58  ;;  %v1662_v58 = vperm.slane %v4230_v31, 7 }
 0x31a   :  { %v1647_v33 = vmul.f32 %v1646_v40, %v1548_v14 }
 0x31b   :  { %v1276_v36 = vadd.f32 %v1275_v48, %v1098_v42 }
 0x31c   :  { %v1648_v23 = vadd.f32 %v1647_v33, %v1642_v12  ;;  %1614 = vmatmul.f32.gmra.mxu3 %v4123_v15  ;;  %v1083_v15 = vadd.f32 %v1082_v0, %v4147_v9 }
 0x31e   :  { %v1258_v55 = vadd.f32 %v1257_v19, %v1083_v15 }
 0x31f   :  { %v1422_v3 = vpop.f32.mrf.mxu2  ;;  %v1551_v24 = vpop.f32.mrf.mxu3 }
 0x320   :  { %v1552_v26 = vadd.f32 %v1551_v24, %v1419_v57  ;;  %v1423_v38 = vadd.f32 %v1422_v3, %v1252_v56  ;;  %v1102_v40 = vpop.f32.mrf.mxu0  ;;  %v1264_v3 = vadd.f32 %v1263_v37, %v1088_v17  ;;  %v1658_v56 = vperm.slane %v4230_v31, 6 }
 0x321   :  { %v1103_v37 = vadd.f32 %v1102_v40, %v4156_v50 }
 0x322   :  { %v1650_v6 = vmul.f32 %v1649_v5, %v1552_v26 }
 0x324   :  { %v1651_v62 = vadd.f32 %v1650_v6, %v1645_v63  ;;  %v1093_v6 = vadd.f32 %v1092_v45, %v4151_v30  ;;  %v4292_v30 = vld [vmem:[%s5021_s1 + $0x10] sm:$0xff] }
 0x325   :  { %v1660_v31 = vperm.slane %v4292_v30, 5 }
 0x327   :  { %v1426_v20 = vpop.f32.mrf.mxu2  ;;  %v1555_v41 = vpop.f32.mrf.mxu3 }
 0x328   :  { %v1556_v8 = vadd.f32 %v1555_v41, %v1423_v38  ;;  %v1427_v10 = vadd.f32 %v1426_v20, %v1258_v55  ;;  %v1107_v27 = vpop.f32.mrf.mxu0  ;;  %v1270_v41 = vadd.f32 %v1269_v16, %v1093_v6 }
 0x329   :  { %v1108_v16 = vadd.f32 %v1107_v27, %v4160_v51 }
 0x32a   :  { %v1653_v2 = vmul.f32 %v1652_v44, %v1556_v8 }
 0x32c   :  { %v4270_v18 = vadd.f32 %v1653_v2, %v1648_v23  ;;  %v1281_v23 = vpop.f32.mrf.mxu1 }
 0x32d   :  { %v1282_v45 = vadd.f32 %v1281_v23, %v1103_v37  ;;  %v4306_v37 = vld [vmem:[%s5021_s1 + $0x18] sm:$0xff] }
 0x32e   :  { %v1712_v35 = vrot.slane %v4270_v18, 4 }
 0x32f   :  { %v1430_v12 = vpop.f32.mrf.mxu2  ;;  %v1559_v21 = vpop.f32.mrf.mxu3 }
 0x330   :  { %v1560_v52 = vadd.f32 %v1559_v21, %v1427_v10  ;;  %v1713_v34 = vadd.f32 %v1712_v35, %v4270_v18  ;;  %v1431_v26 = vadd.f32 %v1430_v12, %v1264_v3  ;;  %v1665_v12 = vperm.slane %v4292_v30, 6 }
 0x332   :  { %v1656_v47 = vmul.f32 %v1655_v39, %v1560_v52  ;;  %v1714_v28 = vrot.slane %v1713_v34, 2 }
 0x334   :  { %v4275_v9 = vadd.f32 %v1656_v47, %v1651_v62  ;;  %v1715_v0 = vadd.f32 %v1714_v28, %v1713_v34  ;;  %v1287_v15 = vpop.f32.mrf.mxu1  ;;  %v1112_v34 = vpop.f32.mrf.mxu0 }
 0x335   :  { %v1288_v28 = vadd.f32 %v1287_v15, %v1108_v16  ;;  %v1677_v15 = vperm.slane %v4306_v37, 0 }
 0x336   :  { %v1718_v43 = vrot.slane %v4275_v9, 4  ;;  %v1716_v32 = vrot.slane %v1715_v0, 1 }
 0x337   :  { %v1434_v53 = vpop.f32.mrf.mxu2  ;;  %v1563_v59 = vpop.f32.mrf.mxu3 }
 0x338   :  { %v1719_v63 = vadd.f32 %v1718_v43, %v4275_v9  ;;  %v1717_v57 = vadd.f32 %v1716_v32, %v1715_v0  ;;  %v1564_v60 = vadd.f32 %v1563_v59, %v1431_v26  ;;  %v1435_v55 = vadd.f32 %v1434_v53, %v1270_v41 }
 0x339   :  { %v1668_v53 = vperm.slane %v4292_v30, 0 }
 0x33a   :  { %v1720_v46 = vrot.slane %v1719_v63, 2  ;;  %v1659_v8 = vmul.f32 %v1658_v56, %v1564_v60 }
 0x33c   :  { %v1721_v1 = vadd.f32 %v1720_v46, %v1719_v63  ;;  %v1293_v48 = vpop.f32.mrf.mxu1  ;;  %v1113_v46 = vadd.f32 %v1112_v34, %v4164_v7  ;;  %v1674_v7 = vperm.slane %v4292_v30, 1 }
 0x33e   :  { %v1722_v19 = vrot.slane %v1721_v1, 1  ;;  %v1294_v17 = vadd.f32 %v1293_v48, %v1113_v46 }
 0x33f   :  { %v1438_v14 = vpop.f32.mrf.mxu2  ;;  %v1567_v33 = vpop.f32.mrf.mxu3 }
 0x340   :  { %v1723_v5 = vadd.f32 %v1722_v19, %v1721_v1  ;;  %v1439_v62 = vadd.f32 %v1438_v14, %v1276_v36  ;;  %v1568_v39 = vadd.f32 %v1567_v33, %v1435_v55  ;;  %v1117_v1 = vpop.f32.mrf.mxu0  ;;  %v1671_v33 = vperm.slane %v4292_v30, 7 }
 0x342   :  { %v4281_v24 = vadd.f32 %v1723_v5, %v1717_v57  ;;  %v1661_v25 = vmul.f32 %v1660_v31, %v1568_v39  ;;  %v1118_v57 = vadd.f32 %v1117_v1, %v4168_v29  ;;  %v1680_v39 = vperm.slane %v4292_v30, 2 }
 0x344   :  { %1726 = vrot.lane.b32.xlu0 %v4281_v24, %s3476_s18  ;;  %v1299_v51 = vpop.f32.mrf.mxu1 }
 0x345   :  { %v1300_v36 = vadd.f32 %v1299_v51, %v1118_v57 }
 0x347   :  { %v1442_v38 = vpop.f32.mrf.mxu2  ;;  %v1571_v44 = vpop.f32.mrf.mxu3 }
 0x348   :  { %v1572_v20 = vadd.f32 %v1571_v44, %v1439_v62  ;;  %v1443_v35 = vadd.f32 %v1442_v38, %v1282_v45  ;;  %v1122_v6 = vpop.f32.mrf.mxu0 }
 0x349   :  { %v1123_v62 = vadd.f32 %v1122_v6, %v4172_v13 }
 0x34a   :  { %v1663_v2 = vmul.f32 %v1662_v58, %v1572_v20 }
 0x34c   :  { %v1664_v10 = vadd.f32 %v1663_v2, %v1659_v8  ;;  %v1305_v38 = vpop.f32.mrf.mxu1 }
 0x34d   :  { %v1306_v29 = vadd.f32 %v1305_v38, %v1123_v62 }
 0x34f   :  { %v1446_v50 = vpop.f32.mrf.mxu2  ;;  %v1575_v21 = vpop.f32.mrf.mxu3 }
 0x350   :  { %v1576_v52 = vadd.f32 %v1575_v21, %v1443_v35  ;;  %v1447_v59 = vadd.f32 %v1446_v50, %v1288_v28 }
 0x352   :  { %v1666_v47 = vmul.f32 %v1665_v12, %v1576_v52  ;;  %v1683_v52 = vperm.slane %v4306_v37, 1 }
 0x354   :  { %v1667_v43 = vadd.f32 %v1666_v47, %v1661_v25 }
 0x357   :  { %v1450_v0 = vpop.f32.mrf.mxu2  ;;  %v1579_v63 = vpop.f32.mrf.mxu3 }
 0x358   :  { %v1580_v40 = vadd.f32 %v1579_v63, %v1447_v59  ;;  %v1451_v14 = vadd.f32 %v1450_v0, %v1294_v17 }
 0x35a   :  { %v1669_v32 = vmul.f32 %v1668_v53, %v1580_v40 }
 0x35c   :  { %v1670_v19 = vadd.f32 %v1669_v32, %v1664_v10 }
 0x35f   :  { %v1454_v42 = vpop.f32.mrf.mxu2  ;;  %v1583_v23 = vpop.f32.mrf.mxu3 }
 0x360   :  { %v1584_v5 = vadd.f32 %v1583_v23, %v1451_v14  ;;  %v1455_v27 = vadd.f32 %v1454_v42, %v1300_v36 }
 0x362   :  { %v1672_v3 = vmul.f32 %v1671_v33, %v1584_v5 }
 0x364   :  { %v1673_v26 = vadd.f32 %v1672_v3, %v1667_v43 }
 0x367   :  { %v1458_v60 = vpop.f32.mrf.mxu2  ;;  %v1587_v56 = vpop.f32.mrf.mxu3 }
 0x368   :  { %v1588_v58 = vadd.f32 %v1587_v56, %v1455_v27  ;;  %v1459_v41 = vadd.f32 %v1458_v60, %v1306_v29 }
 0x36a   :  { %v1675_v44 = vmul.f32 %v1674_v7, %v1588_v58 }
 0x36c   :  { %v1676_v20 = vadd.f32 %v1675_v44, %v1670_v19 }
 0x36f   :  { %v1462_v8 = vpop.f32.mrf.mxu2  ;;  %v1591_v2 = vpop.f32.mrf.mxu3 }
 0x370   :  { %v1592_v45 = vadd.f32 %v1591_v2, %v1459_v41  ;;  %v1463_v13 = vadd.f32 %v1462_v8, %v4188_v4  ;;  %v1686_v4 = vperm.slane %v4292_v30, 3 }
 0x372   :  { %v1678_v55 = vmul.f32 %v1677_v15, %v1592_v45  ;;  %v1698_v45 = vlaneseq }
 0x374   :  { %v1679_v10 = vadd.f32 %v1678_v55, %v1673_v26  ;;  %v1699_v55 = vand.u32 127, %v1698_v45 }
 0x377   :  { %v1466_v31 = vpop.f32.mrf.mxu2  ;;  %v1595_v35 = vpop.f32.mrf.mxu3 }
 0x378   :  { %v1596_v12 = vadd.f32 %v1595_v35, %v1463_v13  ;;  %v1467_v16 = vadd.f32 %v1466_v31, %v4192_v22  ;;  %v1689_v22 = vperm.slane %v4306_v37, 2 }
 0x37a   :  { %v1681_v50 = vmul.f32 %v1680_v39, %v1596_v12 }
 0x37c   :  { %v1682_v21 = vadd.f32 %v1681_v50, %v1676_v20 }
 0x37f   :  { %v1470_v34 = vpop.f32.mrf.mxu2  ;;  %v1599_v25 = vpop.f32.mrf.mxu3 }
 0x380   :  { %v1600_v47 = vadd.f32 %v1599_v25, %v1467_v16  ;;  %v1471_v43 = vadd.f32 %v1470_v34, %v4196_v49  ;;  %v1692_v49 = vperm.slane %v4292_v30, 4 }
 0x382   :  { %v1684_v28 = vmul.f32 %v1683_v52, %v1600_v47 }
 0x384   :  { %v1685_v48 = vadd.f32 %v1684_v28, %v1679_v10  ;;  %v1704_v10 = vand.u32 1, %v1699_v55 }
 0x386   :  { %vm4333_vm3 = vcmp.eq.s32.totalorder %v1704_v10, 1 }
 0x387   :  { %v1474_v59 = vpop.f32.mrf.mxu2  ;;  %v1603_v53 = vpop.f32.mrf.mxu3 }
 0x388   :  { %v1604_v0 = vadd.f32 %v1603_v53, %v1471_v43  ;;  %v1475_v40 = vadd.f32 %v1474_v59, %v4200_v61  ;;  %v1695_v61 = vperm.slane %v4306_v37, 3 }
 0x38a   :  { %v1687_v63 = vmul.f32 %v1686_v4, %v1604_v0 }
 0x38c   :  { %v1688_v46 = vadd.f32 %v1687_v63, %v1682_v21 }
 0x38f   :  { %v1607_v32 = vpop.f32.mrf.mxu3  ;;  %v1478_v17 = vpop.f32.mrf.mxu2 }
 0x390   :  { %v1608_v1 = vadd.f32 %v1607_v32, %v1475_v40  ;;  %v1479_v14 = vadd.f32 %v1478_v17, %v4204_v11 }
 0x392   :  { %v1690_v19 = vmul.f32 %v1689_v22, %v1608_v1 }
 0x394   :  { %v1691_v51 = vadd.f32 %v1690_v19, %v1685_v48 }
 0x397   :  { %v1611_v33 = vpop.f32.mrf.mxu3  ;;  %v1482_v57 = vpop.f32.mrf.mxu2 }
 0x398   :  { %v1612_v42 = vadd.f32 %v1611_v33, %v1479_v14  ;;  %v1483_v3 = vadd.f32 %v1482_v57, %v4209_v54 }
 0x39a   :  { %v1693_v23 = vmul.f32 %v1692_v49, %v1612_v42 }
 0x39c   :  { %v4319_v5 = vadd.f32 %v1693_v23, %v1688_v46 }
 0x39e   :  { %v1832_v11 = vrot.slane %v4319_v5, 4 }
 0x39f   :  { %v1615_v36 = vpop.f32.mrf.mxu3 }
 0x3a0   :  { %v1616_v26 = vadd.f32 %v1615_v36, %v1483_v3  ;;  %v1833_v60 = vadd.f32 %v1832_v11, %v4319_v5 }
 0x3a2   :  { %v1696_v6 = vmul.f32 %v1695_v61, %v1616_v26  ;;  %v1834_v62 = vrot.slane %v1833_v60, 2 }
 0x3a4   :  { %v4323_v27 = vadd.f32 %v1696_v6, %v1691_v51  ;;  %v1835_v38 = vadd.f32 %v1834_v62, %v1833_v60  ;;  %v1785_v6 = vperm.slane %v4306_v37, 4  ;;  %v1811_v60 = vperm.slane %v4306_v37, 7 }
 0x3a6   :  { %v1838_v7 = vrot.slane %v4323_v27, 4  ;;  %v1836_v41 = vrot.slane %v1835_v38, 1 }
 0x3a8   :  { %v1839_v30 = vadd.f32 %v1838_v7, %v4323_v27  ;;  %v1837_v8 = vadd.f32 %v1836_v41, %v1835_v38  ;;  %v1809_v7 = vperm.slane %v4306_v37, 5 }
 0x3aa   :  { %v1840_v56 = vrot.slane %v1839_v30, 2 }
 0x3ac   :  { %v1841_v58 = vadd.f32 %v1840_v56, %v1839_v30  ;;  %v1787_v30 = vperm.slane %v4306_v37, 6 }
 0x3ae   :  { %v1842_v20 = vrot.slane %v1841_v58, 1 }
 0x3b0   :  { %v1843_v15 = vadd.f32 %v1842_v20, %v1841_v58 }
 0x3b2   :  { %v1844_v2 = vadd.f32 %v1843_v15, %v1837_v8 }
 0x3b6   :  { %v1727_v54 = vpop.permute.xlu0 %1726 }
 0x3b7   :  { %v1730_v44 = vsel %vm1729_vm1, %v1727_v54, 0.0 }
 0x3b8   :  { %v1731_v29 = vadd.f32 %v1730_v44, %v4281_v24 }
 0x3ba   :  { %1734 = vrot.lane.b32.xlu0 %v1731_v29, %s3477_s23 }
 0x3c2   :  { %1846 = vrot.lane.b32.xlu0 %v1844_v2, %s3476_s18 }
 0x42c   :  { %v1735_v39 = vpop.permute.xlu0 %1734 }
 0x42d   :  { %v1738_v24 = vsel %vm1737_vm2, 0.0, %v1735_v39 }
 0x42e   :  { %v1739_v31 = vsel %vm4333_vm3, %v1738_v24, %v1731_v29 }
 0x42f   :  { %v1740_v35 = vmul.f32 0.03125, %v1739_v31 }
 0x431   :  { %v1741_v12 = vperm.slane %v1740_v35, 0 }
 0x433   :  { %v1742_v50 = vsub.f32 %v4270_v18, %v1741_v12  ;;  %v1743_v21 = vsub.f32 %v4275_v9, %v1741_v12 }
 0x434   :  { %v1847_v32 = vpop.permute.xlu0 %1846 }
 0x435   :  { %v1744_v16 = vmul.f32 %v1742_v50, %v1742_v50  ;;  %v1751_v52 = vmul.f32 %v1743_v21, %v1743_v21  ;;  %v1849_v1 = vsel %vm1729_vm1, %v1847_v32, 0.0 }
 0x436   :  { %v4346_v17 = vadd.f32 %v1849_v1, %v1844_v2 }
 0x437   :  { %v1745_v34 = vrot.slane %v1744_v16, 4  ;;  %v1752_v25 = vrot.slane %v1751_v52, 4 }
 0x439   :  { %v1746_v47 = vadd.f32 %v1745_v34, %v1744_v16  ;;  %v1753_v28 = vadd.f32 %v1752_v25, %v1751_v52 }
 0x43b   :  { %v1747_v48 = vrot.slane %v1746_v47, 2  ;;  %v1754_v43 = vrot.slane %v1753_v28, 2 }
 0x43d   :  { %v1748_v4 = vadd.f32 %v1747_v48, %v1746_v47  ;;  %v1755_v59 = vadd.f32 %v1754_v43, %v1753_v28 }
 0x43f   :  { %v1749_v53 = vrot.slane %v1748_v4, 1  ;;  %v1756_v0 = vrot.slane %v1755_v59, 1 }
 0x441   :  { %v1750_v63 = vadd.f32 %v1749_v53, %v1748_v4  ;;  %v1757_v46 = vadd.f32 %v1756_v0, %v1755_v59  ;;  %v1950_v59 = vld [vmem:[%s5024_s4 + $0x8] sm:$0xff]  ;;  %v1949_v0 = vld [vmem:[%s5024_s4] sm:$0xff] }
 0x442   :  { %v2046_v53 = vand.u32 4294901760, %v1950_v59 }
 0x443   :  { %v1758_v40 = vadd.f32 %v1757_v46, %v1750_v63  ;;  %v2048_v46 = vand.u32 4294901760, %v1949_v0 }
 0x444   :  { %v2194_v63 = vsub.f32 %v1950_v59, %v2046_v53  ;;  %2047 = vmatpush.msrb.mxu0 %v2046_v53  ;;  %2588 = vmatpush.msra.mxu3 %v2046_v53 }
 0x445   :  { %1760 = vrot.lane.b32.xlu1 %v1758_v40, %s3476_s18 }
 0x446   :  { %2049 = vmatpush.msrb.mxu0 %v2048_v46  ;;  %2590 = vmatpush.msra.mxu3 %v2048_v46 }
 0x448   :  { %2286 = vmatpush.msra.mxu0 %v2194_v63 }
 0x4b7   :  { %v1761_v18 = vpop.permute.xlu1 %1760 }
 0x4b8   :  { %v1763_v9 = vsel %vm1729_vm1, %v1761_v18, 0.0  ;;  %v2200_v18 = vsub.f32 %v1949_v0, %v2048_v46 }
 0x4b9   :  { %v1764_v22 = vadd.f32 %v1763_v9, %v1758_v40  ;;  %v2195_v40 = vand.u32 4294901760, %v2194_v63 }
 0x4ba   :  { %2289 = vmatpush.msra.mxu0 %v2200_v18 }
 0x4bb   :  { %1766 = vrot.lane.b32.xlu1 %v1764_v22, %s3477_s23  ;;  %v2196_v9 = vsub.f32 %v2194_v63, %v2195_v40  ;;  %2503 = vmatpush.msra.mxu2 %v2195_v40 }
 0x4bd   :  { %v2197_v32 = vand.u32 4294901760, %v2196_v9 }
 0x4bf   :  { %2198 = vmatpush.msrb.mxu1 %v2197_v32 }
 0x4c3   :  { %1852 = vrot.lane.b32.xlu1 %v4346_v17, %s3477_s23 }
 0x52d   :  { %v1767_v19 = vpop.permute.xlu1 %1766 }
 0x52e   :  { %v1769_v51 = vsel %vm1737_vm2, 0.0, %v1767_v19 }
 0x52f   :  { %v1770_v14 = vsel %vm4333_vm3, %v1769_v51, %v1764_v22  ;;  %v2201_v22 = vand.u32 4294901760, %v2200_v18 }
 0x530   :  { %v1771_v49 = vmul.f32 0.03125, %v1770_v14 }
 0x531   :  { %v2202_v1 = vsub.f32 %v2200_v18, %v2201_v22  ;;  %2507 = vmatpush.msra.mxu2 %v2201_v22 }
 0x532   :  { %v1772_v33 = vadd.f32 1e-05, %v1771_v49 }
 0x533   :  { %v2203_v19 = vand.u32 4294901760, %v2202_v1 }
 0x534   :  { %3430 = vrsqrt.f32 %v1772_v33  ;;  %vm1779_vm5 = vweird.f32 %v1772_v33 }
 0x535   :  { %2204 = vmatpush.msrb.mxu1 %v2203_v19 }
 0x537   :  { %2386 = vmatpush.msra.mxu1 %v2046_v53 }
 0x539   :  { %2388 = vmatpush.msra.mxu1 %v2048_v46 }
 0x53a   :  { %v3431_v42 = vpop.eup %3430 }
 0x53b   :  { %v1774_v23 = vmul.f32 %v3431_v42, %v1772_v33  ;;  %vm1780_vm4 = vweird.f32 %v3431_v42 }
 0x53c   :  { %vm1781_vm6 = vmor %vm1779_vm5, %vm1780_vm4 }
 0x53d   :  { %v1775_v57 = vmul.f32 %v3431_v42, %v1774_v23 }
 0x53f   :  { %v1776_v3 = vmul.f32 0.5, %v1775_v57 }
 0x541   :  { %v1777_v61 = vsub.f32 1.5, %v1776_v3 }
 0x543   :  { %v1778_v36 = vmul.f32 %v3431_v42, %v1777_v61 }
 0x545   :  { %v1782_v26 = vsel %vm1781_vm6, %v3431_v42, %v1778_v36 }
 0x546   :  { %v1783_v11 = vperm.slane %v1782_v26, 0 }
 0x548   :  { %v1784_v56 = vmul.f32 %v1783_v11, %v1742_v50  ;;  %v1808_v62 = vmul.f32 %v1783_v11, %v1743_v21 }
 0x54a   :  { %v1786_v58 = vmul.f32 %v1785_v6, %v1784_v56  ;;  %v1810_v54 = vmul.f32 %v1809_v7, %v1808_v62 }
 0x54c   :  { %v1788_v38 = vadd.f32 %v1787_v30, %v1786_v58  ;;  %v1812_v44 = vadd.f32 %v1811_v60, %v1810_v54  ;;  %v1853_v58 = vpop.permute.xlu1 %1852 }
 0x54e   :  { %v3412_v29 = vmul.f32 -1.442695, %v1788_v38  ;;  %v3413_v20 = vmul.f32 -1.442695, %v1812_v44  ;;  %v1855_v38 = vsel %vm1737_vm2, 0.0, %v1853_v58 }
 0x550   :  { %3432 = vpow2.f32 %v3412_v29 }
 0x551   :  { %3434 = vpow2.f32 %v3413_v20 }
 0x556   :  { %v3433_v41 = vpop.eup %3432 }
 0x557   :  { %v3435_v15 = vpop.eup %3434  ;;  %v1792_v8 = vadd.f32 1.0, %v3433_v41 }
 0x558   :  { %v1816_v2 = vadd.f32 1.0, %v3435_v15 }
 0x559   :  { %3436 = vrcp.f32 %v1792_v8  ;;  %v1804_v24 = vand.u32 2147483648, %v1792_v8  ;;  %v1802_v12 = vand.u32 2147483647, %v1792_v8  ;;  %vm1798_vm8 = vweird.f32 %v1792_v8 }
 0x55a   :  { %3438 = vrcp.f32 %v1816_v2  ;;  %v1828_v47 = vand.u32 2147483648, %v1816_v2  ;;  %vm1822_vm12 = vweird.f32 %v1816_v2  ;;  %v1826_v28 = vand.u32 2147483647, %v1816_v2 }
 0x55b   :  { %v1805_v16 = vor.u32 1.1754944e-38, %v1804_v24  ;;  %vm1803_vm10 = vcmp.eq.f32.partialorder %v1802_v12, 8.507059e+37 }
 0x55c   :  { %v1829_v43 = vor.u32 1.1754944e-38, %v1828_v47  ;;  %vm1827_vm14 = vcmp.eq.f32.partialorder %v1826_v28, 8.507059e+37 }
 0x55f   :  { %v3437_v45 = vpop.eup %3436 }
 0x560   :  { %v3439_v55 = vpop.eup %3438  ;;  %v1794_v10 = vmul.f32 %v3437_v45, %v1792_v8  ;;  %vm1799_vm7 = vweird.f32 %v3437_v45  ;;  %v1856_v8 = vsel %vm4333_vm3, %v1855_v38, %v4346_v17 }
 0x561   :  { %v1818_v37 = vmul.f32 %v3439_v55, %v1816_v2  ;;  %vm1800_vm9 = vmor %vm1798_vm8, %vm1799_vm7  ;;  %vm1823_vm11 = vweird.f32 %v3439_v55 }
 0x562   :  { %v1795_v39 = vsub.f32 1.0, %v1794_v10  ;;  %vm1824_vm13 = vmor %vm1822_vm12, %vm1823_vm11 }
 0x563   :  { %v1819_v31 = vsub.f32 1.0, %v1818_v37 }
 0x564   :  { %v1796_v35 = vmul.f32 %v3437_v45, %v1795_v39 }
 0x565   :  { %v1820_v21 = vmul.f32 %v3439_v55, %v1819_v31 }
 0x566   :  { %v1797_v50 = vadd.f32 %v3437_v45, %v1796_v35 }
 0x567   :  { %v1821_v25 = vadd.f32 %v3439_v55, %v1820_v21 }
 0x568   :  { %v1801_v52 = vsel %vm1800_vm9, %v3437_v45, %v1797_v50  ;;  %v1857_v45 = vmul.f32 0.03125, %v1856_v8 }
 0x569   :  { %v1806_v34 = vsel %vm1803_vm10, %v1805_v16, %v1801_v52  ;;  %v1825_v48 = vsel %vm1824_vm13, %v3439_v55, %v1821_v25 }
 0x56a   :  { %1951 = vxpose.xlu2.b32.start [1/2] (short) %v1806_v34, 128  ;;  %v1830_v4 = vsel %vm1827_vm14, %v1829_v43, %v1825_v48  ;;  %v1858_v24 = vperm.slane %v1857_v45, 0 }
 0x56c   :  { %v4399_v12 = vsub.f32 %v4319_v5, %v1858_v24  ;;  %v4402_v50 = vsub.f32 %v4323_v27, %v1858_v24 }
 0x56e   :  { %v1861_v25 = vmul.f32 %v4399_v12, %v4399_v12  ;;  %v1868_v47 = vmul.f32 %v4402_v50, %v4402_v50 }
 0x570   :  { %v1862_v27 = vrot.slane %v1861_v25, 4  ;;  %v1869_v43 = vrot.slane %v1868_v47, 4 }
 0x572   :  { %1952 = vxpose.xlu2.b32.end [2/2] (short) %v1830_v4, 128  ;;  %v1863_v63 = vadd.f32 %v1862_v27, %v1861_v25  ;;  %v1870_v46 = vadd.f32 %v1869_v43, %v1868_v47 }
 0x574   :  { %v1864_v32 = vrot.slane %v1863_v63, 2  ;;  %v1871_v1 = vrot.slane %v1870_v46, 2 }
 0x603   :  { %v1967_v51 = vpop.trf.xlu2 }
 0x604   :  { %v1985_v14 = vsel %vm1983_vm15, %v1967_v51, 0 }
 0x605   :  { %v2050_v49 = vand.u32 4294901760, %v1985_v14 }
 0x607   :  { %v4364_v33 = vsub.f32 %v1985_v14, %v2050_v49  ;;  %2206 = vmatmul.f32.vlgmr.msrb.gmra.mxu1 %v2050_v49  ;;  %2509 = vmatmul.f32.vlgmr.msra.gmra.mxu2 %v2050_v49 }
 0x608   :  { %2592 = vmatmul.f32.vlgmr.msra.gmra.mxu3 %v2050_v49 }
 0x609   :  { %v2052_v42 = vand.u32 4294901760, %v4364_v33 }
 0x60b   :  { %v2053_v23 = vsub.f32 %v4364_v33, %v2052_v42  ;;  %v1968_v57 = vpop.trf.xlu2 }
 0x60c   :  { %v1988_v3 = vsel %vm1983_vm15, %v1968_v57, 0  ;;  %v1865_v57 = vadd.f32 %v1864_v32, %v1863_v63 }
 0x60d   :  { %v2054_v61 = vand.u32 4294901760, %v2053_v23  ;;  %v2058_v36 = vand.u32 4294901760, %v1988_v3 }
 0x60f   :  { %v4371_v26 = vsub.f32 %v1988_v3, %v2058_v36  ;;  %2055 = vmatmul.f32.vlgmr.msrb.gmra.mxu0 %v2054_v61  ;;  %2210 = vmatmul.f32.gmra.mxu1 %v2058_v36  ;;  %v1872_v3 = vadd.f32 %v1871_v1, %v1870_v46 }
 0x610   :  { %2513 = vmatmul.f32.gmra.mxu2 %v2058_v36  ;;  %2596 = vmatmul.f32.gmra.mxu3 %v2058_v36 }
 0x611   :  { %v2060_v6 = vand.u32 4294901760, %v4371_v26 }
 0x613   :  { %v1969_v7 = vpop.trf.xlu2  ;;  %v2061_v11 = vsub.f32 %v4371_v26, %v2060_v6 }
 0x614   :  { %v1991_v30 = vsel %vm1983_vm15, %v1969_v7, 0  ;;  %v1866_v7 = vrot.slane %v1865_v57, 1 }
 0x615   :  { %v2066_v60 = vand.u32 4294901760, %v1991_v30  ;;  %v2062_v56 = vand.u32 4294901760, %v2061_v11  ;;  %v1873_v11 = vrot.slane %v1872_v3, 1 }
 0x617   :  { %v4378_v62 = vsub.f32 %v1991_v30, %v2066_v60  ;;  %2063 = vmatmul.f32.gmra.mxu0 %v2062_v56  ;;  %2214 = vmatmul.f32.gmra.mxu1 %v2066_v60 }
 0x618   :  { %2517 = vmatmul.f32.gmra.mxu2 %v2066_v60  ;;  %2600 = vmatmul.f32.gmra.mxu3 %v2066_v60 }
 0x619   :  { %v2068_v54 = vand.u32 4294901760, %v4378_v62 }
 0x61b   :  { %v1970_v44 = vpop.trf.xlu2  ;;  %v2069_v29 = vsub.f32 %v4378_v62, %v2068_v54 }
 0x61c   :  { %v1994_v20 = vsel %vm1983_vm15, %v1970_v44, 0  ;;  %v1867_v44 = vadd.f32 %v1866_v7, %v1865_v57 }
 0x61d   :  { %v2074_v41 = vand.u32 4294901760, %v1994_v20  ;;  %v2070_v15 = vand.u32 4294901760, %v2069_v29  ;;  %v1874_v29 = vadd.f32 %v1873_v11, %v1872_v3 }
 0x61f   :  { %v4389_v2 = vsub.f32 %v1994_v20, %v2074_v41  ;;  %2071 = vmatmul.f32.gmra.mxu0 %v2070_v15  ;;  %2218 = vmatmul.f32.gmra.mxu1 %v2074_v41  ;;  %v4437_v15 = vadd.f32 %v1874_v29, %v1867_v44 }
 0x620   :  { %2521 = vmatmul.f32.gmra.mxu2 %v2074_v41  ;;  %2604 = vmatmul.f32.gmra.mxu3 %v2074_v41 }
 0x621   :  { %v2076_v55 = vand.u32 4294901760, %v4389_v2 }
 0x623   :  { %v1971_v10 = vpop.trf.xlu2  ;;  %v2077_v37 = vsub.f32 %v4389_v2, %v2076_v55 }
 0x624   :  { %v1997_v39 = vsel %vm1983_vm15, %v1971_v10, 0 }
 0x625   :  { %v2082_v31 = vand.u32 4294901760, %v1997_v39  ;;  %v2078_v35 = vand.u32 4294901760, %v2077_v37 }
 0x627   :  { %v4396_v17 = vsub.f32 %v1997_v39, %v2082_v31  ;;  %2079 = vmatmul.f32.gmra.mxu0 %v2078_v35  ;;  %2222 = vmatmul.f32.gmra.mxu1 %v2082_v31 }
 0x628   :  { %2525 = vmatmul.f32.gmra.mxu2 %v2082_v31  ;;  %2608 = vmatmul.f32.gmra.mxu3 %v2082_v31 }
 0x629   :  { %v2084_v21 = vand.u32 4294901760, %v4396_v17 }
 0x62b   :  { %v1972_v16 = vpop.trf.xlu2  ;;  %v2085_v52 = vsub.f32 %v4396_v17, %v2084_v21 }
 0x62c   :  { %v2000_v34 = vsel %vm1983_vm15, %v1972_v16, 0 }
 0x62d   :  { %v2090_v5 = vand.u32 4294901760, %v2000_v34  ;;  %v2086_v28 = vand.u32 4294901760, %v2085_v52 }
 0x62f   :  { %v4413_v48 = vsub.f32 %v2000_v34, %v2090_v5  ;;  %2087 = vmatmul.f32.gmra.mxu0 %v2086_v28  ;;  %2226 = vmatmul.f32.gmra.mxu1 %v2090_v5 }
 0x630   :  { %2529 = vmatmul.f32.gmra.mxu2 %v2090_v5  ;;  %2612 = vmatmul.f32.gmra.mxu3 %v2090_v5 }
 0x631   :  { %v2092_v4 = vand.u32 4294901760, %v4413_v48 }
 0x633   :  { %v1973_v59 = vpop.trf.xlu2  ;;  %v2093_v53 = vsub.f32 %v4413_v48, %v2092_v4 }
 0x634   :  { %v2003_v0 = vsel %vm1983_vm15, %v1973_v59, 0 }
 0x635   :  { %v2098_v40 = vand.u32 4294901760, %v2003_v0  ;;  %v2094_v18 = vand.u32 4294901760, %v2093_v53 }
 0x637   :  { %v4420_v9 = vsub.f32 %v2003_v0, %v2098_v40  ;;  %2095 = vmatmul.f32.gmra.mxu0 %v2094_v18  ;;  %2230 = vmatmul.f32.gmra.mxu1 %v2098_v40 }
 0x638   :  { %2533 = vmatmul.f32.gmra.mxu2 %v2098_v40  ;;  %2616 = vmatmul.f32.gmra.mxu3 %v2098_v40 }
 0x639   :  { %v2100_v22 = vand.u32 4294901760, %v4420_v9 }
 0x63b   :  { %v1974_v19 = vpop.trf.xlu2  ;;  %v2101_v51 = vsub.f32 %v4420_v9, %v2100_v22 }
 0x63c   :  { %v2006_v14 = vsel %vm1983_vm15, %v1974_v19, 0 }
 0x63d   :  { %v2106_v49 = vand.u32 4294901760, %v2006_v14  ;;  %v2102_v23 = vand.u32 4294901760, %v2101_v51 }
 0x63f   :  { %v4427_v61 = vsub.f32 %v2006_v14, %v2106_v49  ;;  %2103 = vmatmul.f32.gmra.mxu0 %v2102_v23  ;;  %2234 = vmatmul.f32.gmra.mxu1 %v2106_v49 }
 0x640   :  { %2537 = vmatmul.f32.gmra.mxu2 %v2106_v49  ;;  %2620 = vmatmul.f32.gmra.mxu3 %v2106_v49 }
 0x641   :  { %v2108_v36 = vand.u32 4294901760, %v4427_v61 }
 0x643   :  { %v1975_v30 = vpop.trf.xlu2  ;;  %v2109_v60 = vsub.f32 %v4427_v61, %v2108_v36 }
 0x644   :  { %v2009_v56 = vsel %vm1983_vm15, %v1975_v30, 0 }
 0x645   :  { %v2114_v58 = vand.u32 4294901760, %v2009_v56  ;;  %v2110_v38 = vand.u32 4294901760, %v2109_v60 }
 0x647   :  { %v4434_v20 = vsub.f32 %v2009_v56, %v2114_v58  ;;  %2111 = vmatmul.f32.gmra.mxu0 %v2110_v38  ;;  %2238 = vmatmul.f32.gmra.mxu1 %v2114_v58 }
 0x648   :  { %2541 = vmatmul.f32.gmra.mxu2 %v2114_v58  ;;  %2624 = vmatmul.f32.gmra.mxu3 %v2114_v58 }
 0x649   :  { %v2116_v41 = vand.u32 4294901760, %v4434_v20 }
 0x64b   :  { %v1976_v8 = vpop.trf.xlu2  ;;  %1877 = vrot.lane.b32.xlu2 %v4437_v15, %s3476_s18  ;;  %v2117_v45 = vsub.f32 %v4434_v20, %v2116_v41 }
 0x64c   :  { %v2012_v10 = vsel %vm1983_vm15, %v1976_v8, 0 }
 0x64d   :  { %v2122_v37 = vand.u32 4294901760, %v2012_v10  ;;  %v2118_v39 = vand.u32 4294901760, %v2117_v45 }
 0x64f   :  { %v4445_v24 = vsub.f32 %v2012_v10, %v2122_v37  ;;  %2119 = vmatmul.f32.gmra.mxu0 %v2118_v39  ;;  %2242 = vmatmul.f32.gmra.mxu1 %v2122_v37 }
 0x650   :  { %2545 = vmatmul.f32.gmra.mxu2 %v2122_v37  ;;  %2628 = vmatmul.f32.gmra.mxu3 %v2122_v37 }
 0x651   :  { %v2124_v31 = vand.u32 4294901760, %v4445_v24 }
 0x653   :  { %v1977_v35 = vpop.trf.xlu2  ;;  %v2125_v16 = vsub.f32 %v4445_v24, %v2124_v31 }
 0x654   :  { %v2015_v52 = vsel %vm1983_vm15, %v1977_v35, 0 }
 0x655   :  { %v2130_v34 = vand.u32 4294901760, %v2015_v52  ;;  %v2126_v25 = vand.u32 4294901760, %v2125_v16 }
 0x657   :  { %v4452_v47 = vsub.f32 %v2015_v52, %v2130_v34  ;;  %2127 = vmatmul.f32.gmra.mxu0 %v2126_v25  ;;  %2246 = vmatmul.f32.gmra.mxu1 %v2130_v34 }
 0x658   :  { %2549 = vmatmul.f32.gmra.mxu2 %v2130_v34  ;;  %2632 = vmatmul.f32.gmra.mxu3 %v2130_v34 }
 0x659   :  { %v2132_v5 = vand.u32 4294901760, %v4452_v47 }
 0x65b   :  { %v1978_v28 = vpop.trf.xlu2  ;;  %v2133_v27 = vsub.f32 %v4452_v47, %v2132_v5 }
 0x65c   :  { %v2018_v43 = vsel %vm1983_vm15, %v1978_v28, 0 }
 0x65d   :  { %v2138_v59 = vand.u32 4294901760, %v2018_v43  ;;  %v2134_v53 = vand.u32 4294901760, %v2133_v27 }
 0x65f   :  { %v4459_v0 = vsub.f32 %v2018_v43, %v2138_v59  ;;  %2135 = vmatmul.f32.gmra.mxu0 %v2134_v53  ;;  %2250 = vmatmul.f32.gmra.mxu1 %v2138_v59 }
 0x660   :  { %2553 = vmatmul.f32.gmra.mxu2 %v2138_v59  ;;  %2636 = vmatmul.f32.gmra.mxu3 %v2138_v59 }
 0x661   :  { %v2140_v63 = vand.u32 4294901760, %v4459_v0 }
 0x663   :  { %v1979_v46 = vpop.trf.xlu2  ;;  %v2141_v40 = vsub.f32 %v4459_v0, %v2140_v63 }
 0x664   :  { %v2021_v18 = vsel %vm1983_vm15, %v1979_v46, 0 }
 0x665   :  { %v2146_v32 = vand.u32 4294901760, %v2021_v18  ;;  %v2142_v1 = vand.u32 4294901760, %v2141_v40 }
 0x667   :  { %v4466_v19 = vsub.f32 %v2021_v18, %v2146_v32  ;;  %2143 = vmatmul.f32.gmra.mxu0 %v2142_v1  ;;  %2254 = vmatmul.f32.gmra.mxu1 %v2146_v32 }
 0x668   :  { %2557 = vmatmul.f32.gmra.mxu2 %v2146_v32  ;;  %2640 = vmatmul.f32.gmra.mxu3 %v2146_v32 }
 0x669   :  { %v2148_v51 = vand.u32 4294901760, %v4466_v19 }
 0x66b   :  { %v1980_v14 = vpop.trf.xlu2  ;;  %v2149_v49 = vsub.f32 %v4466_v19, %v2148_v51 }
 0x66c   :  { %v2024_v23 = vsel %vm1983_vm15, %v1980_v14, 0 }
 0x66d   :  { %v2154_v57 = vand.u32 4294901760, %v2024_v23  ;;  %v2150_v3 = vand.u32 4294901760, %v2149_v49 }
 0x66f   :  { %v4473_v7 = vsub.f32 %v2024_v23, %v2154_v57  ;;  %2151 = vmatmul.f32.gmra.mxu0 %v2150_v3  ;;  %2258 = vmatmul.f32.gmra.mxu1 %v2154_v57 }
 0x670   :  { %2561 = vmatmul.f32.gmra.mxu2 %v2154_v57  ;;  %2644 = vmatmul.f32.gmra.mxu3 %v2154_v57 }
 0x671   :  { %v2156_v11 = vand.u32 4294901760, %v4473_v7 }
 0x673   :  { %v1981_v30 = vpop.trf.xlu2  ;;  %v2157_v60 = vsub.f32 %v4473_v7, %v2156_v11 }
 0x674   :  { %v2027_v56 = vsel %vm1983_vm15, %v1981_v30, 0 }
 0x675   :  { %v2162_v58 = vand.u32 4294901760, %v2027_v56  ;;  %v2158_v38 = vand.u32 4294901760, %v2157_v60 }
 0x677   :  { %v4480_v44 = vsub.f32 %v2027_v56, %v2162_v58  ;;  %2159 = vmatmul.f32.gmra.mxu0 %v2158_v38  ;;  %2262 = vmatmul.f32.gmra.mxu1 %v2162_v58 }
 0x678   :  { %2565 = vmatmul.f32.gmra.mxu2 %v2162_v58  ;;  %2648 = vmatmul.f32.gmra.mxu3 %v2162_v58 }
 0x679   :  { %v2164_v29 = vand.u32 4294901760, %v4480_v44 }
 0x67b   :  { %v1982_v8 = vpop.trf.xlu2  ;;  %v2165_v45 = vsub.f32 %v4480_v44, %v2164_v29 }
 0x67c   :  { %v2030_v10 = vsel %vm1983_vm15, %v1982_v8, 0 }
 0x67d   :  { %v2170_v37 = vand.u32 4294901760, %v2030_v10  ;;  %v2166_v39 = vand.u32 4294901760, %v2165_v45 }
 0x67f   :  { %v2171_v35 = vsub.f32 %v2030_v10, %v2170_v37  ;;  %2167 = vmatmul.f32.gmra.mxu0 %v2166_v39  ;;  %2266 = vmatmul.f32.gmra.mxu1 %v2170_v37 }
 0x680   :  { %2569 = vmatmul.f32.gmra.mxu2 %v2170_v37  ;;  %2652 = vmatmul.f32.gmra.mxu3 %v2170_v37 }
 0x681   :  { %v2172_v16 = vand.u32 4294901760, %v2171_v35 }
 0x683   :  { %v2173_v52 = vsub.f32 %v2171_v35, %v2172_v16 }
 0x685   :  { %v2174_v34 = vand.u32 4294901760, %v2173_v52 }
 0x687   :  { %2175 = vmatmul.f32.gmra.mxu0 %v2174_v34  ;;  %2392 = vmatmul.f32.vlgmr.msra.gmra.mxu1 %v2052_v42 }
 0x68f   :  { %2292 = vmatmul.f32.vlgmr.msra.gmra.mxu0 %v4364_v33  ;;  %2398 = vmatmul.f32.gmra.mxu1 %v2060_v6  ;;  %v4508_v33 = vpop.f32.mrf.mxu1 }
 0x697   :  { %2297 = vmatmul.f32.gmra.mxu0 %v4371_v26  ;;  %2404 = vmatmul.f32.gmra.mxu1 %v2068_v54  ;;  %v4513_v26 = vpop.f32.mrf.mxu0  ;;  %v4515_v6 = vpop.f32.mrf.mxu1 }
 0x69f   :  { %2302 = vmatmul.f32.gmra.mxu0 %v4378_v62  ;;  %2410 = vmatmul.f32.gmra.mxu1 %v2076_v55  ;;  %v4520_v62 = vpop.f32.mrf.mxu0  ;;  %v4522_v54 = vpop.f32.mrf.mxu1 }
 0x6a5   :  { %v1878_v25 = vpop.permute.xlu2 %1877 }
 0x6a6   :  { %v1880_v28 = vsel %vm1729_vm1, %v1878_v25, 0.0 }
 0x6a7   :  { %v1881_v42 = vadd.f32 %v1880_v28, %v4437_v15  ;;  %2307 = vmatmul.f32.gmra.mxu0 %v4389_v2  ;;  %2416 = vmatmul.f32.gmra.mxu1 %v2084_v21  ;;  %v4527_v2 = vpop.f32.mrf.mxu0  ;;  %v4529_v55 = vpop.f32.mrf.mxu1 }
 0x6a9   :  { %1883 = vrot.lane.b32.xlu0 %v1881_v42, %s3477_s23 }
 0x6af   :  { %2312 = vmatmul.f32.gmra.mxu0 %v4396_v17  ;;  %2422 = vmatmul.f32.gmra.mxu1 %v2092_v4  ;;  %v4534_v17 = vpop.f32.mrf.mxu0  ;;  %v4539_v21 = vpop.f32.mrf.mxu1 }
 0x6b7   :  { %2317 = vmatmul.f32.gmra.mxu0 %v4413_v48  ;;  %2428 = vmatmul.f32.gmra.mxu1 %v2100_v22  ;;  %v4544_v48 = vpop.f32.mrf.mxu0  ;;  %v4546_v4 = vpop.f32.mrf.mxu1 }
 0x6bf   :  { %2322 = vmatmul.f32.gmra.mxu0 %v4420_v9  ;;  %2434 = vmatmul.f32.gmra.mxu1 %v2108_v36  ;;  %v4551_v9 = vpop.f32.mrf.mxu0  ;;  %v4553_v22 = vpop.f32.mrf.mxu1 }
 0x6c0   :  { %5029 = vst [vmem:[#allocation5_spill] sm:$0xff] %v4553_v22 }
 0x6c7   :  { %2327 = vmatmul.f32.gmra.mxu0 %v4427_v61  ;;  %2440 = vmatmul.f32.gmra.mxu1 %v2116_v41  ;;  %v4556_v61 = vpop.f32.mrf.mxu0  ;;  %v4558_v36 = vpop.f32.mrf.mxu1 }
 0x6c8   :  { %5030 = vst [vmem:[#allocation6_spill] sm:$0xff] %v4556_v61 }
 0x6c9   :  { %5031 = vst [vmem:[#allocation7_spill] sm:$0xff] %v4558_v36 }
 0x6cf   :  { %2332 = vmatmul.f32.gmra.mxu0 %v4434_v20  ;;  %2446 = vmatmul.f32.gmra.mxu1 %v2124_v31  ;;  %v4561_v20 = vpop.f32.mrf.mxu0 }
 0x6d0   :  { %5032 = vst [vmem:[#allocation8_spill] sm:$0xff] %v4561_v20 }
 0x6d7   :  { %2337 = vmatmul.f32.gmra.mxu0 %v4445_v24  ;;  %2452 = vmatmul.f32.gmra.mxu1 %v2132_v5 }
 0x6df   :  { %2342 = vmatmul.f32.gmra.mxu0 %v4452_v47  ;;  %2458 = vmatmul.f32.gmra.mxu1 %v2140_v63 }
 0x6e7   :  { %2347 = vmatmul.f32.gmra.mxu0 %v4459_v0  ;;  %2464 = vmatmul.f32.gmra.mxu1 %v2148_v51  ;;  %v44_v0 = vld [vmem:[%s5021_s1 + $0x20] sm:$0xf] }
 0x6e8   :  { %v1902_v40 = vperm.slane %v44_v0, 0  ;;  %v1926_v13 = vperm.slane %v44_v0, 1  ;;  %v1904_v32 = vperm.slane %v44_v0, 2  ;;  %v1928_v1 = vperm.slane %v44_v0, 3 }
 0x6ef   :  { %2352 = vmatmul.f32.gmra.mxu0 %v4466_v19  ;;  %2470 = vmatmul.f32.gmra.mxu1 %v2156_v11 }
 0x6f7   :  { %2357 = vmatmul.f32.gmra.mxu0 %v4473_v7  ;;  %2476 = vmatmul.f32.gmra.mxu1 %v2164_v29 }
 0x6ff   :  { %2362 = vmatmul.f32.gmra.mxu0 %v4480_v44  ;;  %2482 = vmatmul.f32.gmra.mxu1 %v2172_v16 }
 0x707   :  { %2367 = vmatmul.f32.gmra.mxu0 %v2171_v35 }
 0x71b   :  { %v1884_v41 = vpop.permute.xlu0 %1883 }
 0x71c   :  { %v1886_v15 = vsel %vm1737_vm2, 0.0, %v1884_v41 }
 0x71d   :  { %v1887_v24 = vsel %vm4333_vm3, %v1886_v15, %v1881_v42 }
 0x71e   :  { %v1888_v31 = vmul.f32 0.03125, %v1887_v24  ;;  %v2657_v24 = vld [vmem:[%s5025_s5 + $0x8] sm:$0xff] }
 0x720   :  { %v1889_v47 = vadd.f32 1e-05, %v1888_v31  ;;  %v2656_v31 = vld [vmem:[%s5025_s5] sm:$0xff]  ;;  %s3478_s5 = smov [#allocation2]  }
 0x721   :  { %s3398_s7 = sshll.u32 %s3478_s5, 4  ;;  %s3399_s7 = int_to_ptr.vmem [resolvable:$true] %s3398_s7 }
 0x722   :  { %3440 = vrsqrt.f32 %v1889_v47  ;;  %vm1896_vm1 = vweird.f32 %v1889_v47 }
 0x728   :  { %v3441_v5 = vpop.eup %3440 }
 0x729   :  { %v1891_v27 = vmul.f32 %v3441_v5, %v1889_v47  ;;  %vm1897_vm0 = vweird.f32 %v3441_v5  ;;  %v2752_v47 = vand.u32 4294901760, %v2657_v24 }
 0x72a   :  { %vm1898_vm4 = vmor %vm1896_vm1, %vm1897_vm0 }
 0x72b   :  { %v1892_v43 = vmul.f32 %v3441_v5, %v1891_v27  ;;  %2753 = vmatpush.msrb.mxu0 %v2752_v47  ;;  %v2900_v27 = vsub.f32 %v2657_v24, %v2752_v47  ;;  %3092 = vmatpush.msrb.mxu3 %v2752_v47 }
 0x72d   :  { %v1893_v59 = vmul.f32 0.5, %v1892_v43  ;;  %2992 = vmatpush.msrb.mxu2 %v2900_v27 }
 0x72f   :  { %v1894_v53 = vsub.f32 1.5, %v1893_v59  ;;  %v2901_v59 = vand.u32 4294901760, %v2900_v27 }
 0x731   :  { %v1895_v63 = vmul.f32 %v3441_v5, %v1894_v53  ;;  %v2902_v0 = vsub.f32 %v2900_v27, %v2901_v59 }
 0x733   :  { %v1899_v46 = vsel %vm1898_vm4, %v3441_v5, %v1895_v63  ;;  %v2754_v5 = vand.u32 4294901760, %v2656_v31 }
 0x734   :  { %v1900_v18 = vperm.slane %v1899_v46, 0  ;;  %v2903_v46 = vand.u32 4294901760, %v2902_v0 }
 0x735   :  { %v2906_v43 = vsub.f32 %v2656_v31, %v2754_v5  ;;  %2755 = vmatpush.msrb.mxu0 %v2754_v5  ;;  %3094 = vmatpush.msrb.mxu3 %v2754_v5 }
 0x736   :  { %v1901_v19 = vmul.f32 %v1900_v18, %v4399_v12  ;;  %v1925_v51 = vmul.f32 %v1900_v18, %v4402_v50  ;;  %2904 = vmatpush.msrb.mxu1 %v2903_v46  ;;  %v4579_v18 = vpop.f32.mrf.mxu0 }
 0x737   :  { %v2907_v53 = vand.u32 4294901760, %v2906_v43  ;;  %2995 = vmatpush.msrb.mxu2 %v2906_v43  ;;  %3209 = vmatpush.msra.mxu0 %v2901_v59  ;;  %5034 = vst [vmem:[#allocation10_spill] sm:$0xff] %v4579_v18 }
 0x738   :  { %v1903_v14 = vmul.f32 %v1902_v40, %v1901_v19  ;;  %v1927_v49 = vmul.f32 %v1926_v13, %v1925_v51  ;;  %v4577_v13 = vpop.f32.mrf.mxu1 }
 0x739   :  { %v2908_v63 = vsub.f32 %v2906_v43, %v2907_v53  ;;  %3213 = vmatpush.msra.mxu0 %v2907_v53  ;;  %5033 = vst [vmem:[#allocation9_spill] sm:$0xff] %v4577_v13 }
 0x73a   :  { %v1905_v23 = vadd.f32 %v1904_v32, %v1903_v14  ;;  %v1929_v57 = vadd.f32 %v1928_v1, %v1927_v49 }
 0x73b   :  { %v2909_v40 = vand.u32 4294901760, %v2908_v63 }
 0x73c   :  { %v3415_v3 = vmul.f32 -1.442695, %v1929_v57  ;;  %v3414_v7 = vmul.f32 -1.442695, %v1905_v23 }
 0x73d   :  { %2910 = vmatpush.msrb.mxu1 %v2909_v40 }
 0x73e   :  { %3442 = vpow2.f32 %v3415_v3  ;;  %v4583_v1 = vpop.f32.mrf.mxu0 }
 0x73f   :  { %3444 = vpow2.f32 %v3414_v7  ;;  %3294 = vmatpush.msra.mxu1 %v2752_v47  ;;  %5036 = vst [vmem:[#allocation12_spill] sm:$0xff] %v4583_v1 }
 0x740   :  { %v4581_v32 = vpop.f32.mrf.mxu1 }
 0x741   :  { %3296 = vmatpush.msra.mxu1 %v2754_v5  ;;  %5035 = vst [vmem:[#allocation11_spill] sm:$0xff] %v4581_v32 }
 0x744   :  { %v3443_v11 = vpop.eup %3442 }
 0x745   :  { %v3445_v30 = vpop.eup %3444  ;;  %v1933_v60 = vadd.f32 1.0, %v3443_v11 }
 0x746   :  { %v1909_v56 = vadd.f32 1.0, %v3445_v30  ;;  %v4587_v51 = vpop.f32.mrf.mxu0 }
 0x747   :  { %3446 = vrcp.f32 %v1933_v60  ;;  %v1945_v25 = vand.u32 2147483648, %v1933_v60  ;;  %vm1939_vm8 = vweird.f32 %v1933_v60  ;;  %v1943_v28 = vand.u32 2147483647, %v1933_v60  ;;  %5038 = vst [vmem:[#allocation14_spill] sm:$0xff] %v4587_v51 }
 0x748   :  { %3448 = vrcp.f32 %v1909_v56  ;;  %v1921_v8 = vand.u32 2147483648, %v1909_v56  ;;  %v1919_v10 = vand.u32 2147483647, %v1909_v56  ;;  %vm1915_vm3 = vweird.f32 %v1909_v56  ;;  %v4585_v19 = vpop.f32.mrf.mxu1 }
 0x749   :  { %v1946_v41 = vor.u32 1.1754944e-38, %v1945_v25  ;;  %vm1944_vm10 = vcmp.eq.f32.partialorder %v1943_v28, 8.507059e+37  ;;  %5037 = vst [vmem:[#allocation13_spill] sm:$0xff] %v4585_v19 }
 0x74a   :  { %v1922_v35 = vor.u32 1.1754944e-38, %v1921_v8  ;;  %vm1920_vm6 = vcmp.eq.f32.partialorder %v1919_v10, 8.507059e+37 }
 0x74d   :  { %v3447_v58 = vpop.eup %3446 }
 0x74e   :  { %v3449_v38 = vpop.eup %3448  ;;  %v1935_v44 = vmul.f32 %v3447_v58, %v1933_v60  ;;  %vm1940_vm7 = vweird.f32 %v3447_v58  ;;  %v4591_v49 = vpop.f32.mrf.mxu0 }
 0x74f   :  { %v1911_v12 = vmul.f32 %v3449_v38, %v1909_v56  ;;  %vm1916_vm2 = vweird.f32 %v3449_v38  ;;  %vm1941_vm9 = vmor %vm1939_vm8, %vm1940_vm7  ;;  %5040 = vst [vmem:[#allocation16_spill] sm:$0xff] %v4591_v49 }
 0x750   :  { %v1936_v50 = vsub.f32 1.0, %v1935_v44  ;;  %vm1917_vm5 = vmor %vm1915_vm3, %vm1916_vm2  ;;  %v4589_v14 = vpop.f32.mrf.mxu1 }
 0x751   :  { %v1912_v29 = vsub.f32 1.0, %v1911_v12  ;;  %5039 = vst [vmem:[#allocation15_spill] sm:$0xff] %v4589_v14 }
 0x752   :  { %v1937_v39 = vmul.f32 %v3447_v58, %v1936_v50 }
 0x753   :  { %v1913_v45 = vmul.f32 %v3449_v38, %v1912_v29 }
 0x754   :  { %v1938_v34 = vadd.f32 %v3447_v58, %v1937_v39 }
 0x755   :  { %v1914_v37 = vadd.f32 %v3449_v38, %v1913_v45 }
 0x756   :  { %v1942_v42 = vsel %vm1941_vm9, %v3447_v58, %v1938_v34  ;;  %v4595_v57 = vpop.f32.mrf.mxu0 }
 0x757   :  { %v1918_v16 = vsel %vm1917_vm5, %v3449_v38, %v1914_v37  ;;  %v1947_v15 = vsel %vm1944_vm10, %v1946_v41, %v1942_v42  ;;  %5042 = vst [vmem:[#allocation18_spill] sm:$0xff] %v4595_v57 }
 0x758   :  { %v1923_v52 = vsel %vm1920_vm6, %v1922_v35, %v1918_v16  ;;  %v4593_v23 = vpop.f32.mrf.mxu1 }
 0x759   :  { %2658 = vxpose.xlu1.b32.start [1/2] (short) %v1923_v52, 128  ;;  %5041 = vst [vmem:[#allocation17_spill] sm:$0xff] %v4593_v23 }
 0x75e   :  { %v4599_v7 = vpop.f32.mrf.mxu0 }
 0x75f   :  { %5044 = vst [vmem:[#allocation20_spill] sm:$0xff] %v4599_v7 }
 0x760   :  { %v4597_v3 = vpop.f32.mrf.mxu1 }
 0x761   :  { %2659 = vxpose.xlu1.b32.end [2/2] (short) %v1947_v15, 128  ;;  %5043 = vst [vmem:[#allocation19_spill] sm:$0xff] %v4597_v3 }
 0x766   :  { %v4603_v30 = vpop.f32.mrf.mxu0 }
 0x767   :  { %5046 = vst [vmem:[#allocation22_spill] sm:$0xff] %v4603_v30 }
 0x768   :  { %v4601_v11 = vpop.f32.mrf.mxu1 }
 0x769   :  { %5045 = vst [vmem:[#allocation21_spill] sm:$0xff] %v4601_v11 }
 0x76e   :  { %v4607_v56 = vpop.f32.mrf.mxu0 }
 0x76f   :  { %5048 = vst [vmem:[#allocation24_spill] sm:$0xff] %v4607_v56 }
 0x770   :  { %v4605_v60 = vpop.f32.mrf.mxu1 }
 0x771   :  { %5047 = vst [vmem:[#allocation23_spill] sm:$0xff] %v4605_v60 }
 0x776   :  { %v4611_v38 = vpop.f32.mrf.mxu0 }
 0x778   :  { %v4609_v58 = vpop.f32.mrf.mxu1 }
 0x77e   :  { %v4615_v12 = vpop.f32.mrf.mxu0 }
 0x780   :  { %v4613_v44 = vpop.f32.mrf.mxu1 }
 0x786   :  { %v4619_v50 = vpop.f32.mrf.mxu0 }
 0x788   :  { %v4617_v29 = vpop.f32.mrf.mxu1 }
 0x78e   :  { %v4628_v34 = vpop.f32.mrf.mxu0 }
 0x790   :  { %v4621_v45 = vpop.f32.mrf.mxu1 }
 0x796   :  { %v4640_v59 = vpop.f32.mrf.mxu0 }
 0x798   :  { %v4633_v41 = vpop.f32.mrf.mxu1 }
 0x7a0   :  { %v4644_v0 = vpop.f32.mrf.mxu1 }
 0x7fd   :  { %v2674_v8 = vpop.trf.xlu1 }
 0x7fe   :  { %v2691_v10 = vsel %vm1983_vm15, %v2674_v8, 0 }
 0x7ff   :  { %v4624_v37 = vand.u32 4294901760, %v2691_v10 }
 0x801   :  { %v2757_v39 = vsub.f32 %v2691_v10, %v4624_v37  ;;  %2912 = vmatmul.f32.vlgmr.msrb.gmra.mxu1 %v4624_v37 }
 0x803   :  { %v2758_v35 = vand.u32 4294901760, %v2757_v39  ;;  %2998 = vmatmul.f32.vlgmr.msrb.gmra.mxu2 %v2757_v39 }
 0x805   :  { %v2759_v16 = vsub.f32 %v2757_v39, %v2758_v35  ;;  %v2675_v52 = vpop.trf.xlu1  ;;  %3098 = vmatmul.f32.vlgmr.msrb.gmra.mxu3 %v2758_v35 }
 0x806   :  { %v2694_v25 = vsel %vm1983_vm15, %v2675_v52, 0 }
 0x807   :  { %v2760_v28 = vand.u32 4294901760, %v2759_v16  ;;  %v4631_v42 = vand.u32 4294901760, %v2694_v25  ;;  %v4651_v16 = vpop.f32.mrf.mxu0 }
 0x809   :  { %v2765_v15 = vsub.f32 %v2694_v25, %v4631_v42  ;;  %2761 = vmatmul.f32.vlgmr.msrb.gmra.mxu0 %v2760_v28  ;;  %2916 = vmatmul.f32.gmra.mxu1 %v4631_v42  ;;  %v4653_v25 = vpop.f32.mrf.mxu1 }
 0x80a   :  { %5049 = vst [vmem:[#allocation25_spill] sm:$0xff] %v4653_v25 }
 0x80b   :  { %v2766_v24 = vand.u32 4294901760, %v2765_v15  ;;  %3003 = vmatmul.f32.gmra.mxu2 %v2765_v15 }
 0x80d   :  { %v2676_v31 = vpop.trf.xlu1  ;;  %v2767_v47 = vsub.f32 %v2765_v15, %v2766_v24  ;;  %3104 = vmatmul.f32.gmra.mxu3 %v2766_v24 }
 0x80e   :  { %v2697_v5 = vsel %vm1983_vm15, %v2676_v31, 0 }
 0x80f   :  { %v4638_v27 = vand.u32 4294901760, %v2697_v5  ;;  %v2768_v43 = vand.u32 4294901760, %v2767_v47 }
 0x811   :  { %v2773_v53 = vsub.f32 %v2697_v5, %v4638_v27  ;;  %2769 = vmatmul.f32.gmra.mxu0 %v2768_v43  ;;  %2920 = vmatmul.f32.gmra.mxu1 %v4638_v27 }
 0x813   :  { %v2774_v63 = vand.u32 4294901760, %v2773_v53  ;;  %3008 = vmatmul.f32.gmra.mxu2 %v2773_v53 }
 0x815   :  { %v2677_v46 = vpop.trf.xlu1  ;;  %v2775_v40 = vsub.f32 %v2773_v53, %v2774_v63  ;;  %3110 = vmatmul.f32.gmra.mxu3 %v2774_v63  ;;  %v4660_v53 = vpop.f32.mrf.mxu0 }
 0x816   :  { %v2700_v8 = vsel %vm1983_vm15, %v2677_v46, 0  ;;  %5050 = vst [vmem:[#allocation26_spill] sm:$0xff] %v4660_v53 }
 0x817   :  { %v4647_v10 = vand.u32 4294901760, %v2700_v8  ;;  %v2776_v39 = vand.u32 4294901760, %v2775_v40  ;;  %v4662_v40 = vpop.f32.mrf.mxu1 }
 0x818   :  { %5051 = vst [vmem:[#allocation27_spill] sm:$0xff] %v4662_v40 }
 0x819   :  { %v2781_v35 = vsub.f32 %v2700_v8, %v4647_v10  ;;  %2777 = vmatmul.f32.gmra.mxu0 %v2776_v39  ;;  %2924 = vmatmul.f32.gmra.mxu1 %v4647_v10 }
 0x81b   :  { %v2782_v52 = vand.u32 4294901760, %v2781_v35  ;;  %3013 = vmatmul.f32.gmra.mxu2 %v2781_v35 }
 0x81d   :  { %v2678_v28 = vpop.trf.xlu1  ;;  %v2783_v15 = vsub.f32 %v2781_v35, %v2782_v52  ;;  %3116 = vmatmul.f32.gmra.mxu3 %v2782_v52 }
 0x81e   :  { %v2703_v24 = vsel %vm1983_vm15, %v2678_v28, 0 }
 0x81f   :  { %v4656_v31 = vand.u32 4294901760, %v2703_v24  ;;  %v2784_v47 = vand.u32 4294901760, %v2783_v15  ;;  %v4674_v60 = vpop.f32.mrf.mxu1 }
 0x820   :  { %5053 = vst [vmem:[#allocation29_spill] sm:$0xff] %v4674_v60 }
 0x821   :  { %v2789_v5 = vsub.f32 %v2703_v24, %v4656_v31  ;;  %2785 = vmatmul.f32.gmra.mxu0 %v2784_v47  ;;  %2928 = vmatmul.f32.gmra.mxu1 %v4656_v31  ;;  %v4669_v47 = vpop.f32.mrf.mxu0 }
 0x822   :  { %5052 = vst [vmem:[#allocation28_spill] sm:$0xff] %v4669_v47 }
 0x823   :  { %v2790_v43 = vand.u32 4294901760, %v2789_v5  ;;  %3018 = vmatmul.f32.gmra.mxu2 %v2789_v5 }
 0x825   :  { %v2679_v63 = vpop.trf.xlu1  ;;  %v2791_v46 = vsub.f32 %v2789_v5, %v2790_v43  ;;  %3122 = vmatmul.f32.gmra.mxu3 %v2790_v43 }
 0x826   :  { %v2706_v8 = vsel %vm1983_vm15, %v2679_v63, 0 }
 0x827   :  { %v4665_v39 = vand.u32 4294901760, %v2706_v8  ;;  %v2792_v35 = vand.u32 4294901760, %v2791_v46 }
 0x829   :  { %v2797_v52 = vsub.f32 %v2706_v8, %v4665_v39  ;;  %2793 = vmatmul.f32.gmra.mxu0 %v2792_v35  ;;  %2932 = vmatmul.f32.gmra.mxu1 %v4665_v39  ;;  %v4678_v35 = vpop.f32.mrf.mxu2  ;;  %v4685_v30 = vpop.f32.mrf.mxu0 }
 0x82a   :  { %5054 = vst [vmem:[#allocation30_spill] sm:$0xff] %v4685_v30 }
 0x82b   :  { %v2798_v28 = vand.u32 4294901760, %v2797_v52  ;;  %3023 = vmatmul.f32.gmra.mxu2 %v2797_v52 }
 0x82d   :  { %v2680_v15 = vpop.trf.xlu1  ;;  %v2799_v24 = vsub.f32 %v2797_v52, %v2798_v28  ;;  %3128 = vmatmul.f32.gmra.mxu3 %v2798_v28 }
 0x82e   :  { %v2709_v5 = vsel %vm1983_vm15, %v2680_v15, 0  ;;  %v4681_v15 = vpop.f32.mrf.mxu3 }
 0x82f   :  { %v4672_v43 = vand.u32 4294901760, %v2709_v5  ;;  %v2800_v63 = vand.u32 4294901760, %v2799_v24 }
 0x831   :  { %v2805_v46 = vsub.f32 %v2709_v5, %v4672_v43  ;;  %2801 = vmatmul.f32.gmra.mxu0 %v2800_v63  ;;  %2936 = vmatmul.f32.gmra.mxu1 %v4672_v43  ;;  %v4689_v63 = vpop.f32.mrf.mxu1  ;;  %v4692_v7 = vpop.f32.mrf.mxu2 }
 0x832   :  { %5055 = vst [vmem:[#allocation31_spill] sm:$0xff] %v4689_v63 }
 0x833   :  { %v2806_v8 = vand.u32 4294901760, %v2805_v46  ;;  %3028 = vmatmul.f32.gmra.mxu2 %v2805_v46 }
 0x835   :  { %v2681_v52 = vpop.trf.xlu1  ;;  %v2807_v28 = vsub.f32 %v2805_v46, %v2806_v8  ;;  %3134 = vmatmul.f32.gmra.mxu3 %v2806_v8 }
 0x836   :  { %v2712_v56 = vsel %vm1983_vm15, %v2681_v52, 0  ;;  %v4696_v57 = vpop.f32.mrf.mxu3 }
 0x837   :  { %v4683_v11 = vand.u32 4294901760, %v2712_v56  ;;  %v2808_v24 = vand.u32 4294901760, %v2807_v28 }
 0x839   :  { %v2813_v5 = vsub.f32 %v2712_v56, %v4683_v11  ;;  %2809 = vmatmul.f32.gmra.mxu0 %v2808_v24  ;;  %2940 = vmatmul.f32.gmra.mxu1 %v4683_v11  ;;  %v4700_v24 = vpop.f32.mrf.mxu0  ;;  %v4707_v51 = vpop.f32.mrf.mxu2 }
 0x83a   :  { %5056 = vst [vmem:[#allocation32_spill] sm:$0xff] %v4700_v24 }
 0x83b   :  { %v2814_v3 = vand.u32 4294901760, %v2813_v5  ;;  %3033 = vmatmul.f32.gmra.mxu2 %v2813_v5 }
 0x83d   :  { %v2682_v46 = vpop.trf.xlu1  ;;  %v2815_v8 = vsub.f32 %v2813_v5, %v2814_v3  ;;  %3140 = vmatmul.f32.gmra.mxu3 %v2814_v3  ;;  %v4702_v5 = vpop.f32.mrf.mxu1 }
 0x83e   :  { %v2715_v52 = vsel %vm1983_vm15, %v2682_v46, 0  ;;  %5057 = vst [vmem:[#allocation33_spill] sm:$0xff] %v4702_v5 }
 0x83f   :  { %v4694_v23 = vand.u32 4294901760, %v2715_v52  ;;  %v2816_v28 = vand.u32 4294901760, %v2815_v8 }
 0x841   :  { %v2821_v56 = vsub.f32 %v2715_v52, %v4694_v23  ;;  %2817 = vmatmul.f32.gmra.mxu0 %v2816_v28  ;;  %2944 = vmatmul.f32.gmra.mxu1 %v4694_v23  ;;  %v4711_v28 = vpop.f32.mrf.mxu3  ;;  %v4713_v5 = vpop.f32.mrf.mxu0 }
 0x842   :  { %5058 = vst [vmem:[#allocation34_spill] sm:$0xff] %v4713_v5 }
 0x843   :  { %v2822_v14 = vand.u32 4294901760, %v2821_v56  ;;  %3038 = vmatmul.f32.gmra.mxu2 %v2821_v56 }
 0x845   :  { %v2683_v3 = vpop.trf.xlu1  ;;  %v2823_v46 = vsub.f32 %v2821_v56, %v2822_v14  ;;  %3146 = vmatmul.f32.gmra.mxu3 %v2822_v14 }
 0x846   :  { %v2718_v49 = vsel %vm1983_vm15, %v2683_v3, 0  ;;  %v4715_v3 = vpop.f32.mrf.mxu1 }
 0x847   :  { %v4705_v19 = vand.u32 4294901760, %v2718_v49  ;;  %v2824_v8 = vand.u32 4294901760, %v2823_v46  ;;  %5059 = vst [vmem:[#allocation35_spill] sm:$0xff] %v4715_v3 }
 0x849   :  { %v2829_v52 = vsub.f32 %v2718_v49, %v4705_v19  ;;  %2825 = vmatmul.f32.gmra.mxu0 %v2824_v8  ;;  %2948 = vmatmul.f32.gmra.mxu1 %v4705_v19  ;;  %v4722_v8 = vpop.f32.mrf.mxu2  ;;  %v4724_v5 = vpop.f32.mrf.mxu3 }
 0x84a   :  { %v4726_v3 = vpop.f32.mrf.mxu0 }
 0x84b   :  { %v2830_v63 = vand.u32 4294901760, %v2829_v52  ;;  %3043 = vmatmul.f32.gmra.mxu2 %v2829_v52  ;;  %5060 = vst [vmem:[#allocation36_spill] sm:$0xff] %v4726_v3 }
 0x84d   :  { %v2684_v56 = vpop.trf.xlu1  ;;  %v2831_v14 = vsub.f32 %v2829_v52, %v2830_v63  ;;  %3152 = vmatmul.f32.gmra.mxu3 %v2830_v63 }
 0x84e   :  { %v2721_v46 = vsel %vm1983_vm15, %v2684_v56, 0 }
 0x84f   :  { %v4718_v24 = vand.u32 4294901760, %v2721_v46  ;;  %v2832_v32 = vand.u32 4294901760, %v2831_v14 }
 0x851   :  { %v2837_v49 = vsub.f32 %v2721_v46, %v4718_v24  ;;  %2833 = vmatmul.f32.gmra.mxu0 %v2832_v32  ;;  %2952 = vmatmul.f32.gmra.mxu1 %v4718_v24  ;;  %v4731_v46 = vpop.f32.mrf.mxu1  ;;  %v4735_v13 = vpop.f32.mrf.mxu2 }
 0x852   :  { %5061 = vst [vmem:[#allocation37_spill] sm:$0xff] %v4731_v46  ;;  %v4742_v46 = vpop.f32.mrf.mxu0 }
 0x853   :  { %v2838_v1 = vand.u32 4294901760, %v2837_v49  ;;  %3048 = vmatmul.f32.gmra.mxu2 %v2837_v49  ;;  %5063 = vst [vmem:[#allocation39_spill] sm:$0xff] %v4742_v46 }
 0x855   :  { %v2685_v52 = vpop.trf.xlu1  ;;  %v2839_v63 = vsub.f32 %v2837_v49, %v2838_v1  ;;  %3158 = vmatmul.f32.gmra.mxu3 %v2838_v1 }
 0x856   :  { %v2724_v56 = vsel %vm1983_vm15, %v2685_v52, 0  ;;  %v4738_v52 = vpop.f32.mrf.mxu3 }
 0x857   :  { %v4729_v60 = vand.u32 4294901760, %v2724_v56  ;;  %v2840_v14 = vand.u32 4294901760, %v2839_v63  ;;  %5062 = vst [vmem:[#allocation38_spill] sm:$0xff] %v4738_v52 }
 0x859   :  { %v2845_v32 = vsub.f32 %v2724_v56, %v4729_v60  ;;  %2841 = vmatmul.f32.gmra.mxu0 %v2840_v14  ;;  %2956 = vmatmul.f32.gmra.mxu1 %v4729_v60  ;;  %v4746_v14 = vpop.f32.mrf.mxu1  ;;  %v4749_v47 = vpop.f32.mrf.mxu2 }
 0x85a   :  { %5064 = vst [vmem:[#allocation40_spill] sm:$0xff] %v4746_v14 }
 0x85b   :  { %v2846_v30 = vand.u32 4294901760, %v2845_v32  ;;  %3053 = vmatmul.f32.gmra.mxu2 %v2845_v32  ;;  %5065 = vst [vmem:[#allocation41_spill] sm:$0xff] %v4749_v47 }
 0x85d   :  { %v2686_v49 = vpop.trf.xlu1  ;;  %v2847_v1 = vsub.f32 %v2845_v32, %v2846_v30  ;;  %3164 = vmatmul.f32.gmra.mxu3 %v2846_v30 }
 0x85e   :  { %v2727_v3 = vsel %vm1983_vm15, %v2686_v49, 0  ;;  %v4753_v46 = vpop.f32.mrf.mxu3 }
 0x85f   :  { %v4740_v18 = vand.u32 4294901760, %v2727_v3  ;;  %v2848_v63 = vand.u32 4294901760, %v2847_v1  ;;  %5066 = vst [vmem:[#allocation42_spill] sm:$0xff] %v4753_v46 }
 0x861   :  { %v2853_v56 = vsub.f32 %v2727_v3, %v4740_v18  ;;  %2849 = vmatmul.f32.gmra.mxu0 %v2848_v63  ;;  %2960 = vmatmul.f32.gmra.mxu1 %v4740_v18  ;;  %v4757_v63 = vpop.f32.mrf.mxu0  ;;  %v4764_v46 = vpop.f32.mrf.mxu2 }
 0x862   :  { %5067 = vst [vmem:[#allocation43_spill] sm:$0xff] %v4757_v63 }
 0x863   :  { %v2854_v40 = vand.u32 4294901760, %v2853_v56  ;;  %3058 = vmatmul.f32.gmra.mxu2 %v2853_v56  ;;  %5069 = vst [vmem:[#allocation45_spill] sm:$0xff] %v4764_v46 }
 0x865   :  { %v2687_v32 = vpop.trf.xlu1  ;;  %v2855_v30 = vsub.f32 %v2853_v56, %v2854_v40  ;;  %3170 = vmatmul.f32.gmra.mxu3 %v2854_v40  ;;  %v4759_v56 = vpop.f32.mrf.mxu1 }
 0x866   :  { %v2730_v49 = vsel %vm1983_vm15, %v2687_v32, 0  ;;  %5068 = vst [vmem:[#allocation44_spill] sm:$0xff] %v4759_v56 }
 0x867   :  { %v4751_v36 = vand.u32 4294901760, %v2730_v49  ;;  %v2856_v1 = vand.u32 4294901760, %v2855_v30 }
 0x869   :  { %v2861_v3 = vsub.f32 %v2730_v49, %v4751_v36  ;;  %2857 = vmatmul.f32.gmra.mxu0 %v2856_v1  ;;  %2964 = vmatmul.f32.gmra.mxu1 %v4751_v36  ;;  %v4768_v1 = vpop.f32.mrf.mxu3  ;;  %v4770_v56 = vpop.f32.mrf.mxu0 }
 0x86a   :  { %5070 = vst [vmem:[#allocation46_spill] sm:$0xff] %v4768_v1 }
 0x86b   :  { %v2862_v14 = vand.u32 4294901760, %v2861_v3  ;;  %3063 = vmatmul.f32.gmra.mxu2 %v2861_v3  ;;  %5071 = vst [vmem:[#allocation47_spill] sm:$0xff] %v4770_v56 }
 0x86d   :  { %v2688_v40 = vpop.trf.xlu1  ;;  %v2863_v32 = vsub.f32 %v2861_v3, %v2862_v14  ;;  %3176 = vmatmul.f32.gmra.mxu3 %v2862_v14 }
 0x86e   :  { %v2733_v20 = vsel %vm1983_vm15, %v2688_v40, 0  ;;  %v4772_v40 = vpop.f32.mrf.mxu1 }
 0x86f   :  { %v4762_v25 = vand.u32 4294901760, %v2733_v20  ;;  %v2864_v30 = vand.u32 4294901760, %v2863_v32  ;;  %5072 = vst [vmem:[#allocation48_spill] sm:$0xff] %v4772_v40 }
 0x871   :  { %v2869_v49 = vsub.f32 %v2733_v20, %v4762_v25  ;;  %2865 = vmatmul.f32.gmra.mxu0 %v2864_v30  ;;  %2968 = vmatmul.f32.gmra.mxu1 %v4762_v25  ;;  %v4779_v30 = vpop.f32.mrf.mxu2  ;;  %v4781_v56 = vpop.f32.mrf.mxu3 }
 0x872   :  { %5073 = vst [vmem:[#allocation49_spill] sm:$0xff] %v4779_v30 }
 0x873   :  { %v2870_v63 = vand.u32 4294901760, %v2869_v49  ;;  %3068 = vmatmul.f32.gmra.mxu2 %v2869_v49  ;;  %5074 = vst [vmem:[#allocation50_spill] sm:$0xff] %v4781_v56 }
 0x875   :  { %v2689_v3 = vpop.trf.xlu1  ;;  %v2871_v14 = vsub.f32 %v2869_v49, %v2870_v63  ;;  %3182 = vmatmul.f32.gmra.mxu3 %v2870_v63  ;;  %v4783_v63 = vpop.f32.mrf.mxu0 }
 0x876   :  { %v2736_v32 = vsel %vm1983_vm15, %v2689_v3, 0  ;;  %5075 = vst [vmem:[#allocation51_spill] sm:$0xff] %v4783_v63 }
 0x877   :  { %v4775_v53 = vand.u32 4294901760, %v2736_v32  ;;  %v2872_v46 = vand.u32 4294901760, %v2871_v14 }
 0x879   :  { %v2877_v20 = vsub.f32 %v2736_v32, %v4775_v53  ;;  %2873 = vmatmul.f32.gmra.mxu0 %v2872_v46  ;;  %2972 = vmatmul.f32.gmra.mxu1 %v4775_v53  ;;  %v4806_v63 = vpop.f32.mrf.mxu3 }
 0x87a   :  { %5077 = vst [vmem:[#allocation53_spill] sm:$0xff] %v4806_v63 }
 0x87b   :  { %v2878_v1 = vand.u32 4294901760, %v2877_v20  ;;  %3073 = vmatmul.f32.gmra.mxu2 %v2877_v20 }
 0x87d   :  { %v2879_v49 = vsub.f32 %v2877_v20, %v2878_v1  ;;  %3188 = vmatmul.f32.gmra.mxu3 %v2878_v1  ;;  %v4800_v1 = vpop.f32.mrf.mxu2 }
 0x87e   :  { %v4785_v40 = vpop.f32.mrf.mxu1  ;;  %5076 = vst [vmem:[#allocation52_spill] sm:$0xff] %v4800_v1 }
 0x87f   :  { %v2880_v3 = vand.u32 4294901760, %v2879_v49 }
 0x881   :  { %2881 = vmatmul.f32.gmra.mxu0 %v2880_v3  ;;  %3298 = vmatmul.f32.vlgmr.msra.gmra.mxu1 %v4624_v37 }
 0x886   :  { %v4788_v14 = vpop.f32.mrf.mxu0  ;;  %v4790_v46 = vpop.f32.mrf.mxu1 }
 0x889   :  { %3215 = vmatmul.f32.vlgmr.msra.gmra.mxu0 %v4624_v37  ;;  %3302 = vmatmul.f32.gmra.mxu1 %v4631_v42  ;;  %v4810_v37 = vpop.f32.mrf.mxu2 }
 0x88a   :  { %5078 = vst [vmem:[#allocation54_spill] sm:$0xff] %v4810_v37 }
 0x88e   :  { %v4794_v32 = vpop.f32.mrf.mxu0  ;;  %v4796_v20 = vpop.f32.mrf.mxu1 }
 0x891   :  { %3219 = vmatmul.f32.gmra.mxu0 %v4631_v42  ;;  %3306 = vmatmul.f32.gmra.mxu1 %v4638_v27  ;;  %v4816_v42 = vpop.f32.mrf.mxu3  ;;  %v4824_v63 = vpop.f32.mrf.mxu2 }
 0x892   :  { %5079 = vst [vmem:[#allocation55_spill] sm:$0xff] %v4816_v42 }
 0x893   :  { %5080 = vst [vmem:[#allocation56_spill] sm:$0xff] %v4824_v63 }
 0x896   :  { %v4802_v49 = vpop.f32.mrf.mxu0  ;;  %v4804_v3 = vpop.f32.mrf.mxu1 }
 0x899   :  { %3223 = vmatmul.f32.gmra.mxu0 %v4638_v27  ;;  %3310 = vmatmul.f32.gmra.mxu1 %v4647_v10  ;;  %v4828_v27 = vpop.f32.mrf.mxu3  ;;  %v4834_v42 = vpop.f32.mrf.mxu2 }
 0x89a   :  { %5081 = vst [vmem:[#allocation57_spill] sm:$0xff] %v4828_v27 }
 0x89b   :  { %5083 = vst [vmem:[#allocation59_spill] sm:$0xff] %v4834_v42 }
 0x89e   :  { %v4812_v56 = vpop.f32.mrf.mxu0  ;;  %v4814_v30 = vpop.f32.mrf.mxu1 }
 0x8a1   :  { %3227 = vmatmul.f32.gmra.mxu0 %v4647_v10  ;;  %3314 = vmatmul.f32.gmra.mxu1 %v4656_v31  ;;  %v4838_v10 = vpop.f32.mrf.mxu3 }
 0x8a2   :  { %5084 = vst [vmem:[#allocation60_spill] sm:$0xff] %v4838_v10 }
 0x8a6   :  { %v4820_v1 = vpop.f32.mrf.mxu0  ;;  %v4822_v47 = vpop.f32.mrf.mxu1 }
 0x8a9   :  { %3231 = vmatmul.f32.gmra.mxu0 %v4656_v31  ;;  %3318 = vmatmul.f32.gmra.mxu1 %v4665_v39  ;;  %v4846_v31 = vpop.f32.mrf.mxu2  ;;  %v4850_v42 = vpop.f32.mrf.mxu3 }
 0x8aa   :  { %5087 = vst [vmem:[#allocation63_spill] sm:$0xff] %v4846_v31 }
 0x8ab   :  { %5089 = vst [vmem:[#allocation65_spill] sm:$0xff] %v4850_v42 }
 0x8ae   :  { %v4830_v37 = vpop.f32.mrf.mxu0  ;;  %v4832_v22 = vpop.f32.mrf.mxu1 }
 0x8af   :  { %5082 = vst [vmem:[#allocation58_spill] sm:$0xff] %v4832_v22 }
 0x8b1   :  { %3235 = vmatmul.f32.gmra.mxu0 %v4665_v39  ;;  %3322 = vmatmul.f32.gmra.mxu1 %v4672_v43  ;;  %v4854_v39 = vpop.f32.mrf.mxu2 }
 0x8b2   :  { %5090 = vst [vmem:[#allocation66_spill] sm:$0xff] %v4854_v39 }
 0x8b6   :  { %v4840_v61 = vpop.f32.mrf.mxu0  ;;  %v4842_v63 = vpop.f32.mrf.mxu1 }
 0x8b7   :  { %5085 = vst [vmem:[#allocation61_spill] sm:$0xff] %v4840_v61 }
 0x8b8   :  { %5086 = vst [vmem:[#allocation62_spill] sm:$0xff] %v4842_v63 }
 0x8b9   :  { %3239 = vmatmul.f32.gmra.mxu0 %v4672_v43  ;;  %3326 = vmatmul.f32.gmra.mxu1 %v4683_v11  ;;  %v4858_v43 = vpop.f32.mrf.mxu3  ;;  %v4862_v52 = vpop.f32.mrf.mxu2 }
 0x8ba   :  { %5092 = vst [vmem:[#allocation68_spill] sm:$0xff] %v4858_v43 }
 0x8bb   :  { %5093 = vst [vmem:[#allocation69_spill] sm:$0xff] %v4862_v52 }
 0x8be   :  { %v4848_v27 = vpop.f32.mrf.mxu0  ;;  %v2945_v22 = vpop.f32.mrf.mxu1 }
 0x8bf   :  { %5088 = vst [vmem:[#allocation64_spill] sm:$0xff] %v4848_v27 }
 0x8c1   :  { %3243 = vmatmul.f32.gmra.mxu0 %v4683_v11  ;;  %3330 = vmatmul.f32.gmra.mxu1 %v4694_v23  ;;  %v4868_v11 = vpop.f32.mrf.mxu3  ;;  %v4872_v43 = vpop.f32.mrf.mxu2 }
 0x8c2   :  { %5095 = vst [vmem:[#allocation71_spill] sm:$0xff] %v4868_v11 }
 0x8c3   :  { %5097 = vst [vmem:[#allocation73_spill] sm:$0xff] %v4872_v43 }
 0x8c6   :  { %v2826_v10 = vpop.f32.mrf.mxu0  ;;  %v2949_v61 = vpop.f32.mrf.mxu1 }
 0x8c7   :  { %v4856_v63 = vadd.f32 %v2945_v22, %v2826_v10 }
 0x8c9   :  { %5091 = vst [vmem:[#allocation67_spill] sm:$0xff] %v4856_v63  ;;  %3247 = vmatmul.f32.gmra.mxu0 %v4694_v23  ;;  %3334 = vmatmul.f32.gmra.mxu1 %v4705_v19  ;;  %v4876_v23 = vpop.f32.mrf.mxu3 }
 0x8ca   :  { %5098 = vst [vmem:[#allocation74_spill] sm:$0xff] %v4876_v23 }
 0x8ce   :  { %v2834_v31 = vpop.f32.mrf.mxu0  ;;  %v2953_v27 = vpop.f32.mrf.mxu1 }
 0x8cf   :  { %v4864_v42 = vadd.f32 %v2949_v61, %v2834_v31 }
 0x8d1   :  { %5094 = vst [vmem:[#allocation70_spill] sm:$0xff] %v4864_v42  ;;  %3251 = vmatmul.f32.gmra.mxu0 %v4705_v19  ;;  %3338 = vmatmul.f32.gmra.mxu1 %v4718_v24  ;;  %v2999_v19 = vpop.f32.mrf.mxu2  ;;  %v3099_v11 = vpop.f32.mrf.mxu3 }
 0x8d6   :  { %v2842_v22 = vpop.f32.mrf.mxu0  ;;  %v2957_v10 = vpop.f32.mrf.mxu1 }
 0x8d7   :  { %v4870_v39 = vadd.f32 %v2953_v27, %v2842_v22 }
 0x8d9   :  { %5096 = vst [vmem:[#allocation72_spill] sm:$0xff] %v4870_v39  ;;  %3255 = vmatmul.f32.gmra.mxu0 %v4718_v24  ;;  %3342 = vmatmul.f32.gmra.mxu1 %v4729_v60  ;;  %v3004_v24 = vpop.f32.mrf.mxu2  ;;  %v3105_v42 = vpop.f32.mrf.mxu3 }
 0x8de   :  { %v2850_v61 = vpop.f32.mrf.mxu0  ;;  %v2961_v31 = vpop.f32.mrf.mxu1 }
 0x8df   :  { %v4878_v52 = vadd.f32 %v2957_v10, %v2850_v61 }
 0x8e1   :  { %5099 = vst [vmem:[#allocation75_spill] sm:$0xff] %v4878_v52  ;;  %3259 = vmatmul.f32.gmra.mxu0 %v4729_v60  ;;  %3346 = vmatmul.f32.gmra.mxu1 %v4740_v18  ;;  %v3009_v60 = vpop.f32.mrf.mxu2 }
 0x8e6   :  { %v2858_v27 = vpop.f32.mrf.mxu0  ;;  %v2965_v22 = vpop.f32.mrf.mxu1 }
 0x8e7   :  { %v4882_v39 = vadd.f32 %v2961_v31, %v2858_v27  ;;  %v3111_v31 = vpop.f32.mrf.mxu3 }
 0x8e9   :  { %5100 = vst [vmem:[#allocation76_spill] sm:$0xff] %v4882_v39  ;;  %3263 = vmatmul.f32.gmra.mxu0 %v4740_v18  ;;  %3350 = vmatmul.f32.gmra.mxu1 %v4751_v36  ;;  %v2208_v18 = vadd.f32 %v4508_v33, %v4513_v26 }
 0x8ee   :  { %v2866_v23 = vpop.f32.mrf.mxu0  ;;  %v2969_v43 = vpop.f32.mrf.mxu1 }
 0x8ef   :  { %v4886_v10 = vadd.f32 %v2965_v22, %v2866_v23  ;;  %v2294_v23 = vadd.f32 %v4611_v38, %v2208_v18  ;;  %v2918_v38 = vadd.f32 %v4790_v46, %v4794_v32  ;;  %v2922_v46 = vadd.f32 %v4796_v20, %v4802_v49 }
 0x8f0   :  { %v2926_v49 = vadd.f32 %v4804_v3, %v4812_v56  ;;  %v2930_v3 = vadd.f32 %v4814_v30, %v4820_v1 }
 0x8f1   :  { %5101 = vst [vmem:[#allocation77_spill] sm:$0xff] %v4886_v10  ;;  %3267 = vmatmul.f32.gmra.mxu0 %v4751_v36  ;;  %3354 = vmatmul.f32.gmra.mxu1 %v4762_v25  ;;  %v2914_v36 = vadd.f32 %v4785_v40, %v4788_v14  ;;  %v3014_v10 = vpop.f32.mrf.mxu2 }
 0x8f6   :  { %v2874_v61 = vpop.f32.mrf.mxu0  ;;  %v2973_v52 = vpop.f32.mrf.mxu1 }
 0x8f7   :  { %v4890_v63 = vadd.f32 %v2969_v43, %v2874_v61  ;;  %v2394_v43 = vadd.f32 %v4609_v58, %v2294_v23  ;;  %v3000_v61 = vadd.f32 %v2999_v19, %v2914_v36  ;;  %v3005_v19 = vadd.f32 %v3004_v24, %v2918_v38 }
 0x8f9   :  { %5102 = vst [vmem:[#allocation78_spill] sm:$0xff] %v4890_v63  ;;  %3271 = vmatmul.f32.gmra.mxu0 %v4762_v25  ;;  %3358 = vmatmul.f32.gmra.mxu1 %v4775_v53  ;;  %v2212_v25 = vadd.f32 %v4515_v6, %v4520_v62  ;;  %v3117_v63 = vpop.f32.mrf.mxu3  ;;  %v2511_v33 = vadd.f32 %v4678_v35, %v2394_v43  ;;  %v3019_v23 = vpop.f32.mrf.mxu2 }
 0x8fa   :  { %v3100_v40 = vadd.f32 %v3099_v11, %v3000_v61  ;;  %v2216_v6 = vadd.f32 %v4522_v54, %v4527_v2  ;;  %v3106_v32 = vadd.f32 %v3105_v42, %v3005_v19  ;;  %v2220_v2 = vadd.f32 %v4529_v55, %v4534_v17 }
 0x8fb   :  { %v2299_v26 = vadd.f32 %v4615_v12, %v2212_v25 }
 0x8fc   :  { %v2304_v35 = vadd.f32 %v4619_v50, %v2216_v6  ;;  %v2309_v20 = vadd.f32 %v4628_v34, %v2220_v2  ;;  %v5103_v6 = vld [vmem:[#allocation38_spill] sm:$0xff] }
 0x8fd   :  { %v2400_v58 = vadd.f32 %v4613_v44, %v2299_v26  ;;  %v3015_v26 = vadd.f32 %v3014_v10, %v2926_v49  ;;  %v5112_v49 = vld [vmem:[#allocation8_spill] sm:$0xff] }
 0x8fe   :  { %v2882_v27 = vpop.f32.mrf.mxu0  ;;  %v3299_v22 = vpop.f32.mrf.mxu1 }
 0x8ff   :  { %v4899_v39 = vadd.f32 %v2973_v52, %v2882_v27  ;;  %v2515_v12 = vadd.f32 %v4692_v7, %v2400_v58 }
 0x901   :  { %3275 = vmatmul.f32.gmra.mxu0 %v4775_v53  ;;  %v2594_v53 = vadd.f32 %v4681_v15, %v2511_v33  ;;  %v3123_v11 = vpop.f32.mrf.mxu3  ;;  %v2406_v15 = vadd.f32 %v4617_v29, %v2304_v35  ;;  %v2598_v43 = vadd.f32 %v4696_v57, %v2515_v12  ;;  %v3024_v7 = vpop.f32.mrf.mxu2  ;;  %v2412_v57 = vadd.f32 %v4621_v45, %v2309_v20  ;;  %v5105_v12 = vld [vmem:[#allocation5_spill] sm:$0xff] }
 0x903   :  { %v2519_v61 = vadd.f32 %v4707_v51, %v2406_v15  ;;  %v2224_v51 = vadd.f32 %v4539_v21, %v4544_v48  ;;  %v2523_v34 = vadd.f32 %v4722_v8, %v2412_v57  ;;  %v2228_v8 = vadd.f32 %v4546_v4, %v4551_v9  ;;  %v5104_v9 = vld [vmem:[#allocation6_spill] sm:$0xff] }
 0x905   :  { %v2602_v55 = vadd.f32 %v4711_v28, %v2519_v61  ;;  %v2314_v56 = vadd.f32 %v4640_v59, %v2224_v51  ;;  %v2606_v21 = vadd.f32 %v4724_v5, %v2523_v34  ;;  %v2319_v30 = vadd.f32 %v4651_v16, %v2228_v8 }
 0x906   :  { %v3216_v14 = vpop.f32.mrf.mxu0  ;;  %v3303_v52 = vpop.f32.mrf.mxu1 }
 0x907   :  { %v3217_v18 = vadd.f32 %v3216_v14, %v3100_v40  ;;  %v2418_v28 = vadd.f32 %v4633_v41, %v2314_v56  ;;  %v2424_v5 = vadd.f32 %v4644_v0, %v2319_v30  ;;  %v5122_v30 = vld [vmem:[#allocation49_spill] sm:$0xff] }
 0x909   :  { %v3300_v36 = vadd.f32 %v3299_v22, %v3217_v18  ;;  %v3010_v22 = vadd.f32 %v3009_v60, %v2922_v46  ;;  %v3129_v60 = vpop.f32.mrf.mxu3  ;;  %v3029_v40 = vpop.f32.mrf.mxu2  ;;  %v2527_v58 = vadd.f32 %v4735_v13, %v2418_v28  ;;  %v2232_v13 = vadd.f32 %v5105_v12, %v5104_v9  ;;  %v5106_v46 = vld [vmem:[#allocation41_spill] sm:$0xff]  ;;  %v5126_v9 = vld [vmem:[#allocation50_spill] sm:$0xff] }
 0x90b   :  { %v3362_v62 = vmul.f32 %v3300_v36, %v2594_v53  ;;  %v3112_v42 = vadd.f32 %v3111_v31, %v3010_v22  ;;  %v3118_v31 = vadd.f32 %v3117_v63, %v3015_v26  ;;  %v2934_v63 = vadd.f32 %v4822_v47, %v4830_v37  ;;  %v5107_v47 = vld [vmem:[#allocation26_spill] sm:$0xff]  ;;  %v5115_v26 = vld [vmem:[#allocation28_spill] sm:$0xff] }
 0x90c   :  { %v2324_v37 = vadd.f32 %v5107_v47, %v2232_v13 }
 0x90d   :  { %3378 = vst [vmem:[#allocation2] sm:$0xff] %v3362_v62  ;;  %v3025_v36 = vadd.f32 %v3024_v7, %v2934_v63  ;;  %v2610_v62 = vadd.f32 %v5103_v6, %v2527_v58  ;;  %v5124_v6 = vld [vmem:[#allocation29_spill] sm:$0xff] }
 0x90e   :  { %v3220_v44 = vpop.f32.mrf.mxu0  ;;  %v3307_v24 = vpop.f32.mrf.mxu1 }
 0x90f   :  { %v3221_v27 = vadd.f32 %v3220_v44, %v3106_v32  ;;  %v2531_v32 = vadd.f32 %v5106_v46, %v2424_v5  ;;  %v5109_v44 = vld [vmem:[#allocation58_spill] sm:$0xff]  ;;  %v5128_v46 = vld [vmem:[#allocation11_spill] sm:$0xff] }
 0x911   :  { %v3304_v54 = vadd.f32 %v3303_v52, %v3221_v27  ;;  %v3020_v52 = vadd.f32 %v3019_v23, %v2930_v3  ;;  %v3135_v18 = vpop.f32.mrf.mxu3  ;;  %v3034_v23 = vpop.f32.mrf.mxu2  ;;  %v3130_v27 = vadd.f32 %v3129_v60, %v3025_v36  ;;  %v5116_v60 = vld [vmem:[#allocation64_spill] sm:$0xff] }
 0x913   :  { %v3363_v50 = vmul.f32 %v3304_v54, %v2598_v43  ;;  %v3124_v1 = vadd.f32 %v3123_v11, %v3020_v52  ;;  %v5108_v11 = vld [vmem:[#allocation61_spill] sm:$0xff] }
 0x914   :  { %v5110_v43 = vld [vmem:[#allocation25_spill] sm:$0xff] }
 0x915   :  { %3379 = vst [vmem:[#allocation2 + $0x8] sm:$0xff] %v3363_v50  ;;  %v2430_v54 = vadd.f32 %v5110_v43, %v2324_v37  ;;  %v5111_v50 = vld [vmem:[#allocation42_spill] sm:$0xff]  ;;  %v5129_v37 = vld [vmem:[#allocation52_spill] sm:$0xff]  ;;  %v5131_v43 = vld [vmem:[#allocation31_spill] sm:$0xff] }
 0x916   :  { %v3224_v25 = vpop.f32.mrf.mxu0  ;;  %v3311_v29 = vpop.f32.mrf.mxu1  ;;  %v2614_v61 = vadd.f32 %v5111_v50, %v2531_v32  ;;  %v5133_v50 = vld [vmem:[#allocation53_spill] sm:$0xff] }
 0x917   :  { %v3225_v33 = vadd.f32 %v3224_v25, %v3112_v42  ;;  %v5113_v42 = vld [vmem:[#allocation7_spill] sm:$0xff] }
 0x918   :  { %v2236_v25 = vadd.f32 %v5113_v42, %v5112_v49  ;;  %v5134_v42 = vld [vmem:[#allocation14_spill] sm:$0xff] }
 0x919   :  { %v3308_v17 = vadd.f32 %v3307_v24, %v3225_v33  ;;  %v3141_v35 = vpop.f32.mrf.mxu3  ;;  %v2938_v24 = vadd.f32 %v5109_v44, %v5108_v11  ;;  %v3039_v7 = vpop.f32.mrf.mxu2  ;;  %v5114_v33 = vld [vmem:[#allocation45_spill] sm:$0xff]  ;;  %v5130_v44 = vld [vmem:[#allocation32_spill] sm:$0xff] }
 0x91a   :  { %v2535_v57 = vadd.f32 %v5114_v33, %v2430_v54 }
 0x91b   :  { %v3364_v38 = vmul.f32 %v3308_v17, %v2602_v55  ;;  %v3030_v2 = vadd.f32 %v3029_v40, %v2938_v24  ;;  %v2329_v55 = vadd.f32 %v5115_v26, %v2236_v25  ;;  %v5117_v17 = vld [vmem:[#allocation62_spill] sm:$0xff]  ;;  %v5118_v40 = vld [vmem:[#allocation27_spill] sm:$0xff]  ;;  %v5135_v25 = vld [vmem:[#allocation13_spill] sm:$0xff] }
 0x91c   :  { %v2942_v51 = vadd.f32 %v5117_v17, %v5116_v60 }
 0x91d   :  { %3380 = vst [vmem:[#allocation2 + $0x10] sm:$0xff] %v3364_v38  ;;  %v3136_v38 = vadd.f32 %v3135_v18, %v3030_v2  ;;  %v5132_v2 = vld [vmem:[#allocation70_spill] sm:$0xff] }
 0x91e   :  { %v3228_v14 = vpop.f32.mrf.mxu0  ;;  %v3315_v45 = vpop.f32.mrf.mxu1 }
 0x91f   :  { %v3229_v10 = vadd.f32 %v3228_v14, %v3118_v31  ;;  %v2436_v14 = vadd.f32 %v5118_v40, %v2329_v55  ;;  %v5137_v55 = vld [vmem:[#allocation34_spill] sm:$0xff]  ;;  %v5139_v40 = vld [vmem:[#allocation72_spill] sm:$0xff] }
 0x921   :  { %v3312_v48 = vadd.f32 %v3311_v29, %v3229_v10  ;;  %v3147_v34 = vpop.f32.mrf.mxu3  ;;  %v5119_v10 = vld [vmem:[#allocation46_spill] sm:$0xff]  ;;  %v2539_v63 = vadd.f32 %v5122_v30, %v2436_v14 }
 0x922   :  { %v2618_v28 = vadd.f32 %v5119_v10, %v2535_v57  ;;  %v5136_v57 = vld [vmem:[#allocation54_spill] sm:$0xff] }
 0x923   :  { %v3365_v59 = vmul.f32 %v3312_v48, %v2606_v21  ;;  %v5120_v21 = vld [vmem:[#allocation10_spill] sm:$0xff]  ;;  %v5121_v48 = vld [vmem:[#allocation9_spill] sm:$0xff]  ;;  %v2622_v12 = vadd.f32 %v5126_v9, %v2539_v63  ;;  %v5144_v63 = vld [vmem:[#allocation36_spill] sm:$0xff] }
 0x924   :  { %v2240_v8 = vadd.f32 %v5121_v48, %v5120_v21  ;;  %v5142_v21 = vld [vmem:[#allocation15_spill] sm:$0xff] }
 0x925   :  { %3381 = vst [vmem:[#allocation2 + $0x18] sm:$0xff] %v3365_v59  ;;  %v3044_v59 = vpop.f32.mrf.mxu2 }
 0x926   :  { %v3232_v19 = vpop.f32.mrf.mxu0  ;;  %v3319_v41 = vpop.f32.mrf.mxu1 }
 0x927   :  { %v3233_v53 = vadd.f32 %v3232_v19, %v3124_v1  ;;  %v5123_v1 = vld [vmem:[#allocation30_spill] sm:$0xff] }
 0x928   :  { %v2334_v18 = vadd.f32 %v5123_v1, %v2240_v8 }
 0x929   :  { %v3316_v4 = vadd.f32 %v3315_v45, %v3233_v53  ;;  %v3035_v45 = vadd.f32 %v3034_v23, %v2942_v51  ;;  %v3153_v36 = vpop.f32.mrf.mxu3 }
 0x92a   :  { %v2442_v23 = vadd.f32 %v5124_v6, %v2334_v18  ;;  %v5146_v6 = vld [vmem:[#allocation75_spill] sm:$0xff] }
 0x92b   :  { %v3366_v16 = vmul.f32 %v3316_v4, %v2610_v62  ;;  %v3142_v19 = vadd.f32 %v3141_v35, %v3035_v45  ;;  %v5125_v62 = vld [vmem:[#allocation67_spill] sm:$0xff] }
 0x92c   :  { %v3040_v4 = vadd.f32 %v3039_v7, %v5125_v62  ;;  %v2543_v11 = vadd.f32 %v5129_v37, %v2442_v23  ;;  %v3045_v7 = vadd.f32 %v3044_v59, %v5132_v2  ;;  %v5140_v45 = vld [vmem:[#allocation55_spill] sm:$0xff]  ;;  %v5147_v62 = vld [vmem:[#allocation57_spill] sm:$0xff]  ;;  %v5154_v2 = vld [vmem:[#allocation60_spill] sm:$0xff] }
 0x92d   :  { %3382 = vst [vmem:[#allocation2 + $0x20] sm:$0xff] %v3366_v16  ;;  %v5127_v16 = vld [vmem:[#allocation12_spill] sm:$0xff] }
 0x92e   :  { %v3236_v15 = vpop.f32.mrf.mxu0  ;;  %v3323_v0 = vpop.f32.mrf.mxu1  ;;  %v2244_v32 = vadd.f32 %v5128_v46, %v5127_v16  ;;  %v3148_v24 = vadd.f32 %v3147_v34, %v3040_v4  ;;  %v3154_v17 = vadd.f32 %v3153_v36, %v3045_v7  ;;  %v5149_v16 = vld [vmem:[#allocation17_spill] sm:$0xff] }
 0x92f   :  { %v3237_v22 = vadd.f32 %v3236_v15, %v3130_v27  ;;  %v3049_v27 = vpop.f32.mrf.mxu2 }
 0x930   :  { %v2339_v35 = vadd.f32 %v5130_v44, %v2244_v32  ;;  %v3050_v14 = vadd.f32 %v3049_v27, %v5139_v40  ;;  %v5161_v40 = vld [vmem:[#allocation65_spill] sm:$0xff] }
 0x931   :  { %v3320_v20 = vadd.f32 %v3319_v41, %v3237_v22  ;;  %v3159_v49 = vpop.f32.mrf.mxu3 }
 0x932   :  { %v2448_v54 = vadd.f32 %v5131_v43, %v2339_v35  ;;  %v3160_v18 = vadd.f32 %v3159_v49, %v3050_v14  ;;  %v5153_v43 = vld [vmem:[#allocation76_spill] sm:$0xff]  ;;  %v5156_v49 = vld [vmem:[#allocation19_spill] sm:$0xff] }
 0x933   :  { %v3367_v29 = vmul.f32 %v3320_v20, %v2614_v61  ;;  %v2626_v61 = vadd.f32 %v5133_v50, %v2543_v11  ;;  %v5151_v11 = vld [vmem:[#allocation39_spill] sm:$0xff] }
 0x934   :  { %v2547_v26 = vadd.f32 %v5136_v57, %v2448_v54 }
 0x935   :  { %3383 = vst [vmem:[#allocation2 + $0x28] sm:$0xff] %v3367_v29  ;;  %v2248_v29 = vadd.f32 %v5135_v25, %v5134_v42 }
 0x936   :  { %v3240_v56 = vpop.f32.mrf.mxu0  ;;  %v3327_v3 = vpop.f32.mrf.mxu1  ;;  %v2630_v10 = vadd.f32 %v5140_v45, %v2547_v26  ;;  %v5158_v26 = vld [vmem:[#allocation43_spill] sm:$0xff] }
 0x937   :  { %v3241_v31 = vadd.f32 %v3240_v56, %v3136_v38  ;;  %v2344_v60 = vadd.f32 %v5137_v55, %v2248_v29  ;;  %v3054_v56 = vpop.f32.mrf.mxu2 }
 0x938   :  { %v3055_v23 = vadd.f32 %v3054_v56, %v5146_v6  ;;  %v5168_v6 = vld [vmem:[#allocation68_spill] sm:$0xff] }
 0x939   :  { %v3324_v52 = vadd.f32 %v3323_v0, %v3241_v31  ;;  %v3165_v59 = vpop.f32.mrf.mxu3 }
 0x93a   :  { %v3166_v35 = vadd.f32 %v3165_v59, %v3055_v23 }
 0x93b   :  { %v3368_v58 = vmul.f32 %v3324_v52, %v2618_v28  ;;  %v5141_v52 = vld [vmem:[#allocation16_spill] sm:$0xff] }
 0x93c   :  { %v2252_v48 = vadd.f32 %v5142_v21, %v5141_v52 }
 0x93d   :  { %3384 = vst [vmem:[#allocation2 + $0x30] sm:$0xff] %v3368_v58  ;;  %v5143_v58 = vld [vmem:[#allocation56_spill] sm:$0xff] }
 0x93e   :  { %v3244_v41 = vpop.f32.mrf.mxu0  ;;  %v3331_v53 = vpop.f32.mrf.mxu1  ;;  %v2349_v1 = vadd.f32 %v5144_v63, %v2252_v48 }
 0x93f   :  { %v3245_v5 = vadd.f32 %v3244_v41, %v3142_v19 }
 0x941   :  { %v3328_v13 = vadd.f32 %v3327_v3, %v3245_v5  ;;  %v5138_v3 = vld [vmem:[#allocation33_spill] sm:$0xff]  ;;  %v5145_v5 = vld [vmem:[#allocation35_spill] sm:$0xff] }
 0x942   :  { %v2454_v31 = vadd.f32 %v5138_v3, %v2344_v60  ;;  %v2460_v36 = vadd.f32 %v5145_v5, %v2349_v1  ;;  %v5160_v3 = vld [vmem:[#allocation77_spill] sm:$0xff]  ;;  %v5167_v5 = vld [vmem:[#allocation78_spill] sm:$0xff] }
 0x943   :  { %v3369_v47 = vmul.f32 %v3328_v13, %v2622_v12  ;;  %v3059_v12 = vpop.f32.mrf.mxu2  ;;  %v5148_v13 = vld [vmem:[#allocation18_spill] sm:$0xff] }
 0x944   :  { %v2551_v30 = vadd.f32 %v5143_v58, %v2454_v31  ;;  %v2256_v46 = vadd.f32 %v5149_v16, %v5148_v13  ;;  %v3060_v54 = vadd.f32 %v3059_v12, %v5153_v43  ;;  %v5165_v58 = vld [vmem:[#allocation47_spill] sm:$0xff] }
 0x945   :  { %3385 = vst [vmem:[#allocation2 + $0x38] sm:$0xff] %v3369_v47  ;;  %v5150_v47 = vld [vmem:[#allocation59_spill] sm:$0xff] }
 0x946   :  { %v3248_v15 = vpop.f32.mrf.mxu0  ;;  %v3335_v0 = vpop.f32.mrf.mxu1  ;;  %v2634_v4 = vadd.f32 %v5147_v62, %v2551_v30  ;;  %v2555_v37 = vadd.f32 %v5150_v47, %v2460_v36  ;;  %v2354_v44 = vadd.f32 %v5151_v11, %v2256_v46  ;;  %v5170_v12 = vld [vmem:[#allocation23_spill] sm:$0xff]  ;;  %v5171_v46 = vld [vmem:[#allocation69_spill] sm:$0xff] }
 0x947   :  { %v3249_v22 = vadd.f32 %v3248_v15, %v3148_v24  ;;  %v3171_v24 = vpop.f32.mrf.mxu3  ;;  %v5172_v47 = vld [vmem:[#allocation51_spill] sm:$0xff] }
 0x948   :  { %v2638_v7 = vadd.f32 %v5154_v2, %v2555_v37  ;;  %v3172_v60 = vadd.f32 %v3171_v24, %v3060_v54  ;;  %v5174_v43 = vld [vmem:[#allocation71_spill] sm:$0xff] }
 0x949   :  { %v3332_v20 = vadd.f32 %v3331_v53, %v3249_v22 }
 0x94b   :  { %v3370_v33 = vmul.f32 %v3332_v20, %v2626_v61  ;;  %v5155_v20 = vld [vmem:[#allocation20_spill] sm:$0xff]  ;;  %v3064_v29 = vpop.f32.mrf.mxu2 }
 0x94c   :  { %v2260_v42 = vadd.f32 %v5156_v49, %v5155_v20  ;;  %v3065_v31 = vadd.f32 %v3064_v29, %v5160_v3 }
 0x94d   :  { %3386 = vst [vmem:[#allocation2 + $0x40] sm:$0xff] %v3370_v33  ;;  %v5157_v33 = vld [vmem:[#allocation63_spill] sm:$0xff] }
 0x94e   :  { %v3252_v51 = vpop.f32.mrf.mxu0  ;;  %v3339_v38 = vpop.f32.mrf.mxu1  ;;  %v2359_v55 = vadd.f32 %v5158_v26, %v2260_v42 }
 0x94f   :  { %v3253_v34 = vadd.f32 %v3252_v51, %v3154_v17 }
 0x951   :  { %v3336_v28 = vadd.f32 %v3335_v0, %v3253_v34  ;;  %v5152_v0 = vld [vmem:[#allocation37_spill] sm:$0xff]  ;;  %v5159_v34 = vld [vmem:[#allocation40_spill] sm:$0xff] }
 0x952   :  { %v2466_v22 = vadd.f32 %v5152_v0, %v2354_v44  ;;  %v2472_v56 = vadd.f32 %v5159_v34, %v2359_v55 }
 0x953   :  { %v3371_v8 = vmul.f32 %v3336_v28, %v2630_v10  ;;  %v5162_v10 = vld [vmem:[#allocation22_spill] sm:$0xff]  ;;  %v5163_v28 = vld [vmem:[#allocation21_spill] sm:$0xff]  ;;  %v3069_v1 = vpop.f32.mrf.mxu2 }
 0x954   :  { %v2559_v57 = vadd.f32 %v5157_v33, %v2466_v22  ;;  %v2264_v52 = vadd.f32 %v5163_v28, %v5162_v10  ;;  %v3070_v36 = vadd.f32 %v3069_v1, %v5167_v5  ;;  %v5176_v33 = vld [vmem:[#allocation74_spill] sm:$0xff] }
 0x955   :  { %3387 = vst [vmem:[#allocation2 + $0x48] sm:$0xff] %v3371_v8  ;;  %v5164_v8 = vld [vmem:[#allocation66_spill] sm:$0xff] }
 0x956   :  { %v3256_v19 = vpop.f32.mrf.mxu0  ;;  %v3343_v53 = vpop.f32.mrf.mxu1  ;;  %v2642_v14 = vadd.f32 %v5161_v40, %v2559_v57  ;;  %v2563_v59 = vadd.f32 %v5164_v8, %v2472_v56  ;;  %v2364_v30 = vadd.f32 %v5165_v58, %v2264_v52 }
 0x957   :  { %v3257_v41 = vadd.f32 %v3256_v19, %v3160_v18 }
 0x958   :  { %v2646_v23 = vadd.f32 %v5168_v6, %v2563_v59 }
 0x959   :  { %v3340_v9 = vadd.f32 %v3339_v38, %v3257_v41  ;;  %v3177_v38 = vpop.f32.mrf.mxu3  ;;  %v5166_v41 = vld [vmem:[#allocation44_spill] sm:$0xff] }
 0x95a   :  { %v3178_v63 = vadd.f32 %v3177_v38, %v3065_v31 }
 0x95b   :  { %v3372_v32 = vmul.f32 %v3340_v9, %v2634_v4  ;;  %v5169_v9 = vld [vmem:[#allocation24_spill] sm:$0xff] }
 0x95c   :  { %v2268_v13 = vadd.f32 %v5170_v12, %v5169_v9 }
 0x95d   :  { %3388 = vst [vmem:[#allocation2 + $0x50] sm:$0xff] %v3372_v32 }
 0x95e   :  { %v3260_v27 = vpop.f32.mrf.mxu0  ;;  %v3347_v61 = vpop.f32.mrf.mxu1  ;;  %v2369_v37 = vadd.f32 %v5172_v47, %v2268_v13 }
 0x95f   :  { %v3261_v15 = vadd.f32 %v3260_v27, %v3166_v35  ;;  %v3074_v27 = vpop.f32.mrf.mxu2 }
 0x960   :  { %v3075_v22 = vadd.f32 %v3074_v27, %v4899_v39 }
 0x961   :  { %v3344_v50 = vadd.f32 %v3343_v53, %v3261_v15  ;;  %v2478_v53 = vadd.f32 %v5166_v41, %v2364_v30  ;;  %v3183_v4 = vpop.f32.mrf.mxu3  ;;  %v5173_v15 = vld [vmem:[#allocation48_spill] sm:$0xff] }
 0x962   :  { %v3184_v11 = vadd.f32 %v3183_v4, %v3070_v36  ;;  %v2484_v0 = vadd.f32 %v5173_v15, %v2369_v37 }
 0x963   :  { %v3373_v25 = vmul.f32 %v3344_v50, %v2638_v7  ;;  %v2567_v32 = vadd.f32 %v5171_v46, %v2478_v53 }
 0x965   :  { %3389 = vst [vmem:[#allocation2 + $0x58] sm:$0xff] %v3373_v25  ;;  %v2650_v54 = vadd.f32 %v5174_v43, %v2567_v32 }
 0x966   :  { %v3264_v17 = vpop.f32.mrf.mxu0  ;;  %v3351_v48 = vpop.f32.mrf.mxu1 }
 0x967   :  { %v3265_v51 = vadd.f32 %v3264_v17, %v3172_v60 }
 0x969   :  { %v3348_v45 = vadd.f32 %v3347_v61, %v3265_v51  ;;  %v3189_v50 = vpop.f32.mrf.mxu3  ;;  %v5175_v61 = vld [vmem:[#allocation73_spill] sm:$0xff] }
 0x96a   :  { %v2571_v20 = vadd.f32 %v5175_v61, %v2484_v0  ;;  %v3190_v49 = vadd.f32 %v3189_v50, %v3075_v22 }
 0x96b   :  { %v3374_v21 = vmul.f32 %v3348_v45, %v2642_v14 }
 0x96c   :  { %v2654_v39 = vadd.f32 %v5176_v33, %v2571_v20 }
 0x96d   :  { %3390 = vst [vmem:[#allocation2 + $0x60] sm:$0xff] %v3374_v21 }
 0x96e   :  { %v3268_v18 = vpop.f32.mrf.mxu0  ;;  %v3355_v44 = vpop.f32.mrf.mxu1 }
 0x96f   :  { %v3269_v19 = vadd.f32 %v3268_v18, %v3178_v63 }
 0x971   :  { %v3352_v62 = vadd.f32 %v3351_v48, %v3269_v19 }
 0x973   :  { %v3375_v16 = vmul.f32 %v3352_v62, %v2646_v23 }
 0x975   :  { %3391 = vst [vmem:[#allocation2 + $0x68] sm:$0xff] %v3375_v16 }
 0x976   :  { %v3272_v35 = vpop.f32.mrf.mxu0  ;;  %v3359_v29 = vpop.f32.mrf.mxu1 }
 0x977   :  { %v3273_v24 = vadd.f32 %v3272_v35, %v3184_v11 }
 0x979   :  { %v3356_v2 = vadd.f32 %v3355_v44, %v3273_v24 }
 0x97b   :  { %v3376_v7 = vmul.f32 %v3356_v2, %v2650_v54 }
 0x97d   :  { %3392 = vst [vmem:[#allocation2 + $0x70] sm:$0xff] %v3376_v7 }
 0x97e   :  { %v3276_v42 = vpop.f32.mrf.mxu0 }
 0x97f   :  { %v3277_v25 = vadd.f32 %v3276_v42, %v3190_v49 }
 0x981   :  { %v3360_v57 = vadd.f32 %v3359_v29, %v3277_v25 }
 0x983   :  { %v3377_v26 = vmul.f32 %v3360_v57, %v2654_v39 }
 0x985   :  { %3393 = vst [vmem:[#allocation2 + $0x78] sm:$0xff] %v3377_v26 }
 0x986   :  { %3406 = dma.vmem_to_hbm [thread:$0]  %s3399_s7, 2048, %s3401_s10, [#allocation3], %s3479_s11, %s3479_s11, %s3480_s2  }
 0x987   :  { %3474 = dma.done.wait [#allocation3], 2048  }
 0x988   :  { %3475 = vsyncadd [#allocation3], 4294965248 }
 0x989   :  { %3411 = vsyncpa [#allocation3], 1 }

</bundles_post_ra>
